<compile_context>
chip_gen: v5e
topology: v5e:2x2
jax: 0.10.0
libtpu: 0.0.40
codegen_flags: <defaults>
</compile_context>

<pallas_src>
import jax
import jax.numpy as jnp
from jax import lax
from jax.experimental import pallas as pl
from jax.experimental.pallas import tpu as pltpu

EPS = 1e-5
EMB = 256
VMEM_LIMIT = 48 * 1024 * 1024   # > scoped defaults (16/32 MiB), < v7x physical (64 MiB)


# ---------------------------------------------------------------------------
# Small-parameter packing.
# ---------------------------------------------------------------------------
def _pack_rows(entries):
    """[(name, (1,c))] -> ((1,P) f32, offsets); each chunk lane-aligned (128)."""
    off, chunks, pos = {}, [], 0
    for name, a in entries:
        a = jnp.asarray(a, jnp.float32).reshape(1, -1)
        c = a.shape[-1]
        off[name] = (pos, c)
        pad = (-c) % 128
        if pad:
            a = jnp.concatenate([a, jnp.zeros((1, pad), jnp.float32)], axis=-1)
        chunks.append(a)
        pos += c + pad
    return jnp.concatenate(chunks, axis=-1), off


def _pack_cols(entries):
    """[(name, (c,)/(1,c))] -> ((P,1) f32, offsets); each chunk sublane-aligned (8)."""
    off, chunks, pos = {}, [], 0
    for name, a in entries:
        a = jnp.asarray(a, jnp.float32).reshape(-1, 1)
        c = a.shape[0]
        off[name] = (pos, c)
        pad = (-c) % 8
        if pad:
            a = jnp.concatenate([a, jnp.zeros((pad, 1), jnp.float32)], axis=0)
        chunks.append(a)
        pos += c + pad
    return jnp.concatenate(chunks, axis=0), off


# ---------------------------------------------------------------------------
# Kernel 1: point-cloud encoder in (C, N) layout.  grid = (B,).
# layer1: C_in FMAs (VPU); layers 2-5: W^T @ x (MXU, bf16 operands, f32 acc);
# GroupNorm(1, C) over the whole sample; max over points -> (1, 256, 1).
# ---------------------------------------------------------------------------
def make_encoder_kernel(off, c_in):
    def kernel(pc_ref, col_ref, w2, w3, w4, w5, emb_ref):
        def V(name):                             # (c, 1) static sublane slice
            o, c = off[name]
            return col_ref[o:o + c, :]

        def gn_relu(y, g, be):
            # GroupNorm(1, C) over whole (C, N) sample, shifted two-pass stats.
            cnt = float(y.shape[0] * y.shape[1])
            mu = jnp.sum(jnp.sum(y, axis=1, keepdims=True),
                         axis=0, keepdims=True) / cnt            # (1, 1)
            d = y - mu
            var = jnp.sum(jnp.sum(d * d, axis=1, keepdims=True),
                          axis=0, keepdims=True) / cnt
            y = d * lax.rsqrt(var + EPS)
            return jnp.maximum(y * V(g) + V(be), 0.0)

        x = pc_ref[0]                            # (C_in, N) f32, native layout

        # Layer 1 (K = C_in, small): VPU broadcast FMAs — no underfilled MXU op.
        y = V('w1_c0') * x[0:1, :]               # (64,1)*(1,N) -> (64,N)
        for c in range(1, c_in):
            y = y + V('w1_c%d' % c) * x[c:c + 1, :]
        x = gn_relu(y + V('b1'), 'g1', 'be1')    # (64, N)

        def block(x, w_ref, b, g, be):
            w = w_ref[...]                       # (C_out, C_prev) bf16
            y = jnp.dot(w, x.astype(w.dtype),
                        preferred_element_type=jnp.float32)      # f32 accum
            return gn_relu(y + V(b), g, be)

        x = block(x, w2, 'b2', 'g2', 'be2')      # (64, N)
        x = block(x, w3, 'b3', 'g3', 'be3')      # (64, N)
        x = block(x, w4, 'b4', 'g4', 'be4')      # (128, N)
        x = block(x, w5, 'b5', 'g5', 'be5')      # (256, N)

        emb_ref[...] = jnp.max(x, axis=1, keepdims=True)[None]   # (1, 256, 1)

    return kernel


# ---------------------------------------------------------------------------
# Kernel 2: query embedder + stress / occupancy heads.
# grid = (B, Qp // tile_q); pc-embedding halves of the head first layers are
# precomputed per batch and arrive as (1, 1, 256) inputs.
# ---------------------------------------------------------------------------
def make_query_kernel(off):
    def kernel(hs_ref, ho_ref, q_ref, vec_ref, wq2, wq3, ws1q, ws2, wo1q, wo2,
               stress_ref, occ_ref):
        def V(name):                             # (1, c) static lane slice
            o, c = off[name]
            return vec_ref[:, o:o + c]

        def mm(x, w_ref):                        # bf16 MXU, f32 accumulate
            w = w_ref[...]
            return jnp.dot(x.astype(w.dtype), w,
                           preferred_element_type=jnp.float32)

        def gn_relu(x, g, be):                   # per-row GroupNorm(1, C), two-pass
            c = float(x.shape[-1])
            mu = jnp.sum(x, axis=-1, keepdims=True) / c
            d = x - mu
            var = jnp.sum(d * d, axis=-1, keepdims=True) / c
            x = d * lax.rsqrt(var + EPS)
            return jnp.maximum(x * V(g) + V(be), 0.0)

        q = q_ref[0]                              # (TQ, 3) f32

        # Layer 1 (K = 3): VPU broadcast FMAs.
        xq = (q[:, 0:1] * V('wq1_r0') + q[:, 1:2] * V('wq1_r1')
              + q[:, 2:3] * V('wq1_r2') + V('bq1'))
        xq = gn_relu(xq, 'gq1', 'beq1')                            # (TQ, 64)
        xq = gn_relu(mm(xq, wq2) + V('bq2'), 'gq2', 'beq2')        # (TQ, 128)
        xq = gn_relu(mm(xq, wq3) + V('bq3'), 'gq3', 'beq3')        # (TQ, 256)

        # stress head: pc half (+ bias) hoisted into hs_ref (per batch).
        xs = gn_relu(mm(xq, ws1q) + hs_ref[0], 'gs1', 'bes1')      # (TQ, 256)
        xs = gn_relu(mm(xs, ws2) + V('bs2'), 'gs2', 'bes2')        # (TQ, 128)
        stress = jnp.sum(xs * V('ws3'), axis=-1, keepdims=True) + V('bs3')

        # occupancy head
        xo = gn_relu(mm(xq, wo1q) + ho_ref[0], 'go1', 'beo1')      # (TQ, 256)
        xo = gn_relu(mm(xo, wo2) + V('bo2'), 'go2', 'beo2')        # (TQ, 128)
        occ = jax.nn.sigmoid(jnp.sum(xo * V('wo3'), axis=-1, keepdims=True)
                             + V('bo3'))

        stress_ref[...] = stress[None]            # (1, TQ, 1)
        occ_ref[...] = occ[None]

    return kernel


# ---------------------------------------------------------------------------
# Parameter init (deterministic).  Matmul weights stored bf16; all small
# per-channel params packed into one vector per kernel.
# ---------------------------------------------------------------------------
def make_params(num_channels, key):
    ks = jax.random.split(key, 16)

    def lin(k, fi, fo):
        k1, k2 = jax.random.split(k)
        bound = float(fi) ** -0.5
        w = jax.random.uniform(k1, (fi, fo), jnp.float32, -bound, bound)
        b = jax.random.uniform(k2, (1, fo), jnp.float32, -bound, bound)
        return w, b

    ones = lambda c: jnp.ones((1, c), jnp.float32)
    zeros = lambda c: jnp.zeros((1, c), jnp.float32)

    # ---- encoder (kernel runs in (C, N) layout; weights stored transposed) ----
    w1, b1 = lin(ks[0], num_channels, 64)
    w2, b2 = lin(ks[1], 64, 64)
    w3, b3 = lin(ks[2], 64, 64)
    w4, b4 = lin(ks[3], 64, 128)
    w5, b5 = lin(ks[4], 128, EMB)

    col_entries = [('w1_c%d' % c, w1[c]) for c in range(num_channels)]
    col_entries += [('b1', b1), ('g1', ones(64)), ('be1', zeros(64)),
                    ('b2', b2), ('g2', ones(64)), ('be2', zeros(64)),
                    ('b3', b3), ('g3', ones(64)), ('be3', zeros(64)),
                    ('b4', b4), ('g4', ones(128)), ('be4', zeros(128)),
                    ('b5', b5), ('g5', ones(EMB)), ('be5', zeros(EMB))]
    enc_col, enc_off = _pack_cols(col_entries)
    enc_w = tuple(w.T.astype(jnp.bfloat16) for w in (w2, w3, w4, w5))

    # ---- query embedder + heads ----
    wq1, bq1 = lin(ks[5], 3, 64)
    wq2, bq2 = lin(ks[6], 64, 128)
    wq3, bq3 = lin(ks[7], 128, 256)
    ws1, bs1 = lin(ks[8], 512, 256)
    ws2, bs2 = lin(ks[9], 256, 128)
    ws3, bs3 = lin(ks[10], 128, 1)
    wo1, bo1 = lin(ks[11], 512, 256)
    wo2, bo2 = lin(ks[12], 256, 128)
    wo3, bo3 = lin(ks[13], 128, 1)

    qr_entries = [
        ('wq1_r0', wq1[0:1]), ('wq1_r1', wq1[1:2]), ('wq1_r2', wq1[2:3]),
        ('bq1', bq1), ('gq1', ones(64)), ('beq1', zeros(64)),
        ('bq2', bq2), ('gq2', ones(128)), ('beq2', zeros(128)),
        ('bq3', bq3), ('gq3', ones(256)), ('beq3', zeros(256)),
        ('gs1', ones(256)), ('bes1', zeros(256)),
        ('bs2', bs2), ('gs2', ones(128)), ('bes2', zeros(128)),
        ('ws3', ws3.T), ('bs3', bs3),
        ('go1', ones(256)), ('beo1', zeros(256)),
        ('bo2', bo2), ('go2', ones(128)), ('beo2', zeros(128)),
        ('wo3', wo3.T), ('bo3', bo3),
    ]
    qr_vec, qr_off = _pack_rows(qr_entries)
    # Query kernel only sees the query-halves of ws1/wo1 (pc-halves are hoisted).
    qr_w = tuple(w.astype(jnp.bfloat16)
                 for w in (wq2, wq3, ws1[EMB:], ws2, wo1[EMB:], wo2))

    hoist = dict(ws1_pc=ws1[:EMB].astype(jnp.bfloat16), bs1=bs1,
                 wo1_pc=wo1[:EMB].astype(jnp.bfloat16), bo1=bo1)

    return (enc_w, enc_col, enc_off), (qr_w, qr_vec, qr_off), hoist


# ---------------------------------------------------------------------------
# Forward wrapper (offsets are static Python ints captured by closure).
# ---------------------------------------------------------------------------
def build_forward(enc_off, qr_off, c_in, tile_q_max=2048):
    enc_kernel = make_encoder_kernel(enc_off, c_in)
    q_kernel = make_query_kernel(qr_off)

    def forward(pc, query, enc_w, enc_col, qr_w, qr_vec, hoist):
        B, C_in, N = pc.shape
        assert C_in == c_in
        Q = query.shape[1]
        pc = pc.astype(jnp.float32)               # native (B, C_in, N) layout

        full1 = lambda b: (0, 0)
        enc_flops = int(2 * B * N * (C_in * 64 + 64 * 64 + 64 * 64
                                     + 64 * 128 + 128 * EMB))
        enc_bytes = int(pc.size * 4 + B * EMB * 4 + enc_col.size * 4
                        + sum(w.size * 2 for w in enc_w))
        emb = pl.pallas_call(
            enc_kernel,
            grid=(B,),
            in_specs=[pl.BlockSpec((1, C_in, N), lambda b: (b, 0, 0)),
                      pl.BlockSpec(enc_col.shape, full1)]
                     + [pl.BlockSpec(w.shape, full1) for w in enc_w],
            out_specs=pl.BlockSpec((1, EMB, 1), lambda b: (b, 0, 0)),
            out_shape=jax.ShapeDtypeStruct((B, EMB, 1), jnp.float32),
            compiler_params=pltpu.CompilerParams(
                dimension_semantics=("parallel",),
                vmem_limit_bytes=VMEM_LIMIT),
            cost_estimate=pl.CostEstimate(flops=enc_flops, transcendentals=5 * B,
                                          bytes_accessed=enc_bytes),
        )(pc, enc_col, *enc_w)                    # (B, 256, 1)
        emb = emb[:, :, 0]                        # (B, 256)

        # Hoisted per-batch pc-embedding halves of both head first layers
        # (tiny XLA matmuls, run once per batch instead of per query tile).
        h_s = (jnp.dot(emb.astype(jnp.bfloat16), hoist['ws1_pc'],
                       preferred_element_type=jnp.float32) + hoist['bs1'])[:, None, :]
        h_o = (jnp.dot(emb.astype(jnp.bfloat16), hoist['wo1_pc'],
                       preferred_element_type=jnp.float32) + hoist['bo1'])[:, None, :]

        # Query tiling: pad Q up to a multiple of tile_q (no giant-tile fallback).
        tile_q = min(tile_q_max, max(8, ((Q + 7) // 8) * 8))
        Qp = ((Q + tile_q - 1) // tile_q) * tile_q
        qpad = jnp.pad(query.astype(jnp.float32), ((0, 0), (0, Qp - Q), (0, 0)))

        full2 = lambda b, t: (0, 0)
        qry_flops = int(2 * B * Qp * (3 * 64 + 64 * 128 + 128 * 256
                                      + 2 * (256 * 256 + 256 * 128 + 128)))
        qry_bytes = int(B * Qp * 5 * 4 + 2 * B * EMB * 4 + qr_vec.size * 4
                        + sum(w.size * 2 for w in qr_w))
        stress, occ = pl.pallas_call(
            q_kernel,
            grid=(B, Qp // tile_q),
            in_specs=[pl.BlockSpec((1, 1, EMB), lambda b, t: (b, 0, 0)),
                      pl.BlockSpec((1, 1, EMB), lambda b, t: (b, 0, 0)),
                      pl.BlockSpec((1, tile_q, 3), lambda b, t: (b, t, 0)),
                      pl.BlockSpec(qr_vec.shape, full2)]
                     + [pl.BlockSpec(w.shape, full2) for w in qr_w],
            out_specs=(pl.BlockSpec((1, tile_q, 1), lambda b, t: (b, t, 0)),
                       pl.BlockSpec((1, tile_q, 1), lambda b, t: (b, t, 0))),
            out_shape=(jax.ShapeDtypeStruct((B, Qp, 1), jnp.float32),
                       jax.ShapeDtypeStruct((B, Qp, 1), jnp.float32)),
            compiler_params=pltpu.CompilerParams(
                dimension_semantics=("parallel", "parallel"),
                vmem_limit_bytes=VMEM_LIMIT),
            cost_estimate=pl.CostEstimate(flops=qry_flops,
                                          transcendentals=B * Qp,
                                          bytes_accessed=qry_bytes),
        )(h_s, h_o, qpad, qr_vec, *qr_w)

        stress = stress[:, :Q, :].reshape(B * Q, 1)
        occ = occ[:, :Q, :].reshape(B * Q, 1)
        return stress, occ

    return forward


# ---------------------------------------------------------------------------
# Pure-JAX reference mirroring the kernel math (bf16 MXU operands, f32 accum,
# two-pass GroupNorm, hoisted pc halves) for a sanity check.
# ---------------------------------------------------------------------------
def _ref_forward(pc, query, enc_w, enc_col, enc_off, qr_w, qr_vec, qr_off, hoist):
    def Vc(name):
        o, c = enc_off[name]
        return enc_col[o:o + c, 0]                # (c,)

    def Vr(name):
        o, c = qr_off[name]
        return qr_vec[:, o:o + c]                 # (1, c)

    def gn(x, axes, g, b):
        cnt = 1.0
        for a in axes:
            cnt *= x.shape[a]
        mu = jnp.sum(x, axis=axes, keepdims=True) / cnt
        d = x - mu
        var = jnp.sum(d * d, axis=axes, keepdims=True) / cnt
        return d * lax.rsqrt(var + EPS) * g + b

    def mmb(a, w):
        return jnp.dot(a.astype(jnp.bfloat16), w,
                       preferred_element_type=jnp.float32)

    B, C_in, _ = pc.shape
    x = jnp.transpose(pc, (0, 2, 1)).astype(jnp.float32)        # (B, N, C_in)

    # layer 1 (f32 FMAs)
    y = x[..., 0:1] * Vc('w1_c0')[None, None, :]
    for c in range(1, C_in):
        y = y + x[..., c:c + 1] * Vc('w1_c%d' % c)[None, None, :]
    y = y + Vc('b1')[None, None, :]
    x = jax.nn.relu(gn(y, (1, 2), Vc('g1')[None, None], Vc('be1')[None, None]))
    # layers 2-5 (bf16 operands; enc_w stored transposed (C_out, C_in))
    names = (('b2', 'g2', 'be2'), ('b3', 'g3', 'be3'),
             ('b4', 'g4', 'be4'), ('b5', 'g5', 'be5'))
    for w, (bn, gn_n, be_n) in zip(enc_w, names):
        y = jnp.einsum('bnc,oc->bno', x.astype(jnp.bfloat16), w,
                       preferred_element_type=jnp.float32) + Vc(bn)[None, None]
        x = jax.nn.relu(gn(y, (1, 2), Vc(gn_n)[None, None], Vc(be_n)[None, None]))
    emb = jnp.max(x, axis=1)                                     # (B, 256)

    Q = query.shape[1]
    qf = query.reshape(-1, 3).astype(jnp.float32)
    wq2, wq3, ws1q, ws2, wo1q, wo2 = qr_w

    xq = (qf[:, 0:1] * Vr('wq1_r0') + qf[:, 1:2] * Vr('wq1_r1')
          + qf[:, 2:3] * Vr('wq1_r2') + Vr('bq1'))
    xq = jax.nn.relu(gn(xq, (-1,), Vr('gq1'), Vr('beq1')))
    xq = jax.nn.relu(gn(mmb(xq, wq2) + Vr('bq2'), (-1,), Vr('gq2'), Vr('beq2')))
    xq = jax.nn.relu(gn(mmb(xq, wq3) + Vr('bq3'), (-1,), Vr('gq3'), Vr('beq3')))

    h_s = jnp.repeat(mmb(emb, hoist['ws1_pc']) + hoist['bs1'], Q, axis=0)
    h_o = jnp.repeat(mmb(emb, hoist['wo1_pc']) + hoist['bo1'], Q, axis=0)

    xs = jax.nn.relu(gn(mmb(xq, ws1q) + h_s, (-1,), Vr('gs1'), Vr('bes1')))
    xs = jax.nn.relu(gn(mmb(xs, ws2) + Vr('bs2'), (-1,), Vr('gs2'), Vr('bes2')))
    stress = jnp.sum(xs * Vr('ws3'), axis=-1, keepdims=True) + Vr('bs3')

    xo = jax.nn.relu(gn(mmb(xq, wo1q) + h_o, (-1,), Vr('go1'), Vr('beo1')))
    xo = jax.nn.relu(gn(mmb(xo, wo2) + Vr('bo2'), (-1,), Vr('go2'), Vr('beo2')))
    occ = jax.nn.sigmoid(jnp.sum(xo * Vr('wo3'), axis=-1, keepdims=True)
                         + Vr('bo3'))
    return stress, occ


# ---------------------------------------------------------------------------
if __name__ == "__main__":
    B, C_IN, N_PTS, N_QRS = 2, 5, 16, 8

    key = jax.random.PRNGKey(0)
    k_pc, k_q = jax.random.split(key)
    pc = jax.random.normal(k_pc, (B, C_IN, N_PTS), jnp.float32)
    query = jax.random.normal(k_q, (B, N_QRS, 3), jnp.float32)

    (enc_w, enc_col, enc_off), (qr_w, qr_vec, qr_off), hoist = make_params(
        C_IN, jax.random.PRNGKey(42))

    fwd = jax.jit(build_forward(enc_off, qr_off, C_IN))
    x_stress, x_occ = fwd(pc, query, enc_w, enc_col, qr_w, qr_vec, hoist)
    jax.block_until_ready((x_stress, x_occ))

    assert x_stress.shape == (B * N_QRS, 1) and x_occ.shape == (B * N_QRS, 1)

    ref_s, ref_o = _ref_forward(pc, query, enc_w, enc_col, enc_off,
                                qr_w, qr_vec, qr_off, hoist)
    assert jnp.allclose(x_stress, ref_s, rtol=1e-2, atol=1e-2)
    assert jnp.allclose(x_occ, ref_o, rtol=1e-2, atol=1e-2)

    print("KERNEL_OK")
</pallas_src>

<mosaic_0001>
module attributes {stable_mosaic.version = 11 : i64} {
  func.func @kernel(%arg0: i32, %arg1: memref<1x5x16xf32, #tpu.memory_space<vmem>>, %arg2: memref<2048x1xf32, #tpu.memory_space<vmem>>, %arg3: memref<64x64xbf16, #tpu.memory_space<vmem>>, %arg4: memref<64x64xbf16, #tpu.memory_space<vmem>>, %arg5: memref<128x64xbf16, #tpu.memory_space<vmem>>, %arg6: memref<256x128xbf16, #tpu.memory_space<vmem>>, %arg7: memref<1x256x1xf32, #tpu.memory_space<vmem>>) attributes {dimension_semantics = [#tpu.dimension_semantics<parallel>], iteration_bounds = array<i64: 2>, scalar_prefetch = 0 : i64, scratch_operands = 0 : i64, tpu.core_type = #tpu.core_type<tc>, window_params = [{transform_indices = @transform_0, window_bounds = array<i64: 1, 5, 16>}, {pipeline_mode = #tpu.pipeline_mode<synchronous>, transform_indices = @transform_1, window_bounds = array<i64: 2048, 1>}, {pipeline_mode = #tpu.pipeline_mode<synchronous>, transform_indices = @transform_2, window_bounds = array<i64: 64, 64>}, {pipeline_mode = #tpu.pipeline_mode<synchronous>, transform_indices = @transform_3, window_bounds = array<i64: 64, 64>}, {pipeline_mode = #tpu.pipeline_mode<synchronous>, transform_indices = @transform_4, window_bounds = array<i64: 128, 64>}, {pipeline_mode = #tpu.pipeline_mode<synchronous>, transform_indices = @transform_5, window_bounds = array<i64: 256, 128>}, {transform_indices = @transform_6, window_bounds = array<i64: 1, 256, 1>}]} {
    %c0 = arith.constant 0 : index
    %c0_0 = arith.constant 0 : index
    %c0_1 = arith.constant 0 : index
    %0 = vector.load %arg1[%c0, %c0_0, %c0_1] : memref<1x5x16xf32, #tpu.memory_space<vmem>>, vector<1x5x16xf32>
    %1 = vector.shape_cast %0 : vector<1x5x16xf32> to vector<5x16xf32>
    %c0_2 = arith.constant 0 : index
    %c0_3 = arith.constant 0 : index
    %2 = vector.load %arg2[%c0_2, %c0_3] : memref<2048x1xf32, #tpu.memory_space<vmem>>, vector<64x1xf32>
    %3 = vector.extract_strided_slice %1 {offsets = [0, 0], sizes = [1, 16], strides = [1, 1]} : vector<5x16xf32> to vector<1x16xf32>
    %4 = vector.broadcast %2 : vector<64x1xf32> to vector<64x16xf32>
    %5 = vector.broadcast %3 : vector<1x16xf32> to vector<64x16xf32>
    %6 = arith.mulf %4, %5 : vector<64x16xf32>
    %c64 = arith.constant 64 : index
    %c0_4 = arith.constant 0 : index
    %7 = vector.load %arg2[%c64, %c0_4] : memref<2048x1xf32, #tpu.memory_space<vmem>>, vector<64x1xf32>
    %8 = vector.extract_strided_slice %1 {offsets = [1, 0], sizes = [1, 16], strides = [1, 1]} : vector<5x16xf32> to vector<1x16xf32>
    %9 = vector.broadcast %7 : vector<64x1xf32> to vector<64x16xf32>
    %10 = vector.broadcast %8 : vector<1x16xf32> to vector<64x16xf32>
    %11 = arith.mulf %9, %10 : vector<64x16xf32>
    %12 = arith.addf %6, %11 : vector<64x16xf32>
    %c128 = arith.constant 128 : index
    %c0_5 = arith.constant 0 : index
    %13 = vector.load %arg2[%c128, %c0_5] : memref<2048x1xf32, #tpu.memory_space<vmem>>, vector<64x1xf32>
    %14 = vector.extract_strided_slice %1 {offsets = [2, 0], sizes = [1, 16], strides = [1, 1]} : vector<5x16xf32> to vector<1x16xf32>
    %15 = vector.broadcast %13 : vector<64x1xf32> to vector<64x16xf32>
    %16 = vector.broadcast %14 : vector<1x16xf32> to vector<64x16xf32>
    %17 = arith.mulf %15, %16 : vector<64x16xf32>
    %18 = arith.addf %12, %17 : vector<64x16xf32>
    %c192 = arith.constant 192 : index
    %c0_6 = arith.constant 0 : index
    %19 = vector.load %arg2[%c192, %c0_6] : memref<2048x1xf32, #tpu.memory_space<vmem>>, vector<64x1xf32>
    %20 = vector.extract_strided_slice %1 {offsets = [3, 0], sizes = [1, 16], strides = [1, 1]} : vector<5x16xf32> to vector<1x16xf32>
    %21 = vector.broadcast %19 : vector<64x1xf32> to vector<64x16xf32>
    %22 = vector.broadcast %20 : vector<1x16xf32> to vector<64x16xf32>
    %23 = arith.mulf %21, %22 : vector<64x16xf32>
    %24 = arith.addf %18, %23 : vector<64x16xf32>
    %c256 = arith.constant 256 : index
    %c0_7 = arith.constant 0 : index
    %25 = vector.load %arg2[%c256, %c0_7] : memref<2048x1xf32, #tpu.memory_space<vmem>>, vector<64x1xf32>
    %26 = vector.extract_strided_slice %1 {offsets = [4, 0], sizes = [1, 16], strides = [1, 1]} : vector<5x16xf32> to vector<1x16xf32>
    %27 = vector.broadcast %25 : vector<64x1xf32> to vector<64x16xf32>
    %28 = vector.broadcast %26 : vector<1x16xf32> to vector<64x16xf32>
    %29 = arith.mulf %27, %28 : vector<64x16xf32>
    %30 = arith.addf %24, %29 : vector<64x16xf32>
    %c320 = arith.constant 320 : index
    %c0_8 = arith.constant 0 : index
    %31 = vector.load %arg2[%c320, %c0_8] : memref<2048x1xf32, #tpu.memory_space<vmem>>, vector<64x1xf32>
    %32 = vector.broadcast %31 : vector<64x1xf32> to vector<64x16xf32>
    %33 = arith.addf %30, %32 : vector<64x16xf32>
    %cst = arith.constant dense<0.000000e+00> : vector<64xf32>
    %34 = vector.multi_reduction <add>, %33, %cst [1] : vector<64x16xf32> to vector<64xf32>
    %35 = vector.shape_cast %34 : vector<64xf32> to vector<64x1xf32>
    %cst_9 = arith.constant dense<0.000000e+00> : vector<1xf32>
    %36 = vector.multi_reduction <add>, %35, %cst_9 [0] : vector<64x1xf32> to vector<1xf32>
    %37 = vector.shape_cast %36 : vector<1xf32> to vector<1x1xf32>
    %cst_10 = arith.constant 1.024000e+03 : f32
    %38 = vector.broadcast %cst_10 : f32 to vector<1x1xf32>
    %39 = arith.divf %37, %38 : vector<1x1xf32>
    %40 = vector.broadcast %39 : vector<1x1xf32> to vector<64x16xf32>
    %41 = arith.subf %33, %40 : vector<64x16xf32>
    %42 = arith.mulf %41, %41 : vector<64x16xf32>
    %cst_11 = arith.constant dense<0.000000e+00> : vector<64xf32>
    %43 = vector.multi_reduction <add>, %42, %cst_11 [1] : vector<64x16xf32> to vector<64xf32>
    %44 = vector.shape_cast %43 : vector<64xf32> to vector<64x1xf32>
    %cst_12 = arith.constant dense<0.000000e+00> : vector<1xf32>
    %45 = vector.multi_reduction <add>, %44, %cst_12 [0] : vector<64x1xf32> to vector<1xf32>
    %46 = vector.shape_cast %45 : vector<1xf32> to vector<1x1xf32>
    %cst_13 = arith.constant 1.024000e+03 : f32
    %47 = vector.broadcast %cst_13 : f32 to vector<1x1xf32>
    %48 = arith.divf %46, %47 : vector<1x1xf32>
    %cst_14 = arith.constant 9.99999974E-6 : f32
    %49 = vector.broadcast %cst_14 : f32 to vector<1x1xf32>
    %50 = arith.addf %48, %49 : vector<1x1xf32>
    %51 = math.rsqrt %50 : vector<1x1xf32>
    %52 = vector.broadcast %51 : vector<1x1xf32> to vector<64x16xf32>
    %53 = arith.mulf %41, %52 : vector<64x16xf32>
    %c384 = arith.constant 384 : index
    %c0_15 = arith.constant 0 : index
    %54 = vector.load %arg2[%c384, %c0_15] : memref<2048x1xf32, #tpu.memory_space<vmem>>, vector<64x1xf32>
    %55 = vector.broadcast %54 : vector<64x1xf32> to vector<64x16xf32>
    %56 = arith.mulf %53, %55 : vector<64x16xf32>
    %c448 = arith.constant 448 : index
    %c0_16 = arith.constant 0 : index
    %57 = vector.load %arg2[%c448, %c0_16] : memref<2048x1xf32, #tpu.memory_space<vmem>>, vector<64x1xf32>
    %58 = vector.broadcast %57 : vector<64x1xf32> to vector<64x16xf32>
    %59 = arith.addf %56, %58 : vector<64x16xf32>
    %cst_17 = arith.constant 0.000000e+00 : f32
    %60 = vector.broadcast %cst_17 : f32 to vector<64x16xf32>
    %61 = arith.maximumf %59, %60 : vector<64x16xf32>
    %c0_18 = arith.constant 0 : index
    %c0_19 = arith.constant 0 : index
    %62 = vector.load %arg3[%c0_18, %c0_19] : memref<64x64xbf16, #tpu.memory_space<vmem>>, vector<64x64xbf16>
    %63 = arith.truncf %61 : vector<64x16xf32> to vector<64x16xbf16>
    %cst_20 = arith.constant dense<0.000000e+00> : vector<64x16xf32>
    %64 = tpu.matmul %62, %63, %cst_20 {dimension_numbers = #tpu.dot_dimension_numbers<[1], [0], [0], [1], [0, 0, 1, 1], [], []>} : vector<64x64xbf16>, vector<64x16xbf16>, vector<64x16xf32> -> vector<64x16xf32>
    %c512 = arith.constant 512 : index
    %c0_21 = arith.constant 0 : index
    %65 = vector.load %arg2[%c512, %c0_21] : memref<2048x1xf32, #tpu.memory_space<vmem>>, vector<64x1xf32>
    %66 = vector.broadcast %65 : vector<64x1xf32> to vector<64x16xf32>
    %67 = arith.addf %64, %66 : vector<64x16xf32>
    %cst_22 = arith.constant dense<0.000000e+00> : vector<64xf32>
    %68 = vector.multi_reduction <add>, %67, %cst_22 [1] : vector<64x16xf32> to vector<64xf32>
    %69 = vector.shape_cast %68 : vector<64xf32> to vector<64x1xf32>
    %cst_23 = arith.constant dense<0.000000e+00> : vector<1xf32>
    %70 = vector.multi_reduction <add>, %69, %cst_23 [0] : vector<64x1xf32> to vector<1xf32>
    %71 = vector.shape_cast %70 : vector<1xf32> to vector<1x1xf32>
    %cst_24 = arith.constant 1.024000e+03 : f32
    %72 = vector.broadcast %cst_24 : f32 to vector<1x1xf32>
    %73 = arith.divf %71, %72 : vector<1x1xf32>
    %74 = vector.broadcast %73 : vector<1x1xf32> to vector<64x16xf32>
    %75 = arith.subf %67, %74 : vector<64x16xf32>
    %76 = arith.mulf %75, %75 : vector<64x16xf32>
    %cst_25 = arith.constant dense<0.000000e+00> : vector<64xf32>
    %77 = vector.multi_reduction <add>, %76, %cst_25 [1] : vector<64x16xf32> to vector<64xf32>
    %78 = vector.shape_cast %77 : vector<64xf32> to vector<64x1xf32>
    %cst_26 = arith.constant dense<0.000000e+00> : vector<1xf32>
    %79 = vector.multi_reduction <add>, %78, %cst_26 [0] : vector<64x1xf32> to vector<1xf32>
    %80 = vector.shape_cast %79 : vector<1xf32> to vector<1x1xf32>
    %cst_27 = arith.constant 1.024000e+03 : f32
    %81 = vector.broadcast %cst_27 : f32 to vector<1x1xf32>
    %82 = arith.divf %80, %81 : vector<1x1xf32>
    %cst_28 = arith.constant 9.99999974E-6 : f32
    %83 = vector.broadcast %cst_28 : f32 to vector<1x1xf32>
    %84 = arith.addf %82, %83 : vector<1x1xf32>
    %85 = math.rsqrt %84 : vector<1x1xf32>
    %86 = vector.broadcast %85 : vector<1x1xf32> to vector<64x16xf32>
    %87 = arith.mulf %75, %86 : vector<64x16xf32>
    %c576 = arith.constant 576 : index
    %c0_29 = arith.constant 0 : index
    %88 = vector.load %arg2[%c576, %c0_29] : memref<2048x1xf32, #tpu.memory_space<vmem>>, vector<64x1xf32>
    %89 = vector.broadcast %88 : vector<64x1xf32> to vector<64x16xf32>
    %90 = arith.mulf %87, %89 : vector<64x16xf32>
    %c640 = arith.constant 640 : index
    %c0_30 = arith.constant 0 : index
    %91 = vector.load %arg2[%c640, %c0_30] : memref<2048x1xf32, #tpu.memory_space<vmem>>, vector<64x1xf32>
    %92 = vector.broadcast %91 : vector<64x1xf32> to vector<64x16xf32>
    %93 = arith.addf %90, %92 : vector<64x16xf32>
    %cst_31 = arith.constant 0.000000e+00 : f32
    %94 = vector.broadcast %cst_31 : f32 to vector<64x16xf32>
    %95 = arith.maximumf %93, %94 : vector<64x16xf32>
    %c0_32 = arith.constant 0 : index
    %c0_33 = arith.constant 0 : index
    %96 = vector.load %arg4[%c0_32, %c0_33] : memref<64x64xbf16, #tpu.memory_space<vmem>>, vector<64x64xbf16>
    %97 = arith.truncf %95 : vector<64x16xf32> to vector<64x16xbf16>
    %cst_34 = arith.constant dense<0.000000e+00> : vector<64x16xf32>
    %98 = tpu.matmul %96, %97, %cst_34 {dimension_numbers = #tpu.dot_dimension_numbers<[1], [0], [0], [1], [0, 0, 1, 1], [], []>} : vector<64x64xbf16>, vector<64x16xbf16>, vector<64x16xf32> -> vector<64x16xf32>
    %c704 = arith.constant 704 : index
    %c0_35 = arith.constant 0 : index
    %99 = vector.load %arg2[%c704, %c0_35] : memref<2048x1xf32, #tpu.memory_space<vmem>>, vector<64x1xf32>
    %100 = vector.broadcast %99 : vector<64x1xf32> to vector<64x16xf32>
    %101 = arith.addf %98, %100 : vector<64x16xf32>
    %cst_36 = arith.constant dense<0.000000e+00> : vector<64xf32>
    %102 = vector.multi_reduction <add>, %101, %cst_36 [1] : vector<64x16xf32> to vector<64xf32>
    %103 = vector.shape_cast %102 : vector<64xf32> to vector<64x1xf32>
    %cst_37 = arith.constant dense<0.000000e+00> : vector<1xf32>
    %104 = vector.multi_reduction <add>, %103, %cst_37 [0] : vector<64x1xf32> to vector<1xf32>
    %105 = vector.shape_cast %104 : vector<1xf32> to vector<1x1xf32>
    %cst_38 = arith.constant 1.024000e+03 : f32
    %106 = vector.broadcast %cst_38 : f32 to vector<1x1xf32>
    %107 = arith.divf %105, %106 : vector<1x1xf32>
    %108 = vector.broadcast %107 : vector<1x1xf32> to vector<64x16xf32>
    %109 = arith.subf %101, %108 : vector<64x16xf32>
    %110 = arith.mulf %109, %109 : vector<64x16xf32>
    %cst_39 = arith.constant dense<0.000000e+00> : vector<64xf32>
    %111 = vector.multi_reduction <add>, %110, %cst_39 [1] : vector<64x16xf32> to vector<64xf32>
    %112 = vector.shape_cast %111 : vector<64xf32> to vector<64x1xf32>
    %cst_40 = arith.constant dense<0.000000e+00> : vector<1xf32>
    %113 = vector.multi_reduction <add>, %112, %cst_40 [0] : vector<64x1xf32> to vector<1xf32>
    %114 = vector.shape_cast %113 : vector<1xf32> to vector<1x1xf32>
    %cst_41 = arith.constant 1.024000e+03 : f32
    %115 = vector.broadcast %cst_41 : f32 to vector<1x1xf32>
    %116 = arith.divf %114, %115 : vector<1x1xf32>
    %cst_42 = arith.constant 9.99999974E-6 : f32
    %117 = vector.broadcast %cst_42 : f32 to vector<1x1xf32>
    %118 = arith.addf %116, %117 : vector<1x1xf32>
    %119 = math.rsqrt %118 : vector<1x1xf32>
    %120 = vector.broadcast %119 : vector<1x1xf32> to vector<64x16xf32>
    %121 = arith.mulf %109, %120 : vector<64x16xf32>
    %c768 = arith.constant 768 : index
    %c0_43 = arith.constant 0 : index
    %122 = vector.load %arg2[%c768, %c0_43] : memref<2048x1xf32, #tpu.memory_space<vmem>>, vector<64x1xf32>
    %123 = vector.broadcast %122 : vector<64x1xf32> to vector<64x16xf32>
    %124 = arith.mulf %121, %123 : vector<64x16xf32>
    %c832 = arith.constant 832 : index
    %c0_44 = arith.constant 0 : index
    %125 = vector.load %arg2[%c832, %c0_44] : memref<2048x1xf32, #tpu.memory_space<vmem>>, vector<64x1xf32>
    %126 = vector.broadcast %125 : vector<64x1xf32> to vector<64x16xf32>
    %127 = arith.addf %124, %126 : vector<64x16xf32>
    %cst_45 = arith.constant 0.000000e+00 : f32
    %128 = vector.broadcast %cst_45 : f32 to vector<64x16xf32>
    %129 = arith.maximumf %127, %128 : vector<64x16xf32>
    %c0_46 = arith.constant 0 : index
    %c0_47 = arith.constant 0 : index
    %130 = vector.load %arg5[%c0_46, %c0_47] : memref<128x64xbf16, #tpu.memory_space<vmem>>, vector<128x64xbf16>
    %131 = arith.truncf %129 : vector<64x16xf32> to vector<64x16xbf16>
    %cst_48 = arith.constant dense<0.000000e+00> : vector<128x16xf32>
    %132 = tpu.matmul %130, %131, %cst_48 {dimension_numbers = #tpu.dot_dimension_numbers<[1], [0], [0], [1], [0, 0, 1, 1], [], []>} : vector<128x64xbf16>, vector<64x16xbf16>, vector<128x16xf32> -> vector<128x16xf32>
    %c896 = arith.constant 896 : index
    %c0_49 = arith.constant 0 : index
    %133 = vector.load %arg2[%c896, %c0_49] : memref<2048x1xf32, #tpu.memory_space<vmem>>, vector<128x1xf32>
    %134 = vector.broadcast %133 : vector<128x1xf32> to vector<128x16xf32>
    %135 = arith.addf %132, %134 : vector<128x16xf32>
    %cst_50 = arith.constant dense<0.000000e+00> : vector<128xf32>
    %136 = vector.multi_reduction <add>, %135, %cst_50 [1] : vector<128x16xf32> to vector<128xf32>
    %137 = vector.shape_cast %136 : vector<128xf32> to vector<128x1xf32>
    %cst_51 = arith.constant dense<0.000000e+00> : vector<1xf32>
    %138 = vector.multi_reduction <add>, %137, %cst_51 [0] : vector<128x1xf32> to vector<1xf32>
    %139 = vector.shape_cast %138 : vector<1xf32> to vector<1x1xf32>
    %cst_52 = arith.constant 2.048000e+03 : f32
    %140 = vector.broadcast %cst_52 : f32 to vector<1x1xf32>
    %141 = arith.divf %139, %140 : vector<1x1xf32>
    %142 = vector.broadcast %141 : vector<1x1xf32> to vector<128x16xf32>
    %143 = arith.subf %135, %142 : vector<128x16xf32>
    %144 = arith.mulf %143, %143 : vector<128x16xf32>
    %cst_53 = arith.constant dense<0.000000e+00> : vector<128xf32>
    %145 = vector.multi_reduction <add>, %144, %cst_53 [1] : vector<128x16xf32> to vector<128xf32>
    %146 = vector.shape_cast %145 : vector<128xf32> to vector<128x1xf32>
    %cst_54 = arith.constant dense<0.000000e+00> : vector<1xf32>
    %147 = vector.multi_reduction <add>, %146, %cst_54 [0] : vector<128x1xf32> to vector<1xf32>
    %148 = vector.shape_cast %147 : vector<1xf32> to vector<1x1xf32>
    %cst_55 = arith.constant 2.048000e+03 : f32
    %149 = vector.broadcast %cst_55 : f32 to vector<1x1xf32>
    %150 = arith.divf %148, %149 : vector<1x1xf32>
    %cst_56 = arith.constant 9.99999974E-6 : f32
    %151 = vector.broadcast %cst_56 : f32 to vector<1x1xf32>
    %152 = arith.addf %150, %151 : vector<1x1xf32>
    %153 = math.rsqrt %152 : vector<1x1xf32>
    %154 = vector.broadcast %153 : vector<1x1xf32> to vector<128x16xf32>
    %155 = arith.mulf %143, %154 : vector<128x16xf32>
    %c1024 = arith.constant 1024 : index
    %c0_57 = arith.constant 0 : index
    %156 = vector.load %arg2[%c1024, %c0_57] : memref<2048x1xf32, #tpu.memory_space<vmem>>, vector<128x1xf32>
    %157 = vector.broadcast %156 : vector<128x1xf32> to vector<128x16xf32>
    %158 = arith.mulf %155, %157 : vector<128x16xf32>
    %c1152 = arith.constant 1152 : index
    %c0_58 = arith.constant 0 : index
    %159 = vector.load %arg2[%c1152, %c0_58] : memref<2048x1xf32, #tpu.memory_space<vmem>>, vector<128x1xf32>
    %160 = vector.broadcast %159 : vector<128x1xf32> to vector<128x16xf32>
    %161 = arith.addf %158, %160 : vector<128x16xf32>
    %cst_59 = arith.constant 0.000000e+00 : f32
    %162 = vector.broadcast %cst_59 : f32 to vector<128x16xf32>
    %163 = arith.maximumf %161, %162 : vector<128x16xf32>
    %c0_60 = arith.constant 0 : index
    %c0_61 = arith.constant 0 : index
    %164 = vector.load %arg6[%c0_60, %c0_61] : memref<256x128xbf16, #tpu.memory_space<vmem>>, vector<256x128xbf16>
    %165 = arith.truncf %163 : vector<128x16xf32> to vector<128x16xbf16>
    %cst_62 = arith.constant dense<0.000000e+00> : vector<256x16xf32>
    %166 = tpu.matmul %164, %165, %cst_62 {dimension_numbers = #tpu.dot_dimension_numbers<[1], [0], [0], [1], [0, 0, 1, 1], [], []>} : vector<256x128xbf16>, vector<128x16xbf16>, vector<256x16xf32> -> vector<256x16xf32>
    %c1280 = arith.constant 1280 : index
    %c0_63 = arith.constant 0 : index
    %167 = vector.load %arg2[%c1280, %c0_63] : memref<2048x1xf32, #tpu.memory_space<vmem>>, vector<256x1xf32>
    %168 = vector.broadcast %167 : vector<256x1xf32> to vector<256x16xf32>
    %169 = arith.addf %166, %168 : vector<256x16xf32>
    %cst_64 = arith.constant dense<0.000000e+00> : vector<256xf32>
    %170 = vector.multi_reduction <add>, %169, %cst_64 [1] : vector<256x16xf32> to vector<256xf32>
    %171 = vector.shape_cast %170 : vector<256xf32> to vector<256x1xf32>
    %cst_65 = arith.constant dense<0.000000e+00> : vector<1xf32>
    %172 = vector.multi_reduction <add>, %171, %cst_65 [0] : vector<256x1xf32> to vector<1xf32>
    %173 = vector.shape_cast %172 : vector<1xf32> to vector<1x1xf32>
    %cst_66 = arith.constant 4.096000e+03 : f32
    %174 = vector.broadcast %cst_66 : f32 to vector<1x1xf32>
    %175 = arith.divf %173, %174 : vector<1x1xf32>
    %176 = vector.broadcast %175 : vector<1x1xf32> to vector<256x16xf32>
    %177 = arith.subf %169, %176 : vector<256x16xf32>
    %178 = arith.mulf %177, %177 : vector<256x16xf32>
    %cst_67 = arith.constant dense<0.000000e+00> : vector<256xf32>
    %179 = vector.multi_reduction <add>, %178, %cst_67 [1] : vector<256x16xf32> to vector<256xf32>
    %180 = vector.shape_cast %179 : vector<256xf32> to vector<256x1xf32>
    %cst_68 = arith.constant dense<0.000000e+00> : vector<1xf32>
    %181 = vector.multi_reduction <add>, %180, %cst_68 [0] : vector<256x1xf32> to vector<1xf32>
    %182 = vector.shape_cast %181 : vector<1xf32> to vector<1x1xf32>
    %cst_69 = arith.constant 4.096000e+03 : f32
    %183 = vector.broadcast %cst_69 : f32 to vector<1x1xf32>
    %184 = arith.divf %182, %183 : vector<1x1xf32>
    %cst_70 = arith.constant 9.99999974E-6 : f32
    %185 = vector.broadcast %cst_70 : f32 to vector<1x1xf32>
    %186 = arith.addf %184, %185 : vector<1x1xf32>
    %187 = math.rsqrt %186 : vector<1x1xf32>
    %188 = vector.broadcast %187 : vector<1x1xf32> to vector<256x16xf32>
    %189 = arith.mulf %177, %188 : vector<256x16xf32>
    %c1536 = arith.constant 1536 : index
    %c0_71 = arith.constant 0 : index
    %190 = vector.load %arg2[%c1536, %c0_71] : memref<2048x1xf32, #tpu.memory_space<vmem>>, vector<256x1xf32>
    %191 = vector.broadcast %190 : vector<256x1xf32> to vector<256x16xf32>
    %192 = arith.mulf %189, %191 : vector<256x16xf32>
    %c1792 = arith.constant 1792 : index
    %c0_72 = arith.constant 0 : index
    %193 = vector.load %arg2[%c1792, %c0_72] : memref<2048x1xf32, #tpu.memory_space<vmem>>, vector<256x1xf32>
    %194 = vector.broadcast %193 : vector<256x1xf32> to vector<256x16xf32>
    %195 = arith.addf %192, %194 : vector<256x16xf32>
    %cst_73 = arith.constant 0.000000e+00 : f32
    %196 = vector.broadcast %cst_73 : f32 to vector<256x16xf32>
    %197 = arith.maximumf %195, %196 : vector<256x16xf32>
    %cst_74 = arith.constant dense<0xFF800000> : vector<256xf32>
    %198 = vector.multi_reduction <maximumf>, %197, %cst_74 [1] : vector<256x16xf32> to vector<256xf32>
    %199 = vector.shape_cast %198 : vector<256xf32> to vector<256x1xf32>
    %200 = vector.shape_cast %199 : vector<256x1xf32> to vector<1x256x1xf32>
    %c0_75 = arith.constant 0 : index
    %c0_76 = arith.constant 0 : index
    %c0_77 = arith.constant 0 : index
    %201 = vector.load %arg7[%c0_75, %c0_76, %c0_77] : memref<1x256x1xf32, #tpu.memory_space<vmem>>, vector<1x256x1xf32>
    tpu.vector_store %arg7[%c0_75, %c0_76, %c0_77], %200 {strides = array<i32>} : memref<1x256x1xf32, #tpu.memory_space<vmem>>, vector<1x256x1xf32>,
    return
  }
  func.func @transform_0(%arg0: i32) -> (i32, i32, i32) {
    %c0_i32 = arith.constant 0 : i32
    %c0_i32_0 = arith.constant 0 : i32
    %c0_i32_1 = arith.constant 0 : i32
    return %arg0, %c0_i32, %c0_i32_0 : i32, i32, i32
  }
  func.func @transform_1(%arg0: i32) -> (i32, i32) {
    %c0_i32 = arith.constant 0 : i32
    %c0_i32_0 = arith.constant 0 : i32
    %c0_i32_1 = arith.constant 0 : i32
    return %c0_i32, %c0_i32_0 : i32, i32
  }
  func.func @transform_2(%arg0: i32) -> (i32, i32) {
    %c0_i32 = arith.constant 0 : i32
    %c0_i32_0 = arith.constant 0 : i32
    %c0_i32_1 = arith.constant 0 : i32
    return %c0_i32, %c0_i32_0 : i32, i32
  }
  func.func @transform_3(%arg0: i32) -> (i32, i32) {
    %c0_i32 = arith.constant 0 : i32
    %c0_i32_0 = arith.constant 0 : i32
    %c0_i32_1 = arith.constant 0 : i32
    return %c0_i32, %c0_i32_0 : i32, i32
  }
  func.func @transform_4(%arg0: i32) -> (i32, i32) {
    %c0_i32 = arith.constant 0 : i32
    %c0_i32_0 = arith.constant 0 : i32
    %c0_i32_1 = arith.constant 0 : i32
    return %c0_i32, %c0_i32_0 : i32, i32
  }
  func.func @transform_5(%arg0: i32) -> (i32, i32) {
    %c0_i32 = arith.constant 0 : i32
    %c0_i32_0 = arith.constant 0 : i32
    %c0_i32_1 = arith.constant 0 : i32
    return %c0_i32, %c0_i32_0 : i32, i32
  }
  func.func @transform_6(%arg0: i32) -> (i32, i32, i32) {
    %c0_i32 = arith.constant 0 : i32
    %c0_i32_0 = arith.constant 0 : i32
    %c0_i32_1 = arith.constant 0 : i32
    return %arg0, %c0_i32, %c0_i32_0 : i32, i32, i32
  }
}

module attributes {stable_mosaic.version = 11 : i64} {
  func.func @kernel(%arg0: i32, %arg1: i32, %arg2: memref<1x1x256xf32, #tpu.memory_space<vmem>>, %arg3: memref<1x1x256xf32, #tpu.memory_space<vmem>>, %arg4: memref<1x8x3xf32, #tpu.memory_space<vmem>>, %arg5: memref<1x4224xf32, #tpu.memory_space<vmem>>, %arg6: memref<64x128xbf16, #tpu.memory_space<vmem>>, %arg7: memref<128x256xbf16, #tpu.memory_space<vmem>>, %arg8: memref<256x256xbf16, #tpu.memory_space<vmem>>, %arg9: memref<256x128xbf16, #tpu.memory_space<vmem>>, %arg10: memref<256x256xbf16, #tpu.memory_space<vmem>>, %arg11: memref<256x128xbf16, #tpu.memory_space<vmem>>, %arg12: memref<1x8x1xf32, #tpu.memory_space<vmem>>, %arg13: memref<1x8x1xf32, #tpu.memory_space<vmem>>) attributes {dimension_semantics = [#tpu.dimension_semantics<parallel>, #tpu.dimension_semantics<parallel>], iteration_bounds = array<i64: 2, 1>, scalar_prefetch = 0 : i64, scratch_operands = 0 : i64, tpu.core_type = #tpu.core_type<tc>, window_params = [{transform_indices = @transform_0, window_bounds = array<i64: 1, 1, 256>}, {transform_indices = @transform_1, window_bounds = array<i64: 1, 1, 256>}, {transform_indices = @transform_2, window_bounds = array<i64: 1, 8, 3>}, {pipeline_mode = #tpu.pipeline_mode<synchronous>, transform_indices = @transform_3, window_bounds = array<i64: 1, 4224>}, {pipeline_mode = #tpu.pipeline_mode<synchronous>, transform_indices = @transform_4, window_bounds = array<i64: 64, 128>}, {pipeline_mode = #tpu.pipeline_mode<synchronous>, transform_indices = @transform_5, window_bounds = array<i64: 128, 256>}, {pipeline_mode = #tpu.pipeline_mode<synchronous>, transform_indices = @transform_6, window_bounds = array<i64: 256, 256>}, {pipeline_mode = #tpu.pipeline_mode<synchronous>, transform_indices = @transform_7, window_bounds = array<i64: 256, 128>}, {pipeline_mode = #tpu.pipeline_mode<synchronous>, transform_indices = @transform_8, window_bounds = array<i64: 256, 256>}, {pipeline_mode = #tpu.pipeline_mode<synchronous>, transform_indices = @transform_9, window_bounds = array<i64: 256, 128>}, {transform_indices = @transform_10, window_bounds = array<i64: 1, 8, 1>}, {transform_indices = @transform_11, window_bounds = array<i64: 1, 8, 1>}]} {
    %c0 = arith.constant 0 : index
    %c0_0 = arith.constant 0 : index
    %c0_1 = arith.constant 0 : index
    %0 = vector.load %arg4[%c0, %c0_0, %c0_1] : memref<1x8x3xf32, #tpu.memory_space<vmem>>, vector<1x8x3xf32>
    %1 = vector.shape_cast %0 : vector<1x8x3xf32> to vector<8x3xf32>
    %2 = vector.extract_strided_slice %1 {offsets = [0, 0], sizes = [8, 1], strides = [1, 1]} : vector<8x3xf32> to vector<8x1xf32>
    %c0_2 = arith.constant 0 : index
    %c0_3 = arith.constant 0 : index
    %3 = vector.load %arg5[%c0_2, %c0_3] : memref<1x4224xf32, #tpu.memory_space<vmem>>, vector<1x64xf32>
    %4 = vector.broadcast %2 : vector<8x1xf32> to vector<8x64xf32>
    %5 = vector.broadcast %3 : vector<1x64xf32> to vector<8x64xf32>
    %6 = arith.mulf %4, %5 : vector<8x64xf32>
    %7 = vector.extract_strided_slice %1 {offsets = [0, 1], sizes = [8, 1], strides = [1, 1]} : vector<8x3xf32> to vector<8x1xf32>
    %c0_4 = arith.constant 0 : index
    %c128 = arith.constant 128 : index
    %8 = vector.load %arg5[%c0_4, %c128] : memref<1x4224xf32, #tpu.memory_space<vmem>>, vector<1x64xf32>
    %9 = vector.broadcast %7 : vector<8x1xf32> to vector<8x64xf32>
    %10 = vector.broadcast %8 : vector<1x64xf32> to vector<8x64xf32>
    %11 = arith.mulf %9, %10 : vector<8x64xf32>
    %12 = arith.addf %6, %11 : vector<8x64xf32>
    %13 = vector.extract_strided_slice %1 {offsets = [0, 2], sizes = [8, 1], strides = [1, 1]} : vector<8x3xf32> to vector<8x1xf32>
    %c0_5 = arith.constant 0 : index
    %c256 = arith.constant 256 : index
    %14 = vector.load %arg5[%c0_5, %c256] : memref<1x4224xf32, #tpu.memory_space<vmem>>, vector<1x64xf32>
    %15 = vector.broadcast %13 : vector<8x1xf32> to vector<8x64xf32>
    %16 = vector.broadcast %14 : vector<1x64xf32> to vector<8x64xf32>
    %17 = arith.mulf %15, %16 : vector<8x64xf32>
    %18 = arith.addf %12, %17 : vector<8x64xf32>
    %c0_6 = arith.constant 0 : index
    %c384 = arith.constant 384 : index
    %19 = vector.load %arg5[%c0_6, %c384] : memref<1x4224xf32, #tpu.memory_space<vmem>>, vector<1x64xf32>
    %20 = vector.broadcast %19 : vector<1x64xf32> to vector<8x64xf32>
    %21 = arith.addf %18, %20 : vector<8x64xf32>
    %cst = arith.constant dense<0.000000e+00> : vector<8xf32>
    %22 = vector.multi_reduction <add>, %21, %cst [1] : vector<8x64xf32> to vector<8xf32>
    %23 = vector.shape_cast %22 : vector<8xf32> to vector<8x1xf32>
    %cst_7 = arith.constant 6.400000e+01 : f32
    %24 = vector.broadcast %cst_7 : f32 to vector<8x1xf32>
    %25 = arith.divf %23, %24 : vector<8x1xf32>
    %26 = vector.broadcast %25 : vector<8x1xf32> to vector<8x64xf32>
    %27 = arith.subf %21, %26 : vector<8x64xf32>
    %28 = arith.mulf %27, %27 : vector<8x64xf32>
    %cst_8 = arith.constant dense<0.000000e+00> : vector<8xf32>
    %29 = vector.multi_reduction <add>, %28, %cst_8 [1] : vector<8x64xf32> to vector<8xf32>
    %30 = vector.shape_cast %29 : vector<8xf32> to vector<8x1xf32>
    %cst_9 = arith.constant 6.400000e+01 : f32
    %31 = vector.broadcast %cst_9 : f32 to vector<8x1xf32>
    %32 = arith.divf %30, %31 : vector<8x1xf32>
    %cst_10 = arith.constant 9.99999974E-6 : f32
    %33 = vector.broadcast %cst_10 : f32 to vector<8x1xf32>
    %34 = arith.addf %32, %33 : vector<8x1xf32>
    %35 = math.rsqrt %34 : vector<8x1xf32>
    %36 = vector.broadcast %35 : vector<8x1xf32> to vector<8x64xf32>
    %37 = arith.mulf %27, %36 : vector<8x64xf32>
    %c0_11 = arith.constant 0 : index
    %c512 = arith.constant 512 : index
    %38 = vector.load %arg5[%c0_11, %c512] : memref<1x4224xf32, #tpu.memory_space<vmem>>, vector<1x64xf32>
    %39 = vector.broadcast %38 : vector<1x64xf32> to vector<8x64xf32>
    %40 = arith.mulf %37, %39 : vector<8x64xf32>
    %c0_12 = arith.constant 0 : index
    %c640 = arith.constant 640 : index
    %41 = vector.load %arg5[%c0_12, %c640] : memref<1x4224xf32, #tpu.memory_space<vmem>>, vector<1x64xf32>
    %42 = vector.broadcast %41 : vector<1x64xf32> to vector<8x64xf32>
    %43 = arith.addf %40, %42 : vector<8x64xf32>
    %cst_13 = arith.constant 0.000000e+00 : f32
    %44 = vector.broadcast %cst_13 : f32 to vector<8x64xf32>
    %45 = arith.maximumf %43, %44 : vector<8x64xf32>
    %c0_14 = arith.constant 0 : index
    %c0_15 = arith.constant 0 : index
    %46 = vector.load %arg6[%c0_14, %c0_15] : memref<64x128xbf16, #tpu.memory_space<vmem>>, vector<64x128xbf16>
    %47 = arith.truncf %45 : vector<8x64xf32> to vector<8x64xbf16>
    %cst_16 = arith.constant dense<0.000000e+00> : vector<8x128xf32>
    %48 = tpu.matmul %47, %46, %cst_16 {dimension_numbers = #tpu.dot_dimension_numbers<[1], [0], [0], [1], [0, 0, 1, 1], [], []>} : vector<8x64xbf16>, vector<64x128xbf16>, vector<8x128xf32> -> vector<8x128xf32>
    %c0_17 = arith.constant 0 : index
    %c768 = arith.constant 768 : index
    %49 = vector.load %arg5[%c0_17, %c768] : memref<1x4224xf32, #tpu.memory_space<vmem>>, vector<1x128xf32>
    %50 = vector.broadcast %49 : vector<1x128xf32> to vector<8x128xf32>
    %51 = arith.addf %48, %50 : vector<8x128xf32>
    %cst_18 = arith.constant dense<0.000000e+00> : vector<8xf32>
    %52 = vector.multi_reduction <add>, %51, %cst_18 [1] : vector<8x128xf32> to vector<8xf32>
    %53 = vector.shape_cast %52 : vector<8xf32> to vector<8x1xf32>
    %cst_19 = arith.constant 1.280000e+02 : f32
    %54 = vector.broadcast %cst_19 : f32 to vector<8x1xf32>
    %55 = arith.divf %53, %54 : vector<8x1xf32>
    %56 = vector.broadcast %55 : vector<8x1xf32> to vector<8x128xf32>
    %57 = arith.subf %51, %56 : vector<8x128xf32>
    %58 = arith.mulf %57, %57 : vector<8x128xf32>
    %cst_20 = arith.constant dense<0.000000e+00> : vector<8xf32>
    %59 = vector.multi_reduction <add>, %58, %cst_20 [1] : vector<8x128xf32> to vector<8xf32>
    %60 = vector.shape_cast %59 : vector<8xf32> to vector<8x1xf32>
    %cst_21 = arith.constant 1.280000e+02 : f32
    %61 = vector.broadcast %cst_21 : f32 to vector<8x1xf32>
    %62 = arith.divf %60, %61 : vector<8x1xf32>
    %cst_22 = arith.constant 9.99999974E-6 : f32
    %63 = vector.broadcast %cst_22 : f32 to vector<8x1xf32>
    %64 = arith.addf %62, %63 : vector<8x1xf32>
    %65 = math.rsqrt %64 : vector<8x1xf32>
    %66 = vector.broadcast %65 : vector<8x1xf32> to vector<8x128xf32>
    %67 = arith.mulf %57, %66 : vector<8x128xf32>
    %c0_23 = arith.constant 0 : index
    %c896 = arith.constant 896 : index
    %68 = vector.load %arg5[%c0_23, %c896] : memref<1x4224xf32, #tpu.memory_space<vmem>>, vector<1x128xf32>
    %69 = vector.broadcast %68 : vector<1x128xf32> to vector<8x128xf32>
    %70 = arith.mulf %67, %69 : vector<8x128xf32>
    %c0_24 = arith.constant 0 : index
    %c1024 = arith.constant 1024 : index
    %71 = vector.load %arg5[%c0_24, %c1024] : memref<1x4224xf32, #tpu.memory_space<vmem>>, vector<1x128xf32>
    %72 = vector.broadcast %71 : vector<1x128xf32> to vector<8x128xf32>
    %73 = arith.addf %70, %72 : vector<8x128xf32>
    %cst_25 = arith.constant 0.000000e+00 : f32
    %74 = vector.broadcast %cst_25 : f32 to vector<8x128xf32>
    %75 = arith.maximumf %73, %74 : vector<8x128xf32>
    %c0_26 = arith.constant 0 : index
    %c0_27 = arith.constant 0 : index
    %76 = vector.load %arg7[%c0_26, %c0_27] : memref<128x256xbf16, #tpu.memory_space<vmem>>, vector<128x256xbf16>
    %77 = arith.truncf %75 : vector<8x128xf32> to vector<8x128xbf16>
    %cst_28 = arith.constant dense<0.000000e+00> : vector<8x256xf32>
    %78 = tpu.matmul %77, %76, %cst_28 {dimension_numbers = #tpu.dot_dimension_numbers<[1], [0], [0], [1], [0, 0, 1, 1], [], []>} : vector<8x128xbf16>, vector<128x256xbf16>, vector<8x256xf32> -> vector<8x256xf32>
    %c0_29 = arith.constant 0 : index
    %c1152 = arith.constant 1152 : index
    %79 = vector.load %arg5[%c0_29, %c1152] : memref<1x4224xf32, #tpu.memory_space<vmem>>, vector<1x256xf32>
    %80 = vector.broadcast %79 : vector<1x256xf32> to vector<8x256xf32>
    %81 = arith.addf %78, %80 : vector<8x256xf32>
    %cst_30 = arith.constant dense<0.000000e+00> : vector<8xf32>
    %82 = vector.multi_reduction <add>, %81, %cst_30 [1] : vector<8x256xf32> to vector<8xf32>
    %83 = vector.shape_cast %82 : vector<8xf32> to vector<8x1xf32>
    %cst_31 = arith.constant 2.560000e+02 : f32
    %84 = vector.broadcast %cst_31 : f32 to vector<8x1xf32>
    %85 = arith.divf %83, %84 : vector<8x1xf32>
    %86 = vector.broadcast %85 : vector<8x1xf32> to vector<8x256xf32>
    %87 = arith.subf %81, %86 : vector<8x256xf32>
    %88 = arith.mulf %87, %87 : vector<8x256xf32>
    %cst_32 = arith.constant dense<0.000000e+00> : vector<8xf32>
    %89 = vector.multi_reduction <add>, %88, %cst_32 [1] : vector<8x256xf32> to vector<8xf32>
    %90 = vector.shape_cast %89 : vector<8xf32> to vector<8x1xf32>
    %cst_33 = arith.constant 2.560000e+02 : f32
    %91 = vector.broadcast %cst_33 : f32 to vector<8x1xf32>
    %92 = arith.divf %90, %91 : vector<8x1xf32>
    %cst_34 = arith.constant 9.99999974E-6 : f32
    %93 = vector.broadcast %cst_34 : f32 to vector<8x1xf32>
    %94 = arith.addf %92, %93 : vector<8x1xf32>
    %95 = math.rsqrt %94 : vector<8x1xf32>
    %96 = vector.broadcast %95 : vector<8x1xf32> to vector<8x256xf32>
    %97 = arith.mulf %87, %96 : vector<8x256xf32>
    %c0_35 = arith.constant 0 : index
    %c1408 = arith.constant 1408 : index
    %98 = vector.load %arg5[%c0_35, %c1408] : memref<1x4224xf32, #tpu.memory_space<vmem>>, vector<1x256xf32>
    %99 = vector.broadcast %98 : vector<1x256xf32> to vector<8x256xf32>
    %100 = arith.mulf %97, %99 : vector<8x256xf32>
    %c0_36 = arith.constant 0 : index
    %c1664 = arith.constant 1664 : index
    %101 = vector.load %arg5[%c0_36, %c1664] : memref<1x4224xf32, #tpu.memory_space<vmem>>, vector<1x256xf32>
    %102 = vector.broadcast %101 : vector<1x256xf32> to vector<8x256xf32>
    %103 = arith.addf %100, %102 : vector<8x256xf32>
    %cst_37 = arith.constant 0.000000e+00 : f32
    %104 = vector.broadcast %cst_37 : f32 to vector<8x256xf32>
    %105 = arith.maximumf %103, %104 : vector<8x256xf32>
    %c0_38 = arith.constant 0 : index
    %c0_39 = arith.constant 0 : index
    %106 = vector.load %arg8[%c0_38, %c0_39] : memref<256x256xbf16, #tpu.memory_space<vmem>>, vector<256x256xbf16>
    %107 = arith.truncf %105 : vector<8x256xf32> to vector<8x256xbf16>
    %cst_40 = arith.constant dense<0.000000e+00> : vector<8x256xf32>
    %108 = tpu.matmul %107, %106, %cst_40 {dimension_numbers = #tpu.dot_dimension_numbers<[1], [0], [0], [1], [0, 0, 1, 1], [], []>} : vector<8x256xbf16>, vector<256x256xbf16>, vector<8x256xf32> -> vector<8x256xf32>
    %c0_41 = arith.constant 0 : index
    %c0_42 = arith.constant 0 : index
    %c0_43 = arith.constant 0 : index
    %109 = vector.load %arg2[%c0_41, %c0_42, %c0_43] : memref<1x1x256xf32, #tpu.memory_space<vmem>>, vector<1x1x256xf32>
    %110 = vector.shape_cast %109 : vector<1x1x256xf32> to vector<1x256xf32>
    %111 = vector.broadcast %110 : vector<1x256xf32> to vector<8x256xf32>
    %112 = arith.addf %108, %111 : vector<8x256xf32>
    %cst_44 = arith.constant dense<0.000000e+00> : vector<8xf32>
    %113 = vector.multi_reduction <add>, %112, %cst_44 [1] : vector<8x256xf32> to vector<8xf32>
    %114 = vector.shape_cast %113 : vector<8xf32> to vector<8x1xf32>
    %cst_45 = arith.constant 2.560000e+02 : f32
    %115 = vector.broadcast %cst_45 : f32 to vector<8x1xf32>
    %116 = arith.divf %114, %115 : vector<8x1xf32>
    %117 = vector.broadcast %116 : vector<8x1xf32> to vector<8x256xf32>
    %118 = arith.subf %112, %117 : vector<8x256xf32>
    %119 = arith.mulf %118, %118 : vector<8x256xf32>
    %cst_46 = arith.constant dense<0.000000e+00> : vector<8xf32>
    %120 = vector.multi_reduction <add>, %119, %cst_46 [1] : vector<8x256xf32> to vector<8xf32>
    %121 = vector.shape_cast %120 : vector<8xf32> to vector<8x1xf32>
    %cst_47 = arith.constant 2.560000e+02 : f32
    %122 = vector.broadcast %cst_47 : f32 to vector<8x1xf32>
    %123 = arith.divf %121, %122 : vector<8x1xf32>
    %cst_48 = arith.constant 9.99999974E-6 : f32
    %124 = vector.broadcast %cst_48 : f32 to vector<8x1xf32>
    %125 = arith.addf %123, %124 : vector<8x1xf32>
    %126 = math.rsqrt %125 : vector<8x1xf32>
    %127 = vector.broadcast %126 : vector<8x1xf32> to vector<8x256xf32>
    %128 = arith.mulf %118, %127 : vector<8x256xf32>
    %c0_49 = arith.constant 0 : index
    %c1920 = arith.constant 1920 : index
    %129 = vector.load %arg5[%c0_49, %c1920] : memref<1x4224xf32, #tpu.memory_space<vmem>>, vector<1x256xf32>
    %130 = vector.broadcast %129 : vector<1x256xf32> to vector<8x256xf32>
    %131 = arith.mulf %128, %130 : vector<8x256xf32>
    %c0_50 = arith.constant 0 : index
    %c2176 = arith.constant 2176 : index
    %132 = vector.load %arg5[%c0_50, %c2176] : memref<1x4224xf32, #tpu.memory_space<vmem>>, vector<1x256xf32>
    %133 = vector.broadcast %132 : vector<1x256xf32> to vector<8x256xf32>
    %134 = arith.addf %131, %133 : vector<8x256xf32>
    %cst_51 = arith.constant 0.000000e+00 : f32
    %135 = vector.broadcast %cst_51 : f32 to vector<8x256xf32>
    %136 = arith.maximumf %134, %135 : vector<8x256xf32>
    %c0_52 = arith.constant 0 : index
    %c0_53 = arith.constant 0 : index
    %137 = vector.load %arg9[%c0_52, %c0_53] : memref<256x128xbf16, #tpu.memory_space<vmem>>, vector<256x128xbf16>
    %138 = arith.truncf %136 : vector<8x256xf32> to vector<8x256xbf16>
    %cst_54 = arith.constant dense<0.000000e+00> : vector<8x128xf32>
    %139 = tpu.matmul %138, %137, %cst_54 {dimension_numbers = #tpu.dot_dimension_numbers<[1], [0], [0], [1], [0, 0, 1, 1], [], []>} : vector<8x256xbf16>, vector<256x128xbf16>, vector<8x128xf32> -> vector<8x128xf32>
    %c0_55 = arith.constant 0 : index
    %c2432 = arith.constant 2432 : index
    %140 = vector.load %arg5[%c0_55, %c2432] : memref<1x4224xf32, #tpu.memory_space<vmem>>, vector<1x128xf32>
    %141 = vector.broadcast %140 : vector<1x128xf32> to vector<8x128xf32>
    %142 = arith.addf %139, %141 : vector<8x128xf32>
    %cst_56 = arith.constant dense<0.000000e+00> : vector<8xf32>
    %143 = vector.multi_reduction <add>, %142, %cst_56 [1] : vector<8x128xf32> to vector<8xf32>
    %144 = vector.shape_cast %143 : vector<8xf32> to vector<8x1xf32>
    %cst_57 = arith.constant 1.280000e+02 : f32
    %145 = vector.broadcast %cst_57 : f32 to vector<8x1xf32>
    %146 = arith.divf %144, %145 : vector<8x1xf32>
    %147 = vector.broadcast %146 : vector<8x1xf32> to vector<8x128xf32>
    %148 = arith.subf %142, %147 : vector<8x128xf32>
    %149 = arith.mulf %148, %148 : vector<8x128xf32>
    %cst_58 = arith.constant dense<0.000000e+00> : vector<8xf32>
    %150 = vector.multi_reduction <add>, %149, %cst_58 [1] : vector<8x128xf32> to vector<8xf32>
    %151 = vector.shape_cast %150 : vector<8xf32> to vector<8x1xf32>
    %cst_59 = arith.constant 1.280000e+02 : f32
    %152 = vector.broadcast %cst_59 : f32 to vector<8x1xf32>
    %153 = arith.divf %151, %152 : vector<8x1xf32>
    %cst_60 = arith.constant 9.99999974E-6 : f32
    %154 = vector.broadcast %cst_60 : f32 to vector<8x1xf32>
    %155 = arith.addf %153, %154 : vector<8x1xf32>
    %156 = math.rsqrt %155 : vector<8x1xf32>
    %157 = vector.broadcast %156 : vector<8x1xf32> to vector<8x128xf32>
    %158 = arith.mulf %148, %157 : vector<8x128xf32>
    %c0_61 = arith.constant 0 : index
    %c2560 = arith.constant 2560 : index
    %159 = vector.load %arg5[%c0_61, %c2560] : memref<1x4224xf32, #tpu.memory_space<vmem>>, vector<1x128xf32>
    %160 = vector.broadcast %159 : vector<1x128xf32> to vector<8x128xf32>
    %161 = arith.mulf %158, %160 : vector<8x128xf32>
    %c0_62 = arith.constant 0 : index
    %c2688 = arith.constant 2688 : index
    %162 = vector.load %arg5[%c0_62, %c2688] : memref<1x4224xf32, #tpu.memory_space<vmem>>, vector<1x128xf32>
    %163 = vector.broadcast %162 : vector<1x128xf32> to vector<8x128xf32>
    %164 = arith.addf %161, %163 : vector<8x128xf32>
    %cst_63 = arith.constant 0.000000e+00 : f32
    %165 = vector.broadcast %cst_63 : f32 to vector<8x128xf32>
    %166 = arith.maximumf %164, %165 : vector<8x128xf32>
    %c0_64 = arith.constant 0 : index
    %c2816 = arith.constant 2816 : index
    %167 = vector.load %arg5[%c0_64, %c2816] : memref<1x4224xf32, #tpu.memory_space<vmem>>, vector<1x128xf32>
    %168 = vector.broadcast %167 : vector<1x128xf32> to vector<8x128xf32>
    %169 = arith.mulf %166, %168 : vector<8x128xf32>
    %cst_65 = arith.constant dense<0.000000e+00> : vector<8xf32>
    %170 = vector.multi_reduction <add>, %169, %cst_65 [1] : vector<8x128xf32> to vector<8xf32>
    %171 = vector.shape_cast %170 : vector<8xf32> to vector<8x1xf32>
    %c0_66 = arith.constant 0 : index
    %c2944 = arith.constant 2944 : index
    %172 = vector.load %arg5[%c0_66, %c2944] : memref<1x4224xf32, #tpu.memory_space<vmem>>, vector<1x1xf32>
    %173 = vector.broadcast %172 : vector<1x1xf32> to vector<8x1xf32>
    %174 = arith.addf %171, %173 : vector<8x1xf32>
    %c0_67 = arith.constant 0 : index
    %c0_68 = arith.constant 0 : index
    %175 = vector.load %arg10[%c0_67, %c0_68] : memref<256x256xbf16, #tpu.memory_space<vmem>>, vector<256x256xbf16>
    %176 = arith.truncf %105 : vector<8x256xf32> to vector<8x256xbf16>
    %cst_69 = arith.constant dense<0.000000e+00> : vector<8x256xf32>
    %177 = tpu.matmul %176, %175, %cst_69 {dimension_numbers = #tpu.dot_dimension_numbers<[1], [0], [0], [1], [0, 0, 1, 1], [], []>} : vector<8x256xbf16>, vector<256x256xbf16>, vector<8x256xf32> -> vector<8x256xf32>
    %c0_70 = arith.constant 0 : index
    %c0_71 = arith.constant 0 : index
    %c0_72 = arith.constant 0 : index
    %178 = vector.load %arg3[%c0_70, %c0_71, %c0_72] : memref<1x1x256xf32, #tpu.memory_space<vmem>>, vector<1x1x256xf32>
    %179 = vector.shape_cast %178 : vector<1x1x256xf32> to vector<1x256xf32>
    %180 = vector.broadcast %179 : vector<1x256xf32> to vector<8x256xf32>
    %181 = arith.addf %177, %180 : vector<8x256xf32>
    %cst_73 = arith.constant dense<0.000000e+00> : vector<8xf32>
    %182 = vector.multi_reduction <add>, %181, %cst_73 [1] : vector<8x256xf32> to vector<8xf32>
    %183 = vector.shape_cast %182 : vector<8xf32> to vector<8x1xf32>
    %cst_74 = arith.constant 2.560000e+02 : f32
    %184 = vector.broadcast %cst_74 : f32 to vector<8x1xf32>
    %185 = arith.divf %183, %184 : vector<8x1xf32>
    %186 = vector.broadcast %185 : vector<8x1xf32> to vector<8x256xf32>
    %187 = arith.subf %181, %186 : vector<8x256xf32>
    %188 = arith.mulf %187, %187 : vector<8x256xf32>
    %cst_75 = arith.constant dense<0.000000e+00> : vector<8xf32>
    %189 = vector.multi_reduction <add>, %188, %cst_75 [1] : vector<8x256xf32> to vector<8xf32>
    %190 = vector.shape_cast %189 : vector<8xf32> to vector<8x1xf32>
    %cst_76 = arith.constant 2.560000e+02 : f32
    %191 = vector.broadcast %cst_76 : f32 to vector<8x1xf32>
    %192 = arith.divf %190, %191 : vector<8x1xf32>
    %cst_77 = arith.constant 9.99999974E-6 : f32
    %193 = vector.broadcast %cst_77 : f32 to vector<8x1xf32>
    %194 = arith.addf %192, %193 : vector<8x1xf32>
    %195 = math.rsqrt %194 : vector<8x1xf32>
    %196 = vector.broadcast %195 : vector<8x1xf32> to vector<8x256xf32>
    %197 = arith.mulf %187, %196 : vector<8x256xf32>
    %c0_78 = arith.constant 0 : index
    %c3072 = arith.constant 3072 : index
    %198 = vector.load %arg5[%c0_78, %c3072] : memref<1x4224xf32, #tpu.memory_space<vmem>>, vector<1x256xf32>
    %199 = vector.broadcast %198 : vector<1x256xf32> to vector<8x256xf32>
    %200 = arith.mulf %197, %199 : vector<8x256xf32>
    %c0_79 = arith.constant 0 : index
    %c3328 = arith.constant 3328 : index
    %201 = vector.load %arg5[%c0_79, %c3328] : memref<1x4224xf32, #tpu.memory_space<vmem>>, vector<1x256xf32>
    %202 = vector.broadcast %201 : vector<1x256xf32> to vector<8x256xf32>
    %203 = arith.addf %200, %202 : vector<8x256xf32>
    %cst_80 = arith.constant 0.000000e+00 : f32
    %204 = vector.broadcast %cst_80 : f32 to vector<8x256xf32>
    %205 = arith.maximumf %203, %204 : vector<8x256xf32>
    %c0_81 = arith.constant 0 : index
    %c0_82 = arith.constant 0 : index
    %206 = vector.load %arg11[%c0_81, %c0_82] : memref<256x128xbf16, #tpu.memory_space<vmem>>, vector<256x128xbf16>
    %207 = arith.truncf %205 : vector<8x256xf32> to vector<8x256xbf16>
    %cst_83 = arith.constant dense<0.000000e+00> : vector<8x128xf32>
    %208 = tpu.matmul %207, %206, %cst_83 {dimension_numbers = #tpu.dot_dimension_numbers<[1], [0], [0], [1], [0, 0, 1, 1], [], []>} : vector<8x256xbf16>, vector<256x128xbf16>, vector<8x128xf32> -> vector<8x128xf32>
    %c0_84 = arith.constant 0 : index
    %c3584 = arith.constant 3584 : index
    %209 = vector.load %arg5[%c0_84, %c3584] : memref<1x4224xf32, #tpu.memory_space<vmem>>, vector<1x128xf32>
    %210 = vector.broadcast %209 : vector<1x128xf32> to vector<8x128xf32>
    %211 = arith.addf %208, %210 : vector<8x128xf32>
    %cst_85 = arith.constant dense<0.000000e+00> : vector<8xf32>
    %212 = vector.multi_reduction <add>, %211, %cst_85 [1] : vector<8x128xf32> to vector<8xf32>
    %213 = vector.shape_cast %212 : vector<8xf32> to vector<8x1xf32>
    %cst_86 = arith.constant 1.280000e+02 : f32
    %214 = vector.broadcast %cst_86 : f32 to vector<8x1xf32>
    %215 = arith.divf %213, %214 : vector<8x1xf32>
    %216 = vector.broadcast %215 : vector<8x1xf32> to vector<8x128xf32>
    %217 = arith.subf %211, %216 : vector<8x128xf32>
    %218 = arith.mulf %217, %217 : vector<8x128xf32>
    %cst_87 = arith.constant dense<0.000000e+00> : vector<8xf32>
    %219 = vector.multi_reduction <add>, %218, %cst_87 [1] : vector<8x128xf32> to vector<8xf32>
    %220 = vector.shape_cast %219 : vector<8xf32> to vector<8x1xf32>
    %cst_88 = arith.constant 1.280000e+02 : f32
    %221 = vector.broadcast %cst_88 : f32 to vector<8x1xf32>
    %222 = arith.divf %220, %221 : vector<8x1xf32>
    %cst_89 = arith.constant 9.99999974E-6 : f32
    %223 = vector.broadcast %cst_89 : f32 to vector<8x1xf32>
    %224 = arith.addf %222, %223 : vector<8x1xf32>
    %225 = math.rsqrt %224 : vector<8x1xf32>
    %226 = vector.broadcast %225 : vector<8x1xf32> to vector<8x128xf32>
    %227 = arith.mulf %217, %226 : vector<8x128xf32>
    %c0_90 = arith.constant 0 : index
    %c3712 = arith.constant 3712 : index
    %228 = vector.load %arg5[%c0_90, %c3712] : memref<1x4224xf32, #tpu.memory_space<vmem>>, vector<1x128xf32>
    %229 = vector.broadcast %228 : vector<1x128xf32> to vector<8x128xf32>
    %230 = arith.mulf %227, %229 : vector<8x128xf32>
    %c0_91 = arith.constant 0 : index
    %c3840 = arith.constant 3840 : index
    %231 = vector.load %arg5[%c0_91, %c3840] : memref<1x4224xf32, #tpu.memory_space<vmem>>, vector<1x128xf32>
    %232 = vector.broadcast %231 : vector<1x128xf32> to vector<8x128xf32>
    %233 = arith.addf %230, %232 : vector<8x128xf32>
    %cst_92 = arith.constant 0.000000e+00 : f32
    %234 = vector.broadcast %cst_92 : f32 to vector<8x128xf32>
    %235 = arith.maximumf %233, %234 : vector<8x128xf32>
    %c0_93 = arith.constant 0 : index
    %c3968 = arith.constant 3968 : index
    %236 = vector.load %arg5[%c0_93, %c3968] : memref<1x4224xf32, #tpu.memory_space<vmem>>, vector<1x128xf32>
    %237 = vector.broadcast %236 : vector<1x128xf32> to vector<8x128xf32>
    %238 = arith.mulf %235, %237 : vector<8x128xf32>
    %cst_94 = arith.constant dense<0.000000e+00> : vector<8xf32>
    %239 = vector.multi_reduction <add>, %238, %cst_94 [1] : vector<8x128xf32> to vector<8xf32>
    %240 = vector.shape_cast %239 : vector<8xf32> to vector<8x1xf32>
    %c0_95 = arith.constant 0 : index
    %c4096 = arith.constant 4096 : index
    %241 = vector.load %arg5[%c0_95, %c4096] : memref<1x4224xf32, #tpu.memory_space<vmem>>, vector<1x1xf32>
    %242 = vector.broadcast %241 : vector<1x1xf32> to vector<8x1xf32>
    %243 = arith.addf %240, %242 : vector<8x1xf32>
    %244 = arith.negf %243 : vector<8x1xf32>
    %245 = math.exp %244 : vector<8x1xf32>
    %cst_96 = arith.constant 1.000000e+00 : f32
    %246 = vector.broadcast %cst_96 : f32 to vector<8x1xf32>
    %247 = arith.addf %246, %245 : vector<8x1xf32>
    %248 = arith.divf %246, %247 : vector<8x1xf32>
    %249 = vector.shape_cast %174 : vector<8x1xf32> to vector<1x8x1xf32>
    %c0_97 = arith.constant 0 : index
    %c0_98 = arith.constant 0 : index
    %c0_99 = arith.constant 0 : index
    %250 = vector.load %arg12[%c0_97, %c0_98, %c0_99] : memref<1x8x1xf32, #tpu.memory_space<vmem>>, vector<1x8x1xf32>
    tpu.vector_store %arg12[%c0_97, %c0_98, %c0_99], %249 {strides = array<i32>} : memref<1x8x1xf32, #tpu.memory_space<vmem>>, vector<1x8x1xf32>,
    %251 = vector.shape_cast %248 : vector<8x1xf32> to vector<1x8x1xf32>
    %c0_100 = arith.constant 0 : index
    %c0_101 = arith.constant 0 : index
    %c0_102 = arith.constant 0 : index
    %252 = vector.load %arg13[%c0_100, %c0_101, %c0_102] : memref<1x8x1xf32, #tpu.memory_space<vmem>>, vector<1x8x1xf32>
    tpu.vector_store %arg13[%c0_100, %c0_101, %c0_102], %251 {strides = array<i32>} : memref<1x8x1xf32, #tpu.memory_space<vmem>>, vector<1x8x1xf32>,
    return
  }
  func.func @transform_0(%arg0: i32, %arg1: i32) -> (i32, i32, i32) {
    %c0_i32 = arith.constant 0 : i32
    %c0_i32_0 = arith.constant 0 : i32
    %c0_i32_1 = arith.constant 0 : i32
    return %arg0, %c0_i32, %c0_i32_0 : i32, i32, i32
  }
  func.func @transform_1(%arg0: i32, %arg1: i32) -> (i32, i32, i32) {
    %c0_i32 = arith.constant 0 : i32
    %c0_i32_0 = arith.constant 0 : i32
    %c0_i32_1 = arith.constant 0 : i32
    return %arg0, %c0_i32, %c0_i32_0 : i32, i32, i32
  }
  func.func @transform_2(%arg0: i32, %arg1: i32) -> (i32, i32, i32) {
    %c0_i32 = arith.constant 0 : i32
    %c0_i32_0 = arith.constant 0 : i32
    return %arg0, %arg1, %c0_i32 : i32, i32, i32
  }
  func.func @transform_3(%arg0: i32, %arg1: i32) -> (i32, i32) {
    %c0_i32 = arith.constant 0 : i32
    %c0_i32_0 = arith.constant 0 : i32
    %c0_i32_1 = arith.constant 0 : i32
    return %c0_i32, %c0_i32_0 : i32, i32
  }
  func.func @transform_4(%arg0: i32, %arg1: i32) -> (i32, i32) {
    %c0_i32 = arith.constant 0 : i32
    %c0_i32_0 = arith.constant 0 : i32
    %c0_i32_1 = arith.constant 0 : i32
    return %c0_i32, %c0_i32_0 : i32, i32
  }
  func.func @transform_5(%arg0: i32, %arg1: i32) -> (i32, i32) {
    %c0_i32 = arith.constant 0 : i32
    %c0_i32_0 = arith.constant 0 : i32
    %c0_i32_1 = arith.constant 0 : i32
    return %c0_i32, %c0_i32_0 : i32, i32
  }
  func.func @transform_6(%arg0: i32, %arg1: i32) -> (i32, i32) {
    %c0_i32 = arith.constant 0 : i32
    %c0_i32_0 = arith.constant 0 : i32
    %c0_i32_1 = arith.constant 0 : i32
    return %c0_i32, %c0_i32_0 : i32, i32
  }
  func.func @transform_7(%arg0: i32, %arg1: i32) -> (i32, i32) {
    %c0_i32 = arith.constant 0 : i32
    %c0_i32_0 = arith.constant 0 : i32
    %c0_i32_1 = arith.constant 0 : i32
    return %c0_i32, %c0_i32_0 : i32, i32
  }
  func.func @transform_8(%arg0: i32, %arg1: i32) -> (i32, i32) {
    %c0_i32 = arith.constant 0 : i32
    %c0_i32_0 = arith.constant 0 : i32
    %c0_i32_1 = arith.constant 0 : i32
    return %c0_i32, %c0_i32_0 : i32, i32
  }
  func.func @transform_9(%arg0: i32, %arg1: i32) -> (i32, i32) {
    %c0_i32 = arith.constant 0 : i32
    %c0_i32_0 = arith.constant 0 : i32
    %c0_i32_1 = arith.constant 0 : i32
    return %c0_i32, %c0_i32_0 : i32, i32
  }
  func.func @transform_10(%arg0: i32, %arg1: i32) -> (i32, i32, i32) {
    %c0_i32 = arith.constant 0 : i32
    %c0_i32_0 = arith.constant 0 : i32
    return %arg0, %arg1, %c0_i32 : i32, i32, i32
  }
  func.func @transform_11(%arg0: i32, %arg1: i32) -> (i32, i32, i32) {
    %c0_i32 = arith.constant 0 : i32
    %c0_i32_0 = arith.constant 0 : i32
    return %arg0, %arg1, %c0_i32 : i32, i32, i32
  }
}

</mosaic_0001>

<bundles_post_ra>
// kernel: forward.3
= control target key start
LH: loop header
LB: loop body
LE: loop exit
PB: predicated region body
PF: predicated region fallthrough
CT: control target
= control target key end

     0   :  { %s2730_s17 = smov 0   ;;  %s2732_s18 = smov 0   ;;  %s3518_s0 = inlined_call_operand.vmem [shape: f32[2,1,256], index: 0, kind: input, shape index: {}]   ;;  %s3519_s1 = inlined_call_operand.vmem [shape: f32[2,1,256], index: 1, kind: input, shape index: {}]   ;;  %s3520_s2 = inlined_call_operand.vmem [shape: f32[2,8,3], index: 2, kind: input, shape index: {}]   ;;  %s3521_s3 = inlined_call_operand.vmem [shape: f32[1,4224], index: 3, kind: input, shape index: {}]   ;;  %s3522_s4 = inlined_call_operand.vmem [shape: bf16[64,128], index: 4, kind: input, shape index: {}]   ;;  %s3523_s5 = inlined_call_operand.vmem [shape: bf16[128,256], index: 5, kind: input, shape index: {}]   ;;  %s3524_s6 = inlined_call_operand.vmem [shape: bf16[256,256], index: 6, kind: input, shape index: {}]   ;;  %s3525_s7 = inlined_call_operand.vmem [shape: bf16[256,128], index: 7, kind: input, shape index: {}]   ;;  %s3526_s8 = inlined_call_operand.vmem [shape: bf16[256,256], index: 8, kind: input, shape index: {}]   ;;  %s3527_s9 = inlined_call_operand.vmem [shape: bf16[256,128], index: 9, kind: input, shape index: {}]   ;;  %s3528_s10 = inlined_call_operand.vmem [shape: f32[2,8,1], index: 10, kind: output, shape index: {0}]   ;;  %s3529_s11 = inlined_call_operand.vmem [shape: f32[2,8,1], index: 11, kind: output, shape index: {1}]  }
   0x1   :  { %s2734_s19 = smov 0  }
   0x2 LB: > { %s34_s20 = sadd.s32 1, %s2658_s18  ;;  %p1973_p0 = scmp.ge.s32.totalorder %s2662_s19, 1  ;;  %s2662_s19 = sphi %s2734_s19, %s22_s19   ;;  %s2658_s18 = sphi %s2732_s18, %s3531_s18   ;;  %s2654_s17 = sphi %s2730_s17, %s3530_s17  }
   0x3   : > { %p36_p1 = scmp.ge.s32.totalorder %s34_s20, 2  ;;  %p378_p2 = scmp.lt.s32.totalorder %s2662_s19, 3 }
   0x5   : > { %s3533_s20 = smov (%p36_p1, %s34_s20), 0  ;;  %p379_p3 = pnand %p1973_p0, %p378_p2 }
   0x6   : > { %p437_p4 = scmp.lt.s32.totalorder (!%p379_p3), %s2654_s17, 1 }
   0x7   : > { %382 = sbr.rel (%p379_p3) target bundleno = 2613 (0xa35), region = 60 }
   0xc   : > { %v2664_v0 = vmov 0   ;;  %v2665_v1 = vmov 2   ;;  %s3535_s17 = smov (!%p437_p4, %s2654_s17), 1  ;;  %v2666_v3 = vmov 1   ;;  %v2597_v5 = vld [vmem:[%s3521_s3] ss:$0 sm:$0xff] }
   0xd   : > { %2593 = vset.pattern.permute.xlu0 %v2664_v0  ;;  %2595 = vset.pattern.permute.xlu1 %v2665_v1  ;;  %s2751_s21 = sshll.u32 %s3535_s17, 3  ;;  %v2598_v6 = vld [vmem:[%s3521_s3 + $0x1] ss:$0 sm:$0xff]  ;;  %v2599_v7 = vld [vmem:[%s3521_s3 + $0x2] ss:$0 sm:$0xff]  ;;  %vm503_vm0 = vcmask 523264  }
   0xe   : > { %s451_s24 = scalar_lea.vmem %s3520_s2, %s2751_s21  ;;  %v2600_v14 = vld [vmem:[%s3521_s3 + $0x3] ss:$0 sm:$0xff]  ;;  %v2667_v18 = vmov 64.0   ;;  %v2450_v30 = vld [vmem:[%s3522_s4 + $0x18] sm:$0xff]  ;;  %v2449_v31 = vld [vmem:[%s3522_s4 + $0x10] sm:$0xff]  ;;  %v2668_v55 = vmov 128.0  }
   0xf   : > { %v467_v2 = vld [vmem:[%s451_s24] sm:$0xff]  ;;  %2616 = vrcp.f32 %v2667_v18  ;;  %588 = vmatpush.bf16.msra.mxu0 %v2450_v30  ;;  %v2448_v32 = vld [vmem:[%s3522_s4 + $0x8] sm:$0xff]  ;;  %v2040_v18 = vld [vmem:[%s3523_s5 + $0x58] sm:$0xf0]  ;;  %s1974_s14 = sshll.u32 %s3535_s17, 1  ;;  %s458_s17 = scalar_lea.vmem %s3528_s10, %s2751_s21 }
  0x10   : > { %471 = vperm.xlu0 %2593, %v467_v2   ;;  %490 = vperm.xlu1 %2595, %v467_v2   ;;  %v2447_v33 = vld [vmem:[%s3522_s4] sm:$0xff]  ;;  %v2024_v30 = vld [vmem:[%s3523_s5 + $0x38] sm:$0xf0]  ;;  %s440_s22 = scalar_lea.vmem %s3518_s0, %s1974_s14  ;;  %s444_s25 = scalar_lea.vmem %s3519_s1, %s1974_s14 }
  0x11   : > { %v2601_v43 = vld [vmem:[%s3521_s3 + $0x4] ss:$0 sm:$0xff]  ;;  %v2602_v46 = vld [vmem:[%s3521_s3 + $0x5] ss:$0 sm:$0xff]  ;;  %v2603_v51 = vld [vmem:[%s3521_s3 + $0x6] ss:$0 sm:$0xff] }
  0x13   : > { %589 = vmatpush.bf16.msra.mxu0 %v2449_v31 }
  0x15   : > { %v2617_v19 = vpop.eup %2616 }
  0x16   : > { %v508_v20 = vmul.f32 64.0, %v2617_v19  ;;  %vm512_vm1 = vweird.f32 %v2617_v19 }
  0x17   : > { %590 = vmatpush.bf16.msra.mxu0 %v2448_v32  ;;  %v2014_v32 = vld [vmem:[%s3523_s5 + $0x20] sm:$0xf] }
  0x18   : > { %2594 = vset.pattern.permute.xlu0 %v2666_v3  ;;  %v509_v21 = vsub.f32 1.0, %v508_v20  ;;  %v2466_v3 = vld [vmem:[%s3523_s5 + $0x74] sm:$0xf0]  ;;  %v2030_v20 = vld [vmem:[%s3523_s5 + $0x40] sm:$0xf] }
  0x19   : > { %480 = vperm.xlu0 %2594, %v467_v2   ;;  %v2054_v2 = vld [vmem:[%s3523_s5 + $0x70] sm:$0xf] }
  0x1a   : > { %v510_v22 = vmul.f32 %v2617_v19, %v509_v21  ;;  %v2460_v21 = vld [vmem:[%s3523_s5 + $0x44] sm:$0xf0] }
  0x1b   : > { %591 = vmatpush.bf16.msra.mxu0 %v2447_v33  ;;  %v2456_v33 = vld [vmem:[%s3523_s5 + $0x24] sm:$0xf0] }
  0x1c   : > { %v511_v23 = vadd.f32 %v2617_v19, %v510_v22  ;;  %v2459_v22 = vld [vmem:[%s3523_s5 + $0x44] sm:$0xf] }
  0x1e   : > { %v513_v24 = vsel %vm512_vm1, %v2617_v19, %v511_v23  ;;  %v2031_v23 = vor.u32 %v2460_v21, %v2030_v20  ;;  %v2479_v20 = vld [vmem:[%s3524_s6 + $0x64] sm:$0xf]  ;;  %v2112_v21 = vld [vmem:[%s3524_s6 + $0x68] sm:$0xf0] }
  0x21   : > { %2596 = vset.pattern.permute.xlu0 %v2665_v1 }
  0x82   : > { %v472_v4 = vpop.permute.xlu0 %471  ;;  %v491_v8 = vpop.permute.xlu1 %490 }
  0x83   : > { %v477_v10 = vmul.f32 %v2597_v5, %v472_v4  ;;  %v496_v12 = vmul.f32 %v2599_v7, %v491_v8  ;;  %v2465_v4 = vld [vmem:[%s3523_s5 + $0x74] sm:$0xf]  ;;  %v2055_v5 = vor.u32 %v2466_v3, %v2054_v2  ;;  %v2046_v8 = vld [vmem:[%s3523_s5 + $0x60] sm:$0xf] }
  0x85   : > { %738 = vmatpush.bf16.msra.mxu1 %v2055_v5  ;;  %v652_v5 = vld [vmem:[%s3521_s3 + $0x9] sm:$0x3] }
  0x8b   : > { %v481_v9 = vpop.permute.xlu0 %480 }
  0x8c   : > { %v486_v11 = vmul.f32 %v2598_v6, %v481_v9  ;;  %v2056_v6 = vld [vmem:[%s3523_s5 + $0x78] sm:$0xf0]  ;;  %v2464_v9 = vld [vmem:[%s3523_s5 + $0x64] sm:$0xf0] }
  0x8d   : > { %v2059_v7 = vor.u32 %v2465_v4, %v2056_v6 }
  0x8e   : > { %v487_v13 = vadd.f32 %v486_v11, %v477_v10  ;;  %v2463_v10 = vld [vmem:[%s3523_s5 + $0x64] sm:$0xf]  ;;  %v2047_v11 = vor.u32 %v2464_v9, %v2046_v8  ;;  %v655_v8 = vperm.slane %v652_v5, 1 }
  0x8f   : > { %751 = vmatpush.bf16.msra.mxu2 %v2059_v7  ;;  %v654_v7 = vperm.slane %v652_v5, 0  ;;  %v2174_v5 = vld [vmem:[%s3524_s6 + $0xe0] sm:$0xf] }
  0x90   : > { %v497_v15 = vadd.f32 %v496_v12, %v487_v13  ;;  %v2048_v12 = vld [vmem:[%s3523_s5 + $0x68] sm:$0xf0]  ;;  %739 = vmatpush.bf16.msra.mxu1 %v2047_v11 }
  0x91   : > { %v2051_v13 = vor.u32 %v2463_v10, %v2048_v12 }
  0x92   : > { %v502_v16 = vadd.f32 %v2600_v14, %v497_v15  ;;  %v2038_v14 = vld [vmem:[%s3523_s5 + $0x50] sm:$0xf]  ;;  %v2462_v15 = vld [vmem:[%s3523_s5 + $0x54] sm:$0xf0] }
  0x93   : > { %752 = vmatpush.bf16.msra.mxu2 %v2051_v13 }
  0x94   : > { %v504_v17 = vsel %vm503_vm0, %v502_v16, 0.0 }
  0x95   : > { %505 = vadd.xlane.f32.xlu1 %v504_v17  ;;  %v2039_v17 = vor.u32 %v2462_v15, %v2038_v14  ;;  %v2669_v14 = vmov 256.0   ;;  %v2481_v15 = vld [vmem:[%s3524_s6 + $0x74] sm:$0xf] }
  0x97   : > { %740 = vmatpush.bf16.msra.mxu1 %v2039_v17  ;;  %v2497_v17 = vld [vmem:[%s3524_s6 + $0xf4] sm:$0xf] }
  0x9b   : > { %741 = vmatpush.bf16.msra.mxu1 %v2031_v23 }
 0x108   : > { %v506_v25 = vpop.xlane.xlu1 %505 }
 0x109   : > { %v514_v26 = vmul.f32 %v513_v24, %v506_v25 }
 0x10b   : > { %v515_v27 = vsub.f32 %v502_v16, %v514_v26  ;;  %v2461_v16 = vld [vmem:[%s3523_s5 + $0x54] sm:$0xf]  ;;  %v2022_v26 = vld [vmem:[%s3523_s5 + $0x30] sm:$0xf] }
 0x10c   : > { %v2043_v19 = vor.u32 %v2461_v16, %v2040_v18  ;;  %v2120_v16 = vld [vmem:[%s3524_s6 + $0x78] sm:$0xf0] }
 0x10d   : > { %v516_v28 = vmul.f32 %v515_v27, %v515_v27  ;;  %v2123_v18 = vor.u32 %v2481_v15, %v2120_v16  ;;  %v2166_v16 = vld [vmem:[%s3524_s6 + $0xd0] sm:$0xf] }
 0x10e   : > { %753 = vmatpush.bf16.msra.mxu2 %v2043_v19  ;;  %v2184_v19 = vld [vmem:[%s3524_s6 + $0xf8] sm:$0xf0] }
 0x10f   : > { %v517_v29 = vsel %vm503_vm0, %v516_v28, 0.0  ;;  %v2457_v28 = vld [vmem:[%s3523_s5 + $0x34] sm:$0xf]  ;;  %v2187_v23 = vor.u32 %v2497_v17, %v2184_v19  ;;  %v2494_v17 = vld [vmem:[%s3524_s6 + $0xd4] sm:$0xf0] }
 0x110   : > { %518 = vadd.xlane.f32.xlu2 %v517_v29  ;;  %v2027_v31 = vor.u32 %v2457_v28, %v2024_v30  ;;  %v2477_v28 = vld [vmem:[%s3524_s6 + $0x54] sm:$0xf] }
 0x111   : > { %v2469_v19 = vld [vmem:[%s3524_s6 + $0x14] sm:$0xf] }
 0x183   : > { %v519_v34 = vpop.xlane.xlu2 %518 }
 0x184   : > { %v520_v35 = vmul.f32 %v519_v34, %v513_v24  ;;  %v2032_v24 = vld [vmem:[%s3523_s5 + $0x48] sm:$0xf0]  ;;  %v2455_v34 = vld [vmem:[%s3523_s5 + $0x24] sm:$0xf] }
 0x185   : > { %v2035_v25 = vor.u32 %v2459_v22, %v2032_v24  ;;  %v2495_v24 = vld [vmem:[%s3524_s6 + $0xe4] sm:$0xf] }
 0x186   : > { %v521_v36 = vadd.f32 1e-05, %v520_v35  ;;  %v2015_v35 = vor.u32 %v2456_v33, %v2014_v32  ;;  %v2168_v32 = vld [vmem:[%s3524_s6 + $0xd8] sm:$0xf0] }
 0x187   : > { %754 = vmatpush.bf16.msra.mxu2 %v2035_v25  ;;  %v2176_v25 = vld [vmem:[%s3524_s6 + $0xe8] sm:$0xf0] }
 0x188   : > { %2618 = vrsqrt.f32 %v521_v36  ;;  %vm528_vm3 = vweird.f32 %v521_v36 }
 0x189   : > { %2620 = vrcp.f32 %v2668_v55 }
 0x18b   : > { %755 = vmatpush.bf16.msra.mxu2 %v2027_v31  ;;  %v2493_v31 = vld [vmem:[%s3524_s6 + $0xd4] sm:$0xf] }
 0x18e   : > { %v2619_v37 = vpop.eup %2618 }
 0x18f   : > { %v523_v38 = vmul.f32 %v2619_v37, %v521_v36  ;;  %vm529_vm2 = vweird.f32 %v2619_v37  ;;  %v2621_v56 = vpop.eup %2620  ;;  %v2016_v36 = vld [vmem:[%s3523_s5 + $0x28] sm:$0xf0] }
 0x190   : > { %vm530_vm4 = vmor %vm528_vm3, %vm529_vm2  ;;  %v600_v57 = vmul.f32 128.0, %v2621_v56  ;;  %vm604_vm5 = vweird.f32 %v2621_v56 }
 0x191   : > { %v524_v39 = vmul.f32 %v2619_v37, %v523_v38  ;;  %v2454_v38 = vld [vmem:[%s3523_s5 + $0x14] sm:$0xf0] }
 0x192   : > { %v601_v58 = vsub.f32 1.0, %v600_v57 }
 0x193   : > { %v525_v40 = vmul.f32 0.5, %v524_v39  ;;  %v2019_v39 = vor.u32 %v2455_v34, %v2016_v36  ;;  %v2171_v34 = vor.u32 %v2493_v31, %v2168_v32  ;;  %v2467_v31 = vld [vmem:[%s3524_s6 + $0x4] sm:$0xf]  ;;  %v2064_v32 = vld [vmem:[%s3524_s6 + $0x8] sm:$0xf0] }
 0x194   : > { %v602_v59 = vmul.f32 %v2621_v56, %v601_v58 }
 0x195   : > { %v526_v41 = vsub.f32 1.5, %v525_v40  ;;  %v2453_v40 = vld [vmem:[%s3523_s5 + $0x14] sm:$0xf]  ;;  %756 = vmatpush.bf16.msra.mxu2 %v2019_v39 }
 0x196   : > { %v603_v60 = vadd.f32 %v2621_v56, %v602_v59  ;;  %v2604_v59 = vld [vmem:[%s3521_s3 + $0x7] ss:$0 sm:$0xff] }
 0x197   : > { %v527_v42 = vmul.f32 %v2619_v37, %v526_v41  ;;  %v2008_v41 = vld [vmem:[%s3523_s5 + $0x18] sm:$0xf0] }
 0x198   : > { %v2793_v61 = vsel %vm604_vm5, %v2621_v56, %v603_v60 }
 0x199   : > { %v531_v44 = vsel %vm530_vm4, %v2619_v37, %v527_v42  ;;  %v2006_v37 = vld [vmem:[%s3523_s5 + $0x10] sm:$0xf] }
 0x19a   : > { %v532_v45 = vmul.f32 %v531_v44, %v515_v27  ;;  %v2458_v27 = vld [vmem:[%s3523_s5 + $0x34] sm:$0xf0]  ;;  %v2007_v42 = vor.u32 %v2454_v38, %v2006_v37  ;;  %v1998_v44 = vld [vmem:[%s3523_s5] sm:$0xf] }
 0x19b   : > { %v2023_v29 = vor.u32 %v2458_v27, %v2022_v26  ;;  %v2115_v26 = vor.u32 %v2479_v20, %v2112_v21  ;;  %v2179_v27 = vor.u32 %v2495_v24, %v2176_v25  ;;  %v2072_v20 = vld [vmem:[%s3524_s6 + $0x18] sm:$0xf0]  ;;  %v2485_v21 = vld [vmem:[%s3524_s6 + $0x94] sm:$0xf]  ;;  %v2094_v24 = vld [vmem:[%s3524_s6 + $0x40] sm:$0xf] }
 0x19c   : > { %v537_v47 = vmul.f32 %v2601_v43, %v532_v45  ;;  %v2011_v43 = vor.u32 %v2453_v40, %v2008_v41  ;;  %v2452_v45 = vld [vmem:[%s3523_s5 + $0x4] sm:$0xf0] }
 0x19d   : > { %742 = vmatpush.bf16.msra.mxu1 %v2023_v29  ;;  %v2104_v29 = vld [vmem:[%s3524_s6 + $0x58] sm:$0xf0]  ;;  %v2476_v25 = vld [vmem:[%s3524_s6 + $0x44] sm:$0xf0] }
 0x19e   : > { %v542_v48 = vadd.f32 %v2602_v46, %v537_v47  ;;  %v2451_v46 = vld [vmem:[%s3523_s5 + $0x4] sm:$0xf]  ;;  %v2000_v47 = vld [vmem:[%s3523_s5 + $0x8] sm:$0xf0]  ;;  %757 = vmatpush.bf16.msra.mxu2 %v2011_v43  ;;  %v2107_v33 = vor.u32 %v2477_v28, %v2104_v29  ;;  %v2158_v28 = vld [vmem:[%s3524_s6 + $0xc0] sm:$0xf] }
 0x19f   : > { %v2492_v29 = vld [vmem:[%s3524_s6 + $0xc4] sm:$0xf0] }
 0x1a0   : > { %v543_v49 = vmax.f32 %v542_v48, 0.0  ;;  %v1999_v48 = vor.u32 %v2452_v45, %v1998_v44 }
 0x1a1   : > { %743 = vmatpush.bf16.msra.mxu1 %v2015_v35 }
 0x1a2   : > { %v552_v50 = vpack.c.bf16 %v543_v49, %v543_v49  ;;  %v2003_v49 = vor.u32 %v2451_v46, %v2000_v47  ;;  %v2475_v46 = vld [vmem:[%s3524_s6 + $0x44] sm:$0xf]  ;;  %v2096_v47 = vld [vmem:[%s3524_s6 + $0x48] sm:$0xf0] }
 0x1a4   : > { %1995 = vmatmul.msk.bf16.vlgmr.msra.gmra.mxu0 %vm503_vm0, %v552_v50  ;;  %758 = vmatpush.bf16.msra.mxu2 %v2003_v49  ;;  %v2099_v49 = vor.u32 %v2475_v46, %v2096_v47  ;;  %v2530_v47 = vld [vmem:[%s3526_s8 + $0x74] sm:$0xf0] }
 0x1a5   : > { %744 = vmatpush.bf16.msra.mxu1 %v2007_v42 }
 0x1a8   : > { %1053 = vmatpush.bf16.msrb.mxu2 %v2187_v23  ;;  %v2136_v23 = vld [vmem:[%s3524_s6 + $0x98] sm:$0xf0] }
 0x1a9   : > { %745 = vmatpush.bf16.msra.mxu1 %v1999_v48  ;;  %v2491_v48 = vld [vmem:[%s3524_s6 + $0xc4] sm:$0xf] }
 0x1ac   : > { %1054 = vmatpush.bf16.msrb.mxu2 %v2179_v27  ;;  %v2095_v27 = vor.u32 %v2476_v25, %v2094_v24 }
 0x1ad   : > { %1040 = vmatpush.bf16.msrb.mxu1 %v2123_v18  ;;  %v2167_v18 = vor.u32 %v2494_v17, %v2166_v16  ;;  %v2484_v16 = vld [vmem:[%s3524_s6 + $0x84] sm:$0xf0] }
 0x1b0   : > { %1055 = vmatpush.bf16.msrb.mxu2 %v2171_v34  ;;  %v2067_v34 = vor.u32 %v2467_v31, %v2064_v32  ;;  %v2538_v31 = vld [vmem:[%s3526_s8 + $0xb4] sm:$0xf0] }
 0x1b1   : > { %1041 = vmatpush.bf16.msrb.mxu1 %v2115_v26  ;;  %v2139_v26 = vor.u32 %v2485_v21, %v2136_v23  ;;  %v2350_v21 = vld [vmem:[%s3526_s8 + $0xc0] sm:$0xf]  ;;  %v2540_v23 = vld [vmem:[%s3526_s8 + $0xc4] sm:$0xf0] }
 0x1b2   : > { %v2351_v24 = vor.u32 %v2540_v23, %v2350_v21 }
 0x1b5   : > { %1042 = vmatpush.bf16.msrb.mxu1 %v2107_v33  ;;  %v2483_v33 = vld [vmem:[%s3524_s6 + $0x84] sm:$0xf] }
 0x1b9   : > { %1043 = vmatpush.bf16.msrb.mxu1 %v2099_v49  ;;  %v2546_v49 = vld [vmem:[%s3526_s8 + $0xf4] sm:$0xf0] }
 0x221   : > { %v593_v52 = vpop.f32.mrf.mxu0 }
 0x222   : > { %v594_v53 = vadd.f32 %v2603_v51, %v593_v52 }
 0x224   : > { %597 = vadd.xlane.f32.xlu2 %v594_v53 }
 0x229   : > { %v595_v54 = vpop.f32.mrf.mxu0 }
 0x297   : > { %v598_v62 = vpop.xlane.xlu2 %597 }
 0x298   : > { %v606_v63 = vmul.f32 %v2793_v61, %v598_v62 }
 0x29a   : > { %v2796_v0 = vsub.f32 %v594_v53, %v606_v63  ;;  %v2605_v63 = vld [vmem:[%s3521_s3 + $0x8] ss:$0 sm:$0xff] }
 0x29c   : > { %v608_v1 = vmul.f32 %v2796_v0, %v2796_v0 }
 0x29e   : > { %609 = vadd.xlane.f32.xlu2 %v608_v1 }
 0x311   : > { %v610_v50 = vpop.xlane.xlu2 %609 }
 0x312   : > { %v611_v51 = vmul.f32 %v610_v50, %v2793_v61  ;;  %v2160_v50 = vld [vmem:[%s3524_s6 + $0xc8] sm:$0xf0] }
 0x314   : > { %v612_v52 = vadd.f32 1e-05, %v611_v51  ;;  %v2118_v51 = vld [vmem:[%s3524_s6 + $0x70] sm:$0xf] }
 0x316   : > { %2622 = vrsqrt.f32 %v612_v52  ;;  %vm619_vm7 = vweird.f32 %v612_v52 }
 0x317   : > { %2624 = vrcp.f32 %v2669_v14 }
 0x31c   : > { %v2623_v53 = vpop.eup %2622 }
 0x31d   : > { %v614_v54 = vmul.f32 %v2623_v53, %v612_v52  ;;  %vm620_vm6 = vweird.f32 %v2623_v53  ;;  %v2625_v22 = vpop.eup %2624  ;;  %v2482_v52 = vld [vmem:[%s3524_s6 + $0x74] sm:$0xf0] }
 0x31e   : > { %vm621_vm8 = vmor %vm619_vm7, %vm620_vm6  ;;  %v768_v30 = vmul.f32 256.0, %v2625_v22  ;;  %vm772_vm9 = vweird.f32 %v2625_v22  ;;  %vm1827_vm6 = vcmask 7168  }
 0x31f   : > { %v615_v55 = vmul.f32 %v2623_v53, %v614_v54  ;;  %v2119_v54 = vor.u32 %v2482_v52, %v2118_v51  ;;  %v2078_v52 = vld [vmem:[%s3524_s6 + $0x20] sm:$0xf] }
 0x320   : > { %v769_v35 = vsub.f32 1.0, %v768_v30  ;;  %v2159_v30 = vor.u32 %v2492_v29, %v2158_v28  ;;  %v2342_v28 = vld [vmem:[%s3526_s8 + $0xb0] sm:$0xf] }
 0x321   : > { %v616_v56 = vmul.f32 0.5, %v615_v55  ;;  %v2182_v55 = vld [vmem:[%s3524_s6 + $0xf0] sm:$0xf]  ;;  %1014 = vmatpush.bf16.msra.mxu3 %v2119_v54  ;;  %v2142_v54 = vld [vmem:[%s3524_s6 + $0xa0] sm:$0xf]  ;;  %v2343_v32 = vor.u32 %v2538_v31, %v2342_v28 }
 0x322   : > { %v770_v36 = vmul.f32 %v2625_v22, %v769_v35  ;;  %v2128_v35 = vld [vmem:[%s3524_s6 + $0x88] sm:$0xf0] }
 0x323   : > { %v617_v57 = vsub.f32 1.5, %v616_v56  ;;  %v2498_v56 = vld [vmem:[%s3524_s6 + $0xf4] sm:$0xf0] }
 0x324   : > { %v771_v37 = vadd.f32 %v2625_v22, %v770_v36  ;;  %v2086_v36 = vld [vmem:[%s3524_s6 + $0x30] sm:$0xf] }
 0x325   : > { %v618_v58 = vmul.f32 %v2623_v53, %v617_v57  ;;  %v2183_v57 = vor.u32 %v2498_v56, %v2182_v55  ;;  %v2488_v56 = vld [vmem:[%s3524_s6 + $0xa4] sm:$0xf0] }
 0x326   : > { %v2943_v38 = vsel %vm772_vm9, %v2625_v22, %v771_v37  ;;  %v2075_v22 = vor.u32 %v2469_v19, %v2072_v20  ;;  %v2474_v37 = vld [vmem:[%s3524_s6 + $0x34] sm:$0xf0]  ;;  %v2286_v19 = vld [vmem:[%s3526_s8 + $0x40] sm:$0xf]  ;;  %v2524_v20 = vld [vmem:[%s3526_s8 + $0x44] sm:$0xf0] }
 0x327   : > { %v622_v60 = vsel %vm621_vm8, %v2623_v53, %v618_v58  ;;  %v2163_v53 = vor.u32 %v2491_v48, %v2160_v50  ;;  %v2473_v58 = vld [vmem:[%s3524_s6 + $0x34] sm:$0xf]  ;;  %1027 = vmatpush.bf16.msrb.mxu0 %v2183_v57  ;;  %v2374_v48 = vld [vmem:[%s3526_s8 + $0xf0] sm:$0xf]  ;;  %v2302_v57 = vld [vmem:[%s3526_s8 + $0x60] sm:$0xf] }
 0x328   : > { %v623_v62 = vmul.f32 %v622_v60, %v2796_v0  ;;  %v2489_v60 = vld [vmem:[%s3524_s6 + $0xb4] sm:$0xf]  ;;  %v2375_v51 = vor.u32 %v2546_v49, %v2374_v48  ;;  %v2254_v49 = vld [vmem:[%s3526_s8] sm:$0xf] }
 0x329   : > { %1056 = vmatpush.bf16.msrb.mxu2 %v2163_v53  ;;  %v2472_v53 = vld [vmem:[%s3524_s6 + $0x24] sm:$0xf0] }
 0x32a   : > { %v628_v1 = vmul.f32 %v2604_v59, %v623_v62  ;;  %v2088_v59 = vld [vmem:[%s3524_s6 + $0x38] sm:$0xf0]  ;;  %v2079_v55 = vor.u32 %v2472_v53, %v2078_v52  ;;  %v2532_v52 = vld [vmem:[%s3526_s8 + $0x84] sm:$0xf0] }
 0x32b   : > { %v2091_v62 = vor.u32 %v2473_v58, %v2088_v59  ;;  %v2528_v58 = vld [vmem:[%s3526_s8 + $0x64] sm:$0xf0]  ;;  %v2143_v59 = vor.u32 %v2488_v56, %v2142_v54 }
 0x32c   : > { %v633_v2 = vadd.f32 %v2605_v63, %v628_v1  ;;  %v2152_v63 = vld [vmem:[%s3524_s6 + $0xb8] sm:$0xf0]  ;;  %v2110_v1 = vld [vmem:[%s3524_s6 + $0x60] sm:$0xf] }
 0x32d   : > { %1044 = vmatpush.bf16.msrb.mxu1 %v2091_v62  ;;  %v2366_v62 = vld [vmem:[%s3526_s8 + $0xe0] sm:$0xf] }
 0x32e   : > { %v634_v3 = vmax.f32 %v633_v2, 0.0  ;;  %v2480_v2 = vld [vmem:[%s3524_s6 + $0x64] sm:$0xf0] }
 0x330   : > { %v651_v4 = vpack.c.bf16 %v634_v3, %v634_v3  ;;  %v2155_v3 = vor.u32 %v2489_v60, %v2152_v63  ;;  %v2303_v60 = vor.u32 %v2528_v58, %v2302_v57  ;;  %v2544_v63 = vld [vmem:[%s3526_s8 + $0xe4] sm:$0xf0] }
 0x332   : > { %746 = vmatmul.bf16.vlgmr.msra.gmra.mxu1 %v651_v4  ;;  %759 = vmatmul.bf16.vlgmr.msra.gmra.mxu2 %v651_v4  ;;  %v2111_v4 = vor.u32 %v2480_v2, %v2110_v1  ;;  %v2367_v1 = vor.u32 %v2544_v63, %v2366_v62  ;;  %v2070_v2 = vld [vmem:[%s3524_s6 + $0x10] sm:$0xf]  ;;  %v804_v63 = vld [vmem:[%s3521_s3 + $0xd] sm:$0x3] }
 0x333   : > { %1057 = vmatpush.bf16.msrb.mxu2 %v2155_v3  ;;  %v2470_v3 = vld [vmem:[%s3524_s6 + $0x14] sm:$0xf0] }
 0x334   : > { %1015 = vmatpush.bf16.msra.mxu3 %v2111_v4  ;;  %v2134_v4 = vld [vmem:[%s3524_s6 + $0x90] sm:$0xf] }
 0x3af   : > { %v747_v6 = vpop.f32.mrf.mxu1 }
 0x3b0   : > { %v748_v10 = vadd.f32 %v747_v6, %v654_v7  ;;  %v2496_v6 = vld [vmem:[%s3524_s6 + $0xe4] sm:$0xf0] }
 0x3b1   : > { %v2175_v7 = vor.u32 %v2496_v6, %v2174_v5  ;;  %v2071_v5 = vor.u32 %v2470_v3, %v2070_v2  ;;  %v2486_v6 = vld [vmem:[%s3524_s6 + $0x94] sm:$0xf0] }
 0x3b3   : > { %1028 = vmatpush.bf16.msrb.mxu0 %v2175_v7  ;;  %v2294_v7 = vld [vmem:[%s3526_s8 + $0x50] sm:$0xf] }
 0x3b5   : > { %v760_v9 = vpop.f32.mrf.mxu2 }
 0x3b6   : > { %v761_v0 = vadd.f32 %v760_v9, %v655_v8  ;;  %v2471_v8 = vld [vmem:[%s3524_s6 + $0x24] sm:$0xf]  ;;  %v2080_v9 = vld [vmem:[%s3524_s6 + $0x28] sm:$0xf0] }
 0x3b7   : > { %v749_v11 = vpop.f32.mrf.mxu1  ;;  %1029 = vmatpush.bf16.msrb.mxu0 %v2167_v18 }
 0x3b8   : > { %v764_v12 = vadd.f32 %v761_v0, %v748_v10  ;;  %v2144_v11 = vld [vmem:[%s3524_s6 + $0xa8] sm:$0xf0] }
 0x3ba   : > { %765 = vadd.xlane.f32.xlu0 %v764_v12  ;;  %v2102_v12 = vld [vmem:[%s3524_s6 + $0x50] sm:$0xf] }
 0x3bb   : > { %1030 = vmatpush.bf16.msrb.mxu0 %v2159_v30 }
 0x3bd   : > { %v762_v13 = vpop.f32.mrf.mxu2 }
 0x3be   : > { %v2478_v13 = vld [vmem:[%s3524_s6 + $0x54] sm:$0xf0] }
 0x3bf   : > { %v2103_v15 = vor.u32 %v2478_v13, %v2102_v12  ;;  %v2062_v12 = vld [vmem:[%s3524_s6] sm:$0xf] }
 0x3c1   : > { %1016 = vmatpush.bf16.msra.mxu3 %v2103_v15  ;;  %v2126_v15 = vld [vmem:[%s3524_s6 + $0x80] sm:$0xf] }
 0x3c2   : > { %v2127_v18 = vor.u32 %v2484_v16, %v2126_v15 }
 0x3c5   : > { %1017 = vmatpush.bf16.msra.mxu3 %v2095_v27  ;;  %v2522_v27 = vld [vmem:[%s3526_s8 + $0x34] sm:$0xf0] }
 0x42d   : > { %v766_v39 = vpop.xlane.xlu0 %765 }
 0x42e   : > { %v774_v40 = vmul.f32 %v2943_v38, %v766_v39  ;;  %v2131_v39 = vor.u32 %v2483_v33, %v2128_v35  ;;  %v2270_v33 = vld [vmem:[%s3526_s8 + $0x20] sm:$0xf] }
 0x42f   : > { %v2334_v35 = vld [vmem:[%s3526_s8 + $0xa0] sm:$0xf] }
 0x430   : > { %v2946_v41 = vsub.f32 %v748_v10, %v774_v40  ;;  %v2948_v42 = vsub.f32 %v761_v0, %v774_v40  ;;  %v2487_v10 = vld [vmem:[%s3524_s6 + $0xa4] sm:$0xf]  ;;  %v2083_v0 = vor.u32 %v2471_v8, %v2080_v9  ;;  %v2087_v40 = vor.u32 %v2474_v37, %v2086_v36  ;;  %v2526_v8 = vld [vmem:[%s3526_s8 + $0x54] sm:$0xf0]  ;;  %v2536_v37 = vld [vmem:[%s3526_s8 + $0xa4] sm:$0xf0] }
 0x431   : > { %v2147_v14 = vor.u32 %v2487_v10, %v2144_v11  ;;  %v2135_v9 = vor.u32 %v2486_v6, %v2134_v4  ;;  %v2295_v10 = vor.u32 %v2526_v8, %v2294_v7  ;;  %v2542_v11 = vld [vmem:[%s3526_s8 + $0xd4] sm:$0xf0]  ;;  %v806_v6 = vperm.slane %v804_v63, 0 }
 0x432   : > { %v777_v43 = vmul.f32 %v2946_v41, %v2946_v41  ;;  %v778_v44 = vmul.f32 %v2948_v42, %v2948_v42  ;;  %1045 = vmatpush.bf16.msrb.mxu1 %v2083_v0  ;;  %1018 = vmatpush.bf16.msra.mxu3 %v2087_v40  ;;  %v2358_v0 = vld [vmem:[%s3526_s8 + $0xd0] sm:$0xf]  ;;  %v2335_v40 = vor.u32 %v2536_v37, %v2334_v35  ;;  %v807_v7 = vperm.slane %v804_v63, 1  ;;  %v2506_v37 = vld [vmem:[%s3525_s7 + $0x38] sm:$0xff]  ;;  %v2507_v63 = vld [vmem:[%s3525_s7 + $0x40] sm:$0xff] }
 0x433   : > { %1058 = vmatpush.bf16.msrb.mxu2 %v2147_v14  ;;  %v2359_v13 = vor.u32 %v2542_v11, %v2358_v0  ;;  %v2468_v14 = vld [vmem:[%s3524_s6 + $0x4] sm:$0xf0] }
 0x434   : > { %v779_v45 = vadd.f32 %v778_v44, %v777_v43  ;;  %v2150_v43 = vld [vmem:[%s3524_s6 + $0xb0] sm:$0xf]  ;;  %v2490_v44 = vld [vmem:[%s3524_s6 + $0xb4] sm:$0xf0]  ;;  %v2063_v17 = vor.u32 %v2468_v14, %v2062_v12 }
 0x435   : > { %v2151_v46 = vor.u32 %v2490_v44, %v2150_v43  ;;  %v2262_v43 = vld [vmem:[%s3526_s8 + $0x10] sm:$0xf]  ;;  %v2518_v44 = vld [vmem:[%s3526_s8 + $0x14] sm:$0xf0] }
 0x436   : > { %780 = vadd.xlane.f32.xlu2 %v779_v45  ;;  %1046 = vmatpush.bf16.msrb.mxu1 %v2075_v22  ;;  %v2310_v45 = vld [vmem:[%s3526_s8 + $0x70] sm:$0xf]  ;;  %v2287_v22 = vor.u32 %v2524_v20, %v2286_v19 }
 0x437   : > { %1059 = vmatpush.bf16.msrb.mxu2 %v2139_v26  ;;  %v2311_v50 = vor.u32 %v2530_v47, %v2310_v45  ;;  %1031 = vmatpush.bf16.msrb.mxu0 %v2151_v46  ;;  %v2278_v26 = vld [vmem:[%s3526_s8 + $0x30] sm:$0xf]  ;;  %v2534_v46 = vld [vmem:[%s3526_s8 + $0x94] sm:$0xf0]  ;;  %v2263_v47 = vor.u32 %v2518_v44, %v2262_v43  ;;  %v2504_v44 = vld [vmem:[%s3525_s7 + $0x28] sm:$0xff] }
 0x438   : > { %1019 = vmatpush.bf16.msra.mxu3 %v2079_v55  ;;  %v2279_v30 = vor.u32 %v2522_v27, %v2278_v26  ;;  %v2326_v45 = vld [vmem:[%s3526_s8 + $0x90] sm:$0xf]  ;;  %v3232_v27 = vld [vmem:[%s444_s25] sm:$0x3] }
 0x439   : > { %v2327_v48 = vor.u32 %v2534_v46, %v2326_v45  ;;  %v2513_v43 = vld [vmem:[%s3525_s7 + $0x70] sm:$0xff]  ;;  %v2512_v45 = vld [vmem:[%s3525_s7 + $0x68] sm:$0xff] }
 0x43a   : > { %1047 = vmatpush.bf16.msrb.mxu1 %v2067_v34  ;;  %v2520_v34 = vld [vmem:[%s3526_s8 + $0x24] sm:$0xf0] }
 0x43b   : > { %1060 = vmatpush.bf16.msrb.mxu2 %v2131_v39  ;;  %1032 = vmatpush.bf16.msrb.mxu0 %v2143_v59  ;;  %v2271_v39 = vor.u32 %v2520_v34, %v2270_v33 }
 0x43c   : > { %1020 = vmatpush.bf16.msra.mxu3 %v2071_v5 }
 0x43e   : > { %1510 = vmatpush.bf16.msra.mxu1 %v2311_v50  ;;  %v2516_v50 = vld [vmem:[%s3526_s8 + $0x4] sm:$0xf0] }
 0x43f   : > { %1523 = vmatpush.bf16.msra.mxu2 %v2375_v51  ;;  %1033 = vmatpush.bf16.msrb.mxu0 %v2135_v9  ;;  %v2318_v51 = vld [vmem:[%s3526_s8 + $0x80] sm:$0xf]  ;;  %v2255_v55 = vor.u32 %v2516_v50, %v2254_v49 }
 0x440   : > { %1021 = vmatpush.bf16.msra.mxu3 %v2063_v17  ;;  %v2319_v56 = vor.u32 %v2532_v52, %v2318_v51 }
 0x442   : > { %1511 = vmatpush.bf16.msra.mxu1 %v2303_v60  ;;  %v796_v60 = vld [vmem:[%s3521_s3 + $0xb] sm:$0x3] }
 0x443   : > { %1524 = vmatpush.bf16.msra.mxu2 %v2367_v1  ;;  %1034 = vmatpush.bf16.msrb.mxu0 %v2127_v18  ;;  %v798_v1 = vperm.slane %v796_v60, 0  ;;  %v799_v2 = vperm.slane %v796_v60, 1  ;;  %v2508_v60 = vld [vmem:[%s3525_s7 + $0x48] sm:$0xff] }
 0x444   : > { %1243 = vmatpush.bf16.msrb.mxu3 %v2506_v37  ;;  %v2336_v37 = vld [vmem:[%s3526_s8 + $0xa8] sm:$0xf0] }
 0x446   : > { %1512 = vmatpush.bf16.msra.mxu1 %v2295_v10 }
 0x447   : > { %1525 = vmatpush.bf16.msra.mxu2 %v2359_v13 }
 0x44a   : > { %1513 = vmatpush.bf16.msra.mxu1 %v2287_v22 }
 0x44b   : > { %1526 = vmatpush.bf16.msra.mxu2 %v2351_v24 }
 0x44e   : > { %1514 = vmatpush.bf16.msra.mxu1 %v2279_v30 }
 0x44f   : > { %1527 = vmatpush.bf16.msra.mxu2 %v2343_v32 }
 0x452   : > { %1515 = vmatpush.bf16.msra.mxu1 %v2271_v39  ;;  %v2514_v39 = vld [vmem:[%s3525_s7 + $0x78] sm:$0xff] }
 0x453   : > { %1528 = vmatpush.bf16.msra.mxu2 %v2335_v40  ;;  %1256 = vmatpush.bf16.msra.mxu0 %v2514_v39  ;;  %v2505_v40 = vld [vmem:[%s3525_s7 + $0x30] sm:$0xff] }
 0x454   : > { %1244 = vmatpush.bf16.msrb.mxu3 %v2505_v40 }
 0x456   : > { %1516 = vmatpush.bf16.msra.mxu1 %v2263_v47 }
 0x457   : > { %1529 = vmatpush.bf16.msra.mxu2 %v2327_v48  ;;  %1257 = vmatpush.bf16.msra.mxu0 %v2513_v43 }
 0x458   : > { %1245 = vmatpush.bf16.msrb.mxu3 %v2504_v44  ;;  %v2517_v44 = vld [vmem:[%s3526_s8 + $0x14] sm:$0xf] }
 0x45a   : > { %1517 = vmatpush.bf16.msra.mxu1 %v2255_v55  ;;  %v2502_v55 = vld [vmem:[%s3525_s7 + $0x18] sm:$0xff] }
 0x45b   : > { %1530 = vmatpush.bf16.msra.mxu2 %v2319_v56  ;;  %1258 = vmatpush.bf16.msra.mxu0 %v2512_v45  ;;  %v2510_v56 = vld [vmem:[%s3525_s7 + $0x58] sm:$0xff] }
 0x45c   : > { %v2264_v45 = vld [vmem:[%s3526_s8 + $0x18] sm:$0xf0] }
 0x4a9   : > { %v781_v25 = vpop.xlane.xlu2 %780 }
 0x4aa   : > { %v782_v29 = vmul.f32 %v781_v25, %v2943_v38 }
 0x4ac   : > { %v783_v36 = vadd.f32 1e-05, %v782_v29  ;;  %v1346_v29 = vperm.slane %v3232_v27, 0 }
 0x4ae   : > { %2626 = vrsqrt.f32 %v783_v36  ;;  %vm790_vm11 = vweird.f32 %v783_v36 }
 0x4b4   : > { %v2627_v53 = vpop.eup %2626 }
 0x4b5   : > { %v785_v54 = vmul.f32 %v2627_v53, %v783_v36  ;;  %vm791_vm10 = vweird.f32 %v2627_v53 }
 0x4b6   : > { %vm792_vm12 = vmor %vm790_vm11, %vm791_vm10 }
 0x4b7   : > { %v786_v57 = vmul.f32 %v2627_v53, %v785_v54  ;;  %v2511_v54 = vld [vmem:[%s3525_s7 + $0x60] sm:$0xff] }
 0x4b8   : > { %1259 = vmatpush.bf16.msra.mxu0 %v2511_v54  ;;  %v2531_v54 = vld [vmem:[%s3526_s8 + $0x84] sm:$0xf] }
 0x4b9   : > { %v787_v58 = vmul.f32 0.5, %v786_v57  ;;  %v2501_v57 = vld [vmem:[%s3525_s7 + $0x10] sm:$0xff] }
 0x4bb   : > { %v788_v59 = vsub.f32 1.5, %v787_v58  ;;  %v2509_v58 = vld [vmem:[%s3525_s7 + $0x50] sm:$0xff] }
 0x4bc   : > { %1260 = vmatpush.bf16.msra.mxu0 %v2510_v56 }
 0x4bd   : > { %v789_v62 = vmul.f32 %v2627_v53, %v788_v59  ;;  %v2500_v59 = vld [vmem:[%s3525_s7 + $0x8] sm:$0xff] }
 0x4bf   : > { %v793_v3 = vsel %vm792_vm12, %v2627_v53, %v789_v62  ;;  %v2503_v53 = vld [vmem:[%s3525_s7 + $0x20] sm:$0xff] }
 0x4c0   : > { %v794_v4 = vmul.f32 %v793_v3, %v2946_v41  ;;  %v795_v5 = vmul.f32 %v793_v3, %v2948_v42  ;;  %v848_v42 = vld [vmem:[%s440_s22] sm:$0x3]  ;;  %1246 = vmatpush.bf16.msrb.mxu3 %v2503_v53  ;;  %1261 = vmatpush.bf16.msra.mxu0 %v2509_v58  ;;  %v2545_v3 = vld [vmem:[%s3526_s8 + $0xf4] sm:$0xf]  ;;  %v2256_v53 = vld [vmem:[%s3526_s8 + $0x8] sm:$0xf0]  ;;  %s465_s22 = scalar_lea.vmem %s3529_s11, %s2751_s21 }
 0x4c1   : > { %v851_v16 = vperm.slane %v848_v42, 1  ;;  %v850_v17 = vperm.slane %v848_v42, 0  ;;  %v2499_v62 = vld [vmem:[%s3525_s7] sm:$0xff]  ;;  %v2541_v42 = vld [vmem:[%s3526_s8 + $0xd4] sm:$0xf] }
 0x4c2   : > { %v802_v8 = vmul.f32 %v798_v1, %v794_v4  ;;  %v803_v9 = vmul.f32 %v799_v2, %v795_v5  ;;  %v2529_v1 = vld [vmem:[%s3526_s8 + $0x74] sm:$0xf]  ;;  %v2312_v2 = vld [vmem:[%s3526_s8 + $0x78] sm:$0xf0] }
 0x4c3   : > { %v2376_v4 = vld [vmem:[%s3526_s8 + $0xf8] sm:$0xf0]  ;;  %v2315_v5 = vor.u32 %v2529_v1, %v2312_v2  ;;  %v1091_v1 = vld [vmem:[%s3521_s3 + $0xf] sm:$0x3] }
 0x4c4   : > { %v810_v10 = vadd.f32 %v806_v6, %v802_v8  ;;  %v811_v0 = vadd.f32 %v807_v7, %v803_v9  ;;  %1247 = vmatpush.bf16.msrb.mxu3 %v2502_v55  ;;  %1262 = vmatpush.bf16.msra.mxu0 %v2508_v60  ;;  %v2379_v6 = vor.u32 %v2545_v3, %v2376_v4  ;;  %v2527_v7 = vld [vmem:[%s3526_s8 + $0x64] sm:$0xf]  ;;  %v2304_v8 = vld [vmem:[%s3526_s8 + $0x68] sm:$0xf0]  ;;  %v1099_v3 = vld [vmem:[%s3521_s3 + $0x11] sm:$0x3] }
 0x4c5   : > { %v2543_v9 = vld [vmem:[%s3526_s8 + $0xe4] sm:$0xf]  ;;  %v2320_v55 = vld [vmem:[%s3526_s8 + $0x88] sm:$0xf0]  ;;  %v1093_v4 = vperm.slane %v1091_v1, 0 }
 0x4c6   : > { %v812_v11 = vmax.f32 %v810_v10, 0.0  ;;  %v813_v12 = vmax.f32 %v811_v0, 0.0  ;;  %v2307_v10 = vor.u32 %v2527_v7, %v2304_v8  ;;  %v2368_v0 = vld [vmem:[%s3526_s8 + $0xe8] sm:$0xf0] }
 0x4c8   : > { %v3215_v13 = vpack.c.bf16 %v812_v11, %v812_v11  ;;  %v3217_v14 = vpack.c.bf16 %v813_v12, %v813_v12  ;;  %1248 = vmatpush.bf16.msrb.mxu3 %v2501_v57  ;;  %1263 = vmatpush.bf16.msra.mxu0 %v2507_v63  ;;  %v2371_v11 = vor.u32 %v2543_v9, %v2368_v0  ;;  %v2525_v12 = vld [vmem:[%s3526_s8 + $0x54] sm:$0xf]  ;;  %v1101_v9 = vperm.slane %v1099_v3, 0 }
 0x4ca   : > { %1022 = vmatmul.bf16.vlgmr.msra.gmra.mxu3 %v3215_v13  ;;  %1035 = vmatmul.bf16.vlgmr.msrb.gmra.mxu0 %v3217_v14 }
 0x4cb   : > { %1048 = vmatmul.bf16.vlgmr.msrb.gmra.mxu1 %v3215_v13  ;;  %1061 = vmatmul.bf16.vlgmr.msrb.gmra.mxu2 %v3217_v14 }
 0x4cc   : > { %1249 = vmatpush.bf16.msrb.mxu3 %v2500_v59  ;;  %1549 = vmatpush.bf16.msrb.mxu0 %v2379_v6  ;;  %v2323_v59 = vor.u32 %v2531_v54, %v2320_v55  ;;  %v2556_v54 = vld [vmem:[%s3527_s9 + $0x48] sm:$0xff]  ;;  %v2547_v55 = vld [vmem:[%s3527_s9] sm:$0xff] }
 0x4d0   : > { %1250 = vmatpush.bf16.msrb.mxu3 %v2499_v62  ;;  %1550 = vmatpush.bf16.msrb.mxu0 %v2371_v11 }
 0x4d4   : > { %1536 = vmatpush.bf16.msra.mxu3 %v2315_v5  ;;  %v1094_v5 = vperm.slane %v1091_v1, 1 }
 0x4d8   : > { %1537 = vmatpush.bf16.msra.mxu3 %v2307_v10  ;;  %v1102_v10 = vperm.slane %v1099_v3, 1 }
 0x4db   : > { %1518 = vmatmul.bf16.vlgmr.msra.gmra.mxu1 %v3215_v13  ;;  %1531 = vmatmul.bf16.vlgmr.msra.gmra.mxu2 %v3217_v14 }
 0x547   : > { %v1036_v41 = vpop.f32.mrf.mxu0 }
 0x548   : > { %v1049_v15 = vpop.f32.mrf.mxu1 }
 0x549   : > { %v1050_v19 = vadd.f32 %v1049_v15, %v851_v16  ;;  %v2360_v16 = vld [vmem:[%s3526_s8 + $0xd8] sm:$0xf0] }
 0x54d   : > { %v1023_v18 = vpop.f32.mrf.mxu3 }
 0x54e   : > { %v1024_v20 = vadd.f32 %v1023_v18, %v850_v17  ;;  %v1062_v21 = vpop.f32.mrf.mxu2  ;;  %v2523_v17 = vld [vmem:[%s3526_s8 + $0x44] sm:$0xf]  ;;  %v2363_v18 = vor.u32 %v2541_v42, %v2360_v16 }
 0x54f   : > { %v1038_v22 = vpop.f32.mrf.mxu0  ;;  %v1063_v24 = vadd.f32 %v1062_v21, %v1050_v19  ;;  %v2288_v19 = vld [vmem:[%s3526_s8 + $0x48] sm:$0xf0] }
 0x550   : > { %v1037_v23 = vadd.f32 %v1036_v41, %v1024_v20  ;;  %v1051_v25 = vpop.f32.mrf.mxu1  ;;  %v2296_v41 = vld [vmem:[%s3526_s8 + $0x58] sm:$0xf0]  ;;  %v2539_v20 = vld [vmem:[%s3526_s8 + $0xc4] sm:$0xf]  ;;  %v2352_v21 = vld [vmem:[%s3526_s8 + $0xc8] sm:$0xf0]  ;;  %1551 = vmatpush.bf16.msrb.mxu0 %v2363_v18  ;;  %v2291_v22 = vor.u32 %v2523_v17, %v2288_v19 }
 0x551   : > { %v2299_v15 = vor.u32 %v2525_v12, %v2296_v41  ;;  %v2521_v25 = vld [vmem:[%s3526_s8 + $0x34] sm:$0xf] }
 0x552   : > { %v1066_v26 = vadd.f32 %v1063_v24, %v1037_v23 }
 0x553   : > { %1538 = vmatpush.bf16.msra.mxu3 %v2299_v15 }
 0x554   : > { %1067 = vadd.xlane.f32.xlu2 %v1066_v26  ;;  %v2280_v26 = vld [vmem:[%s3526_s8 + $0x38] sm:$0xf0] }
 0x555   : > { %v1025_v28 = vpop.f32.mrf.mxu3 }
 0x556   : > { %v1064_v30 = vpop.f32.mrf.mxu2  ;;  %v2537_v28 = vld [vmem:[%s3526_s8 + $0xb4] sm:$0xf] }
 0x557   : > { %1539 = vmatpush.bf16.msra.mxu3 %v2291_v22  ;;  %v2283_v30 = vor.u32 %v2521_v25, %v2280_v26 }
 0x558   : > { %v1519_v31 = vpop.f32.mrf.mxu1 }
 0x559   : > { %v1520_v32 = vadd.f32 %v1519_v31, %v1346_v29  ;;  %v2344_v31 = vld [vmem:[%s3526_s8 + $0xb8] sm:$0xf0] }
 0x55b   : > { %1540 = vmatpush.bf16.msra.mxu3 %v2283_v30 }
 0x55e   : > { %v1532_v33 = vpop.f32.mrf.mxu2 }
 0x55f   : > { %v3235_v34 = vadd.f32 %v1532_v33, %v1520_v32  ;;  %v2519_v32 = vld [vmem:[%s3526_s8 + $0x24] sm:$0xf]  ;;  %v2272_v33 = vld [vmem:[%s3526_s8 + $0x28] sm:$0xf0] }
 0x560   : > { %v1521_v35 = vpop.f32.mrf.mxu1  ;;  %v2275_v40 = vor.u32 %v2519_v32, %v2272_v33 }
 0x561   : > { %v2347_v35 = vor.u32 %v2537_v28, %v2344_v31 }
 0x562   : > { %1541 = vmatpush.bf16.msra.mxu3 %v2275_v40  ;;  %v2561_v40 = vld [vmem:[%s3527_s9 + $0x70] sm:$0xff] }
 0x566   : > { %v1534_v36 = vpop.f32.mrf.mxu2 }
 0x567   : > { %v2535_v36 = vld [vmem:[%s3526_s8 + $0xa4] sm:$0xf] }
 0x568   : > { %v2339_v43 = vor.u32 %v2535_v36, %v2336_v37  ;;  %v2554_v37 = vld [vmem:[%s3527_s9 + $0x38] sm:$0xff] }
 0x569   : > { %1739 = vmatpush.bf16.msrb.mxu1 %v2554_v37 }
 0x5c7   : > { %v1068_v46 = vpop.xlane.xlu2 %1067 }
 0x5c8   : > { %v1069_v47 = vmul.f32 %v1068_v46, %v2943_v38  ;;  %v2533_v46 = vld [vmem:[%s3526_s8 + $0x94] sm:$0xf] }
 0x5ca   : > { %v3256_v48 = vsub.f32 %v1037_v23, %v1069_v47  ;;  %v3258_v49 = vsub.f32 %v1063_v24, %v1069_v47  ;;  %v2355_v23 = vor.u32 %v2539_v20, %v2352_v21  ;;  %v2328_v47 = vld [vmem:[%s3526_s8 + $0x98] sm:$0xf0] }
 0x5cc   : > { %v1072_v50 = vmul.f32 %v3256_v48, %v3256_v48  ;;  %v1073_v51 = vmul.f32 %v3258_v49, %v3258_v49  ;;  %1552 = vmatpush.bf16.msrb.mxu0 %v2355_v23 }
 0x5ce   : > { %v1074_v52 = vadd.f32 %v1073_v51, %v1072_v50  ;;  %v2267_v50 = vor.u32 %v2517_v44, %v2264_v45  ;;  %v2331_v51 = vor.u32 %v2533_v46, %v2328_v47  ;;  %v2560_v44 = vld [vmem:[%s3527_s9 + $0x68] sm:$0xff]  ;;  %v2551_v45 = vld [vmem:[%s3527_s9 + $0x20] sm:$0xff]  ;;  %v2550_v47 = vld [vmem:[%s3527_s9 + $0x18] sm:$0xff] }
 0x5cf   : > { %v2559_v46 = vld [vmem:[%s3527_s9 + $0x60] sm:$0xff] }
 0x5d0   : > { %1075 = vadd.xlane.f32.xlu2 %v1074_v52  ;;  %1553 = vmatpush.bf16.msrb.mxu0 %v2347_v35  ;;  %v2515_v52 = vld [vmem:[%s3526_s8 + $0x4] sm:$0xf] }
 0x5d1   : > { %1542 = vmatpush.bf16.msra.mxu3 %v2267_v50  ;;  %v2259_v58 = vor.u32 %v2515_v52, %v2256_v53  ;;  %v2558_v50 = vld [vmem:[%s3527_s9 + $0x58] sm:$0xff]  ;;  %v2557_v52 = vld [vmem:[%s3527_s9 + $0x50] sm:$0xff]  ;;  %v2548_v53 = vld [vmem:[%s3527_s9 + $0x8] sm:$0xff] }
 0x5d4   : > { %1554 = vmatpush.bf16.msrb.mxu0 %v2339_v43  ;;  %v2552_v43 = vld [vmem:[%s3527_s9 + $0x28] sm:$0xff] }
 0x5d5   : > { %1543 = vmatpush.bf16.msra.mxu3 %v2259_v58 }
 0x5d8   : > { %1555 = vmatpush.bf16.msrb.mxu0 %v2331_v51  ;;  %v2549_v51 = vld [vmem:[%s3527_s9 + $0x10] sm:$0xff] }
 0x5dc   : > { %1556 = vmatpush.bf16.msrb.mxu0 %v2323_v59 }
 0x643   : > { %v1076_v24 = vpop.xlane.xlu2 %1075 }
 0x644   : > { %v1077_v29 = vmul.f32 %v1076_v24, %v2943_v38  ;;  %v1347_v24 = vperm.slane %v3232_v27, 1 }
 0x646   : > { %v1078_v39 = vadd.f32 1e-05, %v1077_v29 }
 0x648   : > { %2628 = vrsqrt.f32 %v1078_v39  ;;  %vm1085_vm14 = vweird.f32 %v1078_v39 }
 0x64e   : > { %v2629_v56 = vpop.eup %2628 }
 0x64f   : > { %v1080_v57 = vmul.f32 %v2629_v56, %v1078_v39  ;;  %vm1086_vm13 = vweird.f32 %v2629_v56  ;;  %v2562_v39 = vld [vmem:[%s3527_s9 + $0x78] sm:$0xff] }
 0x650   : > { %vm1087_vm15 = vmor %vm1085_vm14, %vm1086_vm13  ;;  %1752 = vmatpush.bf16.msrb.mxu2 %v2562_v39  ;;  %v2608_v39 = vld [vmem:[%s3521_s3 + $0x14] ss:$0 sm:$0xff] }
 0x651   : > { %v1081_v60 = vmul.f32 %v2629_v56, %v1080_v57 }
 0x653   : > { %v1082_v62 = vmul.f32 0.5, %v1081_v60 }
 0x654   : > { %1753 = vmatpush.bf16.msrb.mxu2 %v2561_v40 }
 0x655   : > { %v1083_v63 = vsub.f32 1.5, %v1082_v62 }
 0x657   : > { %v1084_v2 = vmul.f32 %v2629_v56, %v1083_v63 }
 0x658   : > { %1754 = vmatpush.bf16.msrb.mxu2 %v2560_v44  ;;  %v2609_v44 = vld [vmem:[%s3521_s3 + $0x15] ss:$0 sm:$0xff] }
 0x659   : > { %v1088_v6 = vsel %vm1087_vm15, %v2629_v56, %v1084_v2  ;;  %v2555_v56 = vld [vmem:[%s3527_s9 + $0x40] sm:$0xff] }
 0x65a   : > { %v1090_v7 = vmul.f32 %v1088_v6, %v3258_v49  ;;  %v1089_v8 = vmul.f32 %v1088_v6, %v3256_v48  ;;  %v2606_v48 = vld [vmem:[%s3521_s3 + $0x13] ss:$0 sm:$0xff] }
 0x65c   : > { %v1097_v0 = vmul.f32 %v1093_v4, %v1089_v8  ;;  %v1098_v11 = vmul.f32 %v1094_v5, %v1090_v7  ;;  %1755 = vmatpush.bf16.msrb.mxu2 %v2559_v46  ;;  %v1587_v7 = vld [vmem:[%s3521_s3 + $0x18] sm:$0x3] }
 0x65e   : > { %v1105_v12 = vadd.f32 %v1101_v9, %v1097_v0  ;;  %v1106_v41 = vadd.f32 %v1102_v10, %v1098_v11  ;;  %v1589_v9 = vperm.slane %v1587_v7, 0  ;;  %v1590_v10 = vperm.slane %v1587_v7, 1 }
 0x660   : > { %v1107_v42 = vmax.f32 %v1105_v12, 0.0  ;;  %v1108_v15 = vmax.f32 %v1106_v41, 0.0  ;;  %1756 = vmatpush.bf16.msrb.mxu2 %v2558_v50 }
 0x662   : > { %v1141_v16 = vpack.c.bf16 %v1107_v42, %v1107_v42  ;;  %v1142_v17 = vpack.c.bf16 %v1108_v15, %v1108_v15 }
 0x664   : > { %1251 = vmatmul.bf16.vlgmr.msrb.gmra.mxu3 %v1141_v16  ;;  %1264 = vmatmul.bf16.vlgmr.msra.gmra.mxu0 %v1142_v17 }
 0x665   : > { %1757 = vmatpush.bf16.msrb.mxu2 %v2557_v52 }
 0x669   : > { %1758 = vmatpush.bf16.msrb.mxu2 %v2556_v54 }
 0x66d   : > { %1759 = vmatpush.bf16.msrb.mxu2 %v2555_v56  ;;  %v2611_v56 = vld [vmem:[%s3521_s3 + $0x17] ss:$0 sm:$0xff] }
 0x674   : > { %1544 = vmatmul.bf16.vlgmr.msra.gmra.mxu3 %v3215_v13  ;;  %1557 = vmatmul.bf16.vlgmr.msrb.gmra.mxu0 %v3217_v14 }
 0x6e1   : > { %v1265_v18 = vpop.f32.mrf.mxu0 }
 0x6e7   : > { %v1252_v49 = vpop.f32.mrf.mxu3 }
 0x6e8   : > { %v1253_v19 = vadd.f32 %v2606_v48, %v1252_v49 }
 0x6e9   : > { %v1267_v20 = vpop.f32.mrf.mxu0 }
 0x6ea   : > { %v1266_v21 = vadd.f32 %v1265_v18, %v1253_v19 }
 0x6ef   : > { %v1254_v22 = vpop.f32.mrf.mxu3 }
 0x6f0   : > { %v2607_v22 = vld [vmem:[%s3521_s3 + $0x1c] ss:$0 sm:$0xff] }
 0x6f1   : > { %v1558_v23 = vpop.f32.mrf.mxu0 }
 0x6f7   : > { %v1545_v25 = vpop.f32.mrf.mxu3 }
 0x6f8   : > { %v1546_v26 = vadd.f32 %v1545_v25, %v1347_v24 }
 0x6f9   : > { %v1560_v28 = vpop.f32.mrf.mxu0 }
 0x6fa   : > { %v1559_v29 = vadd.f32 %v1558_v23, %v1546_v26 }
 0x6fc   : > { %v1562_v13 = vadd.f32 %v1559_v29, %v3235_v34 }
 0x6fe   : > { %1563 = vadd.xlane.f32.xlu2 %v1562_v13 }
 0x6ff   : > { %v1547_v14 = vpop.f32.mrf.mxu3 }
 0x771   : > { %v1564_v30 = vpop.xlane.xlu2 %1563 }
 0x772   : > { %v1565_v31 = vmul.f32 %v1564_v30, %v2943_v38 }
 0x774   : > { %v3408_v32 = vsub.f32 %v3235_v34, %v1565_v31  ;;  %v1567_v33 = vsub.f32 %v1559_v29, %v1565_v31  ;;  %v2553_v34 = vld [vmem:[%s3527_s9 + $0x30] sm:$0xff] }
 0x775   : > { %1740 = vmatpush.bf16.msrb.mxu1 %v2553_v34 }
 0x776   : > { %v1568_v35 = vmul.f32 %v3408_v32, %v3408_v32  ;;  %v1569_v36 = vmul.f32 %v1567_v33, %v1567_v33 }
 0x778   : > { %v1570_v27 = vadd.f32 %v1569_v36, %v1568_v35 }
 0x779   : > { %1741 = vmatpush.bf16.msrb.mxu1 %v2552_v43 }
 0x77a   : > { %1571 = vadd.xlane.f32.xlu1 %v1570_v27 }
 0x77d   : > { %1742 = vmatpush.bf16.msrb.mxu1 %v2551_v45 }
 0x781   : > { %1743 = vmatpush.bf16.msrb.mxu1 %v2550_v47 }
 0x782   : > { %1269 = vadd.xlane.f32.xlu1 %v1266_v21 }
 0x785   : > { %1744 = vmatpush.bf16.msrb.mxu1 %v2549_v51  ;;  %v2610_v51 = vld [vmem:[%s3521_s3 + $0x16] ss:$0 sm:$0xff] }
 0x789   : > { %1745 = vmatpush.bf16.msrb.mxu1 %v2548_v53 }
 0x78d   : > { %1746 = vmatpush.bf16.msrb.mxu1 %v2547_v55 }
 0x7ed   : > { %v1572_v57 = vpop.xlane.xlu1 %1571 }
 0x7ee   : > { %v1573_v58 = vmul.f32 %v1572_v57, %v2943_v38  ;;  %v1595_v38 = vld [vmem:[%s3521_s3 + $0x1a] sm:$0x3] }
 0x7ef   : > { %v1597_v41 = vperm.slane %v1595_v38, 0  ;;  %v1598_v42 = vperm.slane %v1595_v38, 1 }
 0x7f0   : > { %v1574_v59 = vadd.f32 1e-05, %v1573_v58 }
 0x7f2   : > { %2630 = vrsqrt.f32 %v1574_v59  ;;  %vm1581_vm1 = vweird.f32 %v1574_v59 }
 0x7f5   : > { %v1270_v60 = vpop.xlane.xlu1 %1269 }
 0x7f6   : > { %v1271_v62 = vmul.f32 %v1270_v60, %v2793_v61 }
 0x7f8   : > { %v2631_v63 = vpop.eup %2630  ;;  %v1272_v1 = vsub.f32 %v1266_v21, %v1271_v62 }
 0x7f9   : > { %v1576_v2 = vmul.f32 %v2631_v63, %v1574_v59  ;;  %vm1582_vm0 = vweird.f32 %v2631_v63 }
 0x7fa   : > { %v1273_v3 = vmul.f32 %v1272_v1, %v1272_v1  ;;  %vm1583_vm2 = vmor %vm1581_vm1, %vm1582_vm0 }
 0x7fb   : > { %v1577_v4 = vmul.f32 %v2631_v63, %v1576_v2  ;;  %v2612_v2 = vld [vmem:[%s3521_s3 + $0x1d] ss:$0 sm:$0xff] }
 0x7fc   : > { %1274 = vadd.xlane.f32.xlu0 %v1273_v3 }
 0x7fd   : > { %v1578_v5 = vmul.f32 0.5, %v1577_v4 }
 0x7ff   : > { %v1579_v6 = vsub.f32 1.5, %v1578_v5  ;;  %v2613_v5 = vld [vmem:[%s3521_s3 + $0x1e] ss:$0 sm:$0xff] }
 0x801   : > { %v1580_v8 = vmul.f32 %v2631_v63, %v1579_v6 }
 0x803   : > { %v1584_v0 = vsel %vm1583_vm2, %v2631_v63, %v1580_v8  ;;  %v2614_v8 = vld [vmem:[%s3521_s3 + $0x1f] ss:$0 sm:$0xff] }
 0x804   : > { %v1585_v11 = vmul.f32 %v1584_v0, %v3408_v32  ;;  %v1586_v12 = vmul.f32 %v1584_v0, %v1567_v33 }
 0x806   : > { %v1593_v15 = vmul.f32 %v1589_v9, %v1585_v11  ;;  %v1594_v16 = vmul.f32 %v1590_v10, %v1586_v12  ;;  %v2615_v10 = vld [vmem:[%s3521_s3 + $0x20] ss:$0 sm:$0xff] }
 0x808   : > { %v1601_v17 = vadd.f32 %v1597_v41, %v1593_v15  ;;  %v1602_v18 = vadd.f32 %v1598_v42, %v1594_v16 }
 0x80a   : > { %v1603_v48 = vmax.f32 %v1601_v17, 0.0  ;;  %v1604_v49 = vmax.f32 %v1602_v18, 0.0 }
 0x80c   : > { %v1637_v19 = vpack.c.bf16 %v1603_v48, %v1603_v48  ;;  %v1638_v20 = vpack.c.bf16 %v1604_v49, %v1604_v49 }
 0x80e   : > { %1747 = vmatmul.bf16.vlgmr.msrb.gmra.mxu1 %v1637_v19  ;;  %1760 = vmatmul.bf16.vlgmr.msrb.gmra.mxu2 %v1638_v20 }
 0x86f   : > { %v1275_v29 = vpop.xlane.xlu0 %1274 }
 0x870   : > { %v1276_v13 = vmul.f32 %v1275_v29, %v2793_v61 }
 0x872   : > { %v1277_v14 = vadd.f32 1e-05, %v1276_v13 }
 0x874   : > { %2632 = vrsqrt.f32 %v1277_v14  ;;  %vm1284_vm4 = vweird.f32 %v1277_v14 }
 0x87a   : > { %v2633_v30 = vpop.eup %2632 }
 0x87b   : > { %v1279_v31 = vmul.f32 %v2633_v30, %v1277_v14  ;;  %vm1285_vm3 = vweird.f32 %v2633_v30 }
 0x87c   : > { %vm1286_vm5 = vmor %vm1284_vm4, %vm1285_vm3 }
 0x87d   : > { %v1280_v32 = vmul.f32 %v2633_v30, %v1279_v31 }
 0x87f   : > { %v1281_v33 = vmul.f32 0.5, %v1280_v32 }
 0x881   : > { %v1282_v35 = vsub.f32 1.5, %v1281_v33 }
 0x883   : > { %v1283_v36 = vmul.f32 %v2633_v30, %v1282_v35 }
 0x885   : > { %v1287_v27 = vsel %vm1286_vm5, %v2633_v30, %v1283_v36 }
 0x886   : > { %v1288_v37 = vmul.f32 %v1287_v27, %v1272_v1 }
 0x888   : > { %v1293_v43 = vmul.f32 %v2608_v39, %v1288_v37 }
 0x88a   : > { %v1298_v47 = vadd.f32 %v2609_v44, %v1293_v43 }
 0x88b   : > { %v1748_v21 = vpop.f32.mrf.mxu1 }
 0x88c   : > { %v1749_v23 = vadd.f32 %v2607_v22, %v1748_v21  ;;  %v1299_v50 = vmax.f32 %v1298_v47, 0.0 }
 0x88e   : > { %v1304_v52 = vmul.f32 %v2610_v51, %v1299_v50 }
 0x891   : > { %v1761_v24 = vpop.f32.mrf.mxu2 }
 0x892   : > { %v1762_v25 = vadd.f32 %v1761_v24, %v1749_v23 }
 0x893   : > { %v1750_v26 = vpop.f32.mrf.mxu1 }
 0x894   : > { %1765 = vadd.xlane.f32.xlu2 %v1762_v25 }
 0x899   : > { %v1763_v28 = vpop.f32.mrf.mxu2 }
 0x907   : > { %v1766_v34 = vpop.xlane.xlu2 %1765 }
 0x908   : > { %v1767_v40 = vmul.f32 %v1766_v34, %v2793_v61 }
 0x90a   : > { %v1768_v45 = vsub.f32 %v1762_v25, %v1767_v40 }
 0x90c   : > { %v1769_v46 = vmul.f32 %v1768_v45, %v1768_v45 }
 0x90e   : > { %1770 = vadd.xlane.f32.xlu2 %v1769_v46 }
 0x916   : > { %1305 = vadd.xlane.f32.xlu2 %v1304_v52 }
 0x981   : > { %v1771_v53 = vpop.xlane.xlu2 %1770 }
 0x982   : > { %v1772_v54 = vmul.f32 %v1771_v53, %v2793_v61 }
 0x984   : > { %v1773_v55 = vadd.f32 1e-05, %v1772_v54 }
 0x986   : > { %2634 = vrsqrt.f32 %v1773_v55  ;;  %vm1780_vm8 = vweird.f32 %v1773_v55 }
 0x989   : > { %v1306_v57 = vpop.xlane.xlu2 %1305 }
 0x98a   : > { %v1311_v58 = vadd.f32 %v2611_v56, %v1306_v57 }
 0x98c   : > { %v2635_v59 = vpop.eup %2634  ;;  %1828 = vst.msk [vmem:[%s458_s17] sm:$0xff] %vm1827_vm6, %v1311_v58 }
 0x98d   : > { %v1775_v60 = vmul.f32 %v2635_v59, %v1773_v55  ;;  %vm1781_vm7 = vweird.f32 %v2635_v59 }
 0x98e   : > { %vm1782_vm9 = vmor %vm1780_vm8, %vm1781_vm7 }
 0x98f   : > { %v1776_v62 = vmul.f32 %v2635_v59, %v1775_v60 }
 0x991   : > { %v1777_v63 = vmul.f32 0.5, %v1776_v62 }
 0x993   : > { %v1778_v61 = vsub.f32 1.5, %v1777_v63 }
 0x995   : > { %v1779_v1 = vmul.f32 %v2635_v59, %v1778_v61 }
 0x997   : > { %v1783_v3 = vsel %vm1782_vm9, %v2635_v59, %v1779_v1 }
 0x998   : > { %v1784_v4 = vmul.f32 %v1783_v3, %v1768_v45 }
 0x99a   : > { %v1789_v6 = vmul.f32 %v2612_v2, %v1784_v4 }
 0x99c   : > { %v1794_v7 = vadd.f32 %v2613_v5, %v1789_v6 }
 0x99e   : > { %v1795_v38 = vmax.f32 %v1794_v7, 0.0 }
 0x9a0   : > { %v1800_v9 = vmul.f32 %v2614_v8, %v1795_v38 }
 0x9a2   : > { %1801 = vadd.xlane.f32.xlu1 %v1800_v9 }
 0xa15   : > { %v1802_v0 = vpop.xlane.xlu1 %1801 }
 0xa16   : > { %v1807_v11 = vadd.f32 %v2615_v10, %v1802_v0 }
 0xa18   : > { %v2444_v12 = vmul.f32 -1.442695, %v1807_v11 }
 0xa1a   : > { %2636 = vpow2.f32 %v2444_v12 }
 0xa20   : > { %v2637_v41 = vpop.eup %2636 }
 0xa21   : > { %v1811_v42 = vadd.f32 1.0, %v2637_v41 }
 0xa23   : > { %2638 = vrcp.f32 %v1811_v42  ;;  %v1823_v18 = vand.u32 2147483648, %v1811_v42  ;;  %v1821_v49 = vand.u32 2147483647, %v1811_v42  ;;  %vm1817_vm11 = vweird.f32 %v1811_v42 }
 0xa25   : > { %v1824_v20 = vor.u32 1.1754944e-38, %v1823_v18  ;;  %vm1822_vm13 = vcmp.eq.f32.partialorder %v1821_v49, 8.507059e+37 }
 0xa29   : > { %v2639_v15 = vpop.eup %2638 }
 0xa2a   : > { %v1813_v16 = vmul.f32 %v2639_v15, %v1811_v42  ;;  %vm1818_vm10 = vweird.f32 %v2639_v15 }
 0xa2b   : > { %vm1819_vm12 = vmor %vm1817_vm11, %vm1818_vm10 }
 0xa2c   : > { %v1814_v17 = vsub.f32 1.0, %v1813_v16 }
 0xa2e   : > { %v1815_v48 = vmul.f32 %v2639_v15, %v1814_v17 }
 0xa30   : > { %v1816_v19 = vadd.f32 %v2639_v15, %v1815_v48 }
 0xa32   : > { %v1820_v21 = vsel %vm1819_vm12, %v2639_v15, %v1816_v19 }
 0xa33   : > { %v1825_v22 = vsel %vm1822_vm13, %v1824_v20, %v1820_v21 }
 0xa34   : > { %1829 = vst.msk [vmem:[%s465_s22] sm:$0xff] %vm1827_vm6, %v1825_v22 }
 0xa35 PF: > { %s22_s19 = sadd.s32 1, %s2662_s19   ;;  %s3530_s17 = smov %s2658_s18 }
 0xa36   : > { %p19_p5 = scmp.ge.s32.totalorder %s22_s19, 4   ;;  %s3531_s18 = smov %s3533_s20 }
 0xa38   :  { %21 = sbr.rel (!%p19_p5) target bundleno = 2 (0x2), region = 108 }

// kernel: forward.2
= control target key start
LH: loop header
LB: loop body
LE: loop exit
PB: predicated region body
PF: predicated region fallthrough
CT: control target
= control target key end

     0   :  { %s3979_s21 = smov 0   ;;  %s6442_s0 = inlined_call_operand.vmem [shape: f32[2,5,16], index: 0, kind: input, shape index: {}]   ;;  %s6443_s1 = inlined_call_operand.vmem [shape: f32[2048,1], index: 1, kind: input, shape index: {}]   ;;  %s6444_s2 = inlined_call_operand.vmem [shape: bf16[64,64], index: 2, kind: input, shape index: {}]   ;;  %s6445_s3 = inlined_call_operand.vmem [shape: bf16[64,64], index: 3, kind: input, shape index: {}]   ;;  %s6446_s4 = inlined_call_operand.vmem [shape: bf16[128,64], index: 4, kind: input, shape index: {}]   ;;  %s6447_s5 = inlined_call_operand.vmem [shape: bf16[256,128], index: 5, kind: input, shape index: {}]   ;;  %s6448_s6 = inlined_call_operand.vmem [shape: f32[2,256,1], index: 6, kind: output, shape index: {}]  }
   0x1 LB: > { %s3706_s22 = sadd.s32 4294967295, %s3938_s21   ;;  %p3710_p0 = scmp.ge.s32.totalorder %s3938_s21, 1  ;;  %s3938_s21 = sphi %s3979_s21, %s16_s21  }
   0x2   : > { %p211_p1 = scmp.lt.s32.totalorder %s3938_s21, 3 }
   0x4   : > { %p212_p2 = pnand %p3710_p0, %p211_p1 }
   0x6   : > { %215 = sbr.rel (%p212_p2) target bundleno = 3284 (0xcd4), region = 44 }
   0xb   : > { %v255_v0 = vld [vmem:[%s6443_s1 + $0x20] sm:$0xff]  ;;  %v253_v1 = vld [vmem:[%s6443_s1 + $0x10] sm:$0xff]  ;;  %v3940_v3 = vmov 0   ;;  %v256_v4 = vld [vmem:[%s6443_s1 + $0x28] sm:$0xff]  ;;  %p240_p3 = scmp.lt.s32.totalorder %s3706_s22, 1  ;;  %vm624_vm0 = vcmask 130048  }
   0xc   : > { %v251_v2 = vld [vmem:[%s6443_s1] sm:$0xff]  ;;  %3915 = vset.pattern.permute.xlu2 %v3940_v3  ;;  %3914 = vset.pattern.permute.xlu1 %v3940_v3  ;;  %v254_v5 = vld [vmem:[%s6443_s1 + $0x18] sm:$0xff]  ;;  %v252_v6 = vld [vmem:[%s6443_s1 + $0x8] sm:$0xff]  ;;  %vm943_vm5 = vcmask 523264  }
   0xd   : > { %3913 = vset.pattern.permute.xlu0 %v3940_v3  ;;  %281 = vperm.xlu2 %3915, %v255_v0   ;;  %v308_v7 = vld [vmem:[%s6443_s1 + $0x40] sm:$0xff]  ;;  %v258_v8 = vld [vmem:[%s6443_s1 + $0x38] sm:$0xff]  ;;  %v257_v9 = vld [vmem:[%s6443_s1 + $0x30] sm:$0xff]  ;;  %s6609_s22 = smov (!%p240_p3, %s3706_s22), 1 }
   0xe   : > { %271 = vperm.xlu1 %3914, %v253_v1   ;;  %261 = vperm.xlu0 %3913, %v251_v2   ;;  %v311_v10 = vld [vmem:[%s6443_s1 + $0x58] sm:$0xff]  ;;  %v310_v11 = vld [vmem:[%s6443_s1 + $0x50] sm:$0xff]  ;;  %v309_v12 = vld [vmem:[%s6443_s1 + $0x48] sm:$0xff]  ;;  %s3711_s7 = sshll.u32 %s6609_s22, 3 }
   0xf   : > { %v314_v13 = vld [vmem:[%s6443_s1 + $0x70] sm:$0xff]  ;;  %v313_v14 = vld [vmem:[%s6443_s1 + $0x68] sm:$0xff]  ;;  %v312_v15 = vld [vmem:[%s6443_s1 + $0x60] sm:$0xff]  ;;  %s243_s10 = scalar_lea.vmem %s6442_s0, %s3711_s7  ;;  %s3860_s7 = sshll.u32 %s6609_s22, 8 }
  0x10   : > { %v374_v16 = vld [vmem:[%s6443_s1 + $0x88] sm:$0xff]  ;;  %v373_v17 = vld [vmem:[%s6443_s1 + $0x80] sm:$0xff]  ;;  %v315_v18 = vld [vmem:[%s6443_s1 + $0x78] sm:$0xff] }
  0x11   : > { %v377_v19 = vld [vmem:[%s6443_s1 + $0xa0] sm:$0xff]  ;;  %v376_v20 = vld [vmem:[%s6443_s1 + $0x98] sm:$0xff]  ;;  %v375_v21 = vld [vmem:[%s6443_s1 + $0x90] sm:$0xff] }
  0x12   : > { %v380_v22 = vld [vmem:[%s6443_s1 + $0xb8] sm:$0xff]  ;;  %v379_v23 = vld [vmem:[%s6443_s1 + $0xb0] sm:$0xff]  ;;  %v378_v24 = vld [vmem:[%s6443_s1 + $0xa8] sm:$0xff] }
  0x13   : > { %v440_v25 = vld [vmem:[%s6443_s1 + $0xd0] sm:$0xff]  ;;  %v439_v26 = vld [vmem:[%s6443_s1 + $0xc8] sm:$0xff]  ;;  %v438_v27 = vld [vmem:[%s6443_s1 + $0xc0] sm:$0xff] }
  0x14   : > { %v443_v28 = vld [vmem:[%s6443_s1 + $0xe8] sm:$0xff]  ;;  %v442_v29 = vld [vmem:[%s6443_s1 + $0xe0] sm:$0xff]  ;;  %v441_v30 = vld [vmem:[%s6443_s1 + $0xd8] sm:$0xff] }
  0x15   : > { %286 = vperm.xlu2 %3915, %v256_v4   ;;  %v503_v31 = vld [vmem:[%s6443_s1 + $0x100] sm:$0xff]  ;;  %v445_v32 = vld [vmem:[%s6443_s1 + $0xf8] sm:$0xff]  ;;  %v444_v33 = vld [vmem:[%s6443_s1 + $0xf0] sm:$0xff] }
  0x16   : > { %276 = vperm.xlu1 %3914, %v254_v5   ;;  %266 = vperm.xlu0 %3913, %v252_v6   ;;  %v506_v34 = vld [vmem:[%s6443_s1 + $0x118] sm:$0xff]  ;;  %v505_v35 = vld [vmem:[%s6443_s1 + $0x110] sm:$0xff]  ;;  %v504_v36 = vld [vmem:[%s6443_s1 + $0x108] sm:$0xff] }
  0x17   : > { %v509_v38 = vld [vmem:[%s6443_s1 + $0x130] sm:$0xff]  ;;  %v508_v39 = vld [vmem:[%s6443_s1 + $0x128] sm:$0xff]  ;;  %v507_v40 = vld [vmem:[%s6443_s1 + $0x120] sm:$0xff] }
  0x18   : > { %v569_v42 = vld [vmem:[%s6443_s1 + $0x148] sm:$0xff]  ;;  %v568_v43 = vld [vmem:[%s6443_s1 + $0x140] sm:$0xff]  ;;  %v510_v44 = vld [vmem:[%s6443_s1 + $0x138] sm:$0xff] }
  0x19   : > { %v572_v46 = vld [vmem:[%s6443_s1 + $0x160] sm:$0xff]  ;;  %v571_v47 = vld [vmem:[%s6443_s1 + $0x158] sm:$0xff]  ;;  %v570_v48 = vld [vmem:[%s6443_s1 + $0x150] sm:$0xff] }
  0x1a   : > { %v575_v52 = vld [vmem:[%s6443_s1 + $0x178] sm:$0xff]  ;;  %v574_v53 = vld [vmem:[%s6443_s1 + $0x170] sm:$0xff]  ;;  %v573_v54 = vld [vmem:[%s6443_s1 + $0x168] sm:$0xff] }
  0x1d   : > { %318 = vperm.xlu2 %3915, %v308_v7  }
  0x1e   : > { %296 = vperm.xlu1 %3914, %v258_v8   ;;  %291 = vperm.xlu0 %3913, %v257_v9  }
  0x25   : > { %333 = vperm.xlu2 %3915, %v311_v10  }
  0x26   : > { %328 = vperm.xlu1 %3914, %v310_v11   ;;  %323 = vperm.xlu0 %3913, %v309_v12  }
  0x2d   : > { %348 = vperm.xlu2 %3915, %v314_v13  }
  0x2e   : > { %343 = vperm.xlu1 %3914, %v313_v14   ;;  %338 = vperm.xlu0 %3913, %v312_v15  }
  0x35   : > { %388 = vperm.xlu2 %3915, %v374_v16  }
  0x36   : > { %383 = vperm.xlu1 %3914, %v373_v17   ;;  %353 = vperm.xlu0 %3913, %v315_v18   ;;  %v250_v17 = vld [vmem:[%s243_s10] sm:$0x1f]  ;;  %s6373_s10 = scalar_lea.vmem %s6448_s6, %s3860_s7 }
  0x37   : > { %v4181_v18 = vperm.slane %v250_v17, 1 }
  0x3d   : > { %403 = vperm.xlu2 %3915, %v377_v19   ;;  %v4183_v19 = vperm.slane %v250_v17, 0 }
  0x3e   : > { %398 = vperm.xlu1 %3914, %v376_v20   ;;  %393 = vperm.xlu0 %3913, %v375_v21  }
  0x45   : > { %418 = vperm.xlu2 %3915, %v380_v22  }
  0x46   : > { %413 = vperm.xlu1 %3914, %v379_v23   ;;  %408 = vperm.xlu0 %3913, %v378_v24   ;;  %v4191_v24 = vperm.slane %v250_v17, 2 }
  0x4d   : > { %458 = vperm.xlu2 %3915, %v440_v25  }
  0x4e   : > { %453 = vperm.xlu1 %3914, %v439_v26   ;;  %448 = vperm.xlu0 %3913, %v438_v27   ;;  %v4195_v27 = vperm.slane %v250_v17, 3 }
  0x55   : > { %473 = vperm.xlu2 %3915, %v443_v28  }
  0x56   : > { %468 = vperm.xlu1 %3914, %v442_v29   ;;  %463 = vperm.xlu0 %3913, %v441_v30   ;;  %v4199_v30 = vperm.slane %v250_v17, 4 }
  0x5d   : > { %513 = vperm.xlu2 %3915, %v503_v31  }
  0x5e   : > { %483 = vperm.xlu1 %3914, %v445_v32   ;;  %478 = vperm.xlu0 %3913, %v444_v33  }
  0x65   : > { %528 = vperm.xlu2 %3915, %v506_v34  }
  0x66   : > { %523 = vperm.xlu1 %3914, %v505_v35   ;;  %518 = vperm.xlu0 %3913, %v504_v36  }
  0x67   : > { %v4095_v37 = vpop.permute.xlu2 %281 }
  0x6d   : > { %543 = vperm.xlu2 %3915, %v509_v38  }
  0x6e   : > { %538 = vperm.xlu1 %3914, %v508_v39   ;;  %533 = vperm.xlu0 %3913, %v507_v40  }
  0x6f   : > { %v4106_v41 = vpop.permute.xlu2 %286 }
  0x75   : > { %583 = vperm.xlu2 %3915, %v569_v42  }
  0x76   : > { %578 = vperm.xlu1 %3914, %v568_v43   ;;  %548 = vperm.xlu0 %3913, %v510_v44  }
  0x77   : > { %v4117_v45 = vpop.permute.xlu2 %318 }
  0x78   : > { %v357_v36 = vmul.f32 %v4181_v18, %v4117_v45  ;;  %v304_v45 = vmul.f32 %v4183_v19, %v4095_v37 }
  0x7d   : > { %598 = vperm.xlu2 %3915, %v572_v46  }
  0x7e   : > { %593 = vperm.xlu1 %3914, %v571_v47   ;;  %588 = vperm.xlu0 %3913, %v570_v48  }
  0x7f   : > { %v4128_v49 = vpop.permute.xlu2 %333 }
  0x80   : > { %v4130_v50 = vpop.permute.xlu1 %271  ;;  %v262_v51 = vpop.permute.xlu0 %261 }
  0x81   : > { %v300_v38 = vmul.f32 %v4183_v19, %v262_v51 }
  0x83   : > { %v365_v44 = vadd.f32 %v357_v36, %v300_v38 }
  0x85   : > { %613 = vperm.xlu2 %3915, %v575_v52  }
  0x86   : > { %608 = vperm.xlu1 %3914, %v574_v53   ;;  %603 = vperm.xlu0 %3913, %v573_v54  }
  0x87   : > { %v4141_v55 = vpop.permute.xlu2 %348 }
  0x88   : > { %v4143_v56 = vpop.permute.xlu1 %276  ;;  %v267_v57 = vpop.permute.xlu0 %266 }
  0x89   : > { %v301_v23 = vmul.f32 %v4183_v19, %v267_v57 }
  0x8f   : > { %v389_v58 = vpop.permute.xlu2 %388 }
  0x90   : > { %v4145_v59 = vpop.permute.xlu1 %296  ;;  %v4147_v60 = vpop.permute.xlu0 %291  ;;  %v423_v28 = vmul.f32 %v4191_v24, %v389_v58 }
  0x97   : > { %v4149_v61 = vpop.permute.xlu2 %403 }
  0x98   : > { %v329_v62 = vpop.permute.xlu1 %328  ;;  %v324_v63 = vpop.permute.xlu0 %323 }
  0x99   : > { %v358_v20 = vmul.f32 %v4181_v18, %v324_v63  ;;  %v359_v54 = vmul.f32 %v4181_v18, %v329_v62  ;;  %v302_v63 = vmul.f32 %v4183_v19, %v4130_v50  ;;  %v360_v62 = vmul.f32 %v4181_v18, %v4128_v49 }
  0x9b   : > { %v366_v26 = vadd.f32 %v358_v20, %v301_v23  ;;  %v367_v17 = vadd.f32 %v359_v54, %v302_v63 }
  0x9d   : > { %v431_v31 = vadd.f32 %v423_v28, %v366_v26 }
  0x9f   : > { %v4151_v0 = vpop.permute.xlu2 %418 }
  0xa0   : > { %v4153_v1 = vpop.permute.xlu1 %343  ;;  %v339_v2 = vpop.permute.xlu0 %338 }
  0xa1   : > { %v361_v46 = vmul.f32 %v4181_v18, %v339_v2  ;;  %v426_v2 = vmul.f32 %v4191_v24, %v4149_v61  ;;  %v303_v61 = vmul.f32 %v4183_v19, %v4143_v56 }
  0xa3   : > { %v369_v57 = vadd.f32 %v361_v46, %v304_v45 }
  0xa5   : > { %v434_v20 = vadd.f32 %v426_v2, %v369_v57 }
  0xa7   : > { %v4157_v5 = vpop.permute.xlu2 %458 }
  0xa8   : > { %v384_v3 = vpop.permute.xlu1 %383  ;;  %v4155_v4 = vpop.permute.xlu0 %353  ;;  %v489_v49 = vmul.f32 %v4195_v27, %v4157_v5 }
  0xa9   : > { %v422_v42 = vmul.f32 %v4191_v24, %v384_v3  ;;  %v364_v50 = vmul.f32 %v4181_v18, %v4155_v4 }
  0xab   : > { %v430_v51 = vadd.f32 %v422_v42, %v365_v44 }
  0xaf   : > { %v4161_v8 = vpop.permute.xlu2 %473 }
  0xb0   : > { %v4159_v6 = vpop.permute.xlu1 %398  ;;  %v394_v7 = vpop.permute.xlu0 %393 }
  0xb1   : > { %v424_v3 = vmul.f32 %v4191_v24, %v394_v7  ;;  %v425_v4 = vmul.f32 %v4191_v24, %v4159_v6 }
  0xb3   : > { %v432_v7 = vadd.f32 %v424_v3, %v367_v17 }
  0xb5   : > { %v497_v6 = vadd.f32 %v489_v49, %v432_v7  ;;  %v745_v7 = vld [vmem:[%s6443_s1 + $0x190] sm:$0xff] }
  0xb7   : > { %v514_v11 = vpop.permute.xlu2 %513 }
  0xb8   : > { %v4163_v9 = vpop.permute.xlu1 %413  ;;  %v4165_v10 = vpop.permute.xlu0 %408 }
  0xbf   : > { %v4177_v14 = vpop.permute.xlu2 %528 }
  0xc0   : > { %v454_v12 = vpop.permute.xlu1 %453  ;;  %v449_v13 = vpop.permute.xlu0 %448 }
  0xc1   : > { %v488_v29 = vmul.f32 %v4195_v27, %v454_v12  ;;  %v487_v47 = vmul.f32 %v4195_v27, %v449_v13  ;;  %v552_v12 = vmul.f32 %v4199_v30, %v514_v11 }
  0xc3   : > { %v496_v34 = vadd.f32 %v488_v29, %v431_v31  ;;  %v495_v58 = vadd.f32 %v487_v47, %v430_v51  ;;  %v362_v31 = vmul.f32 %v4181_v18, %v4153_v1  ;;  %v427_v1 = vmul.f32 %v4191_v24, %v4165_v10 }
  0xc4   : > { %v428_v51 = vmul.f32 %v4191_v24, %v4163_v9 }
  0xc5   : > { %v560_v23 = vadd.f32 %v552_v12, %v495_v58  ;;  %v555_v58 = vmul.f32 %v4199_v30, %v4177_v14 }
  0xc7   : > { %v4193_v25 = vpop.permute.xlu2 %543 }
  0xc8   : > { %v469_v15 = vpop.permute.xlu1 %468  ;;  %v4179_v16 = vpop.permute.xlu0 %463 }
  0xc9   : > { %v491_v13 = vmul.f32 %v4195_v27, %v469_v15  ;;  %v307_v15 = vmul.f32 %v4183_v19, %v4145_v59  ;;  %v368_v59 = vadd.f32 %v360_v62, %v303_v61  ;;  %v490_v5 = vmul.f32 %v4195_v27, %v4179_v16  ;;  %v746_v61 = vld [vmem:[%s6443_s1 + $0x198] sm:$0xff] }
  0xca   : > { %v306_v16 = vmul.f32 %v4183_v19, %v4147_v60 }
  0xcb   : > { %v499_v11 = vadd.f32 %v491_v13, %v434_v20  ;;  %v372_v36 = vadd.f32 %v364_v50, %v307_v15  ;;  %v433_v42 = vadd.f32 %v425_v4, %v368_v59  ;;  %v748_v15 = vld [vmem:[%s6443_s1 + $0x1a8] sm:$0xff] }
  0xcf   : > { %v584_v40 = vpop.permute.xlu2 %583 }
  0xd0   : > { %v4186_v21 = vpop.permute.xlu1 %483  ;;  %v4188_v22 = vpop.permute.xlu0 %478 }
  0xd1   : > { %v493_v9 = vmul.f32 %v4195_v27, %v4188_v22 }
  0xd7   : > { %v599_v38 = vpop.permute.xlu2 %598 }
  0xd8   : > { %v524_v32 = vpop.permute.xlu1 %523  ;;  %v519_v33 = vpop.permute.xlu0 %518 }
  0xd9   : > { %v553_v35 = vmul.f32 %v4199_v30, %v519_v33  ;;  %v554_v33 = vmul.f32 %v4199_v30, %v524_v32  ;;  %v429_v32 = vmul.f32 %v4191_v24, %v4151_v0  ;;  %v363_v0 = vmul.f32 %v4181_v18, %v4141_v55 }
  0xdb   : > { %v561_v39 = vadd.f32 %v553_v35, %v496_v34  ;;  %v305_v35 = vmul.f32 %v4183_v19, %v4106_v41  ;;  %v562_v41 = vadd.f32 %v554_v33, %v497_v6  ;;  %v437_v46 = vadd.f32 %v429_v32, %v372_v36 }
  0xdd   : > { %v4206_v43 = vadd.f32 %v584_v40, %v561_v39  ;;  %v494_v39 = vmul.f32 %v4195_v27, %v4186_v21  ;;  %v370_v40 = vadd.f32 %v362_v31, %v305_v35  ;;  %v492_v21 = vmul.f32 %v4195_v27, %v4161_v8  ;;  %v749_v31 = vld [vmem:[%s6443_s1 + $0x1b0] sm:$0xff] }
  0xde   : > { %v371_v8 = vadd.f32 %v363_v0, %v306_v16 }
  0xdf   : > { %v628_v48 = vsel %vm624_vm0, %v4206_v43, 0.0  ;;  %v502_v54 = vadd.f32 %v494_v39, %v437_v46  ;;  %v614_v3 = vpop.permute.xlu2 %613 }
  0xe0   : > { %v539_v52 = vpop.permute.xlu1 %538  ;;  %v534_v53 = vpop.permute.xlu0 %533  ;;  %629 = vadd.xlane.f32.xlu1 %v628_v48  ;;  %v435_v48 = vadd.f32 %v427_v1, %v370_v40  ;;  %v436_v2 = vadd.f32 %v428_v51, %v371_v8 }
  0xe1   : > { %v556_v37 = vmul.f32 %v4199_v30, %v534_v53  ;;  %v498_v53 = vadd.f32 %v490_v5, %v433_v42  ;;  %v557_v60 = vmul.f32 %v4199_v30, %v539_v52 }
  0xe2   : > { %v500_v24 = vadd.f32 %v492_v21, %v435_v48  ;;  %v501_v17 = vadd.f32 %v493_v9, %v436_v2 }
  0xe3   : > { %v564_v34 = vadd.f32 %v556_v37, %v499_v11  ;;  %v563_v18 = vadd.f32 %v555_v58, %v498_v53  ;;  %v558_v37 = vmul.f32 %v4199_v30, %v4193_v25  ;;  %v743_v25 = vld [vmem:[%s6443_s1 + $0x180] sm:$0xff] }
  0xe4   : > { %v565_v52 = vadd.f32 %v557_v60, %v500_v24  ;;  %v747_v11 = vld [vmem:[%s6443_s1 + $0x1a0] sm:$0xff] }
  0xe5   : > { %v4252_v44 = vadd.f32 %v599_v38, %v564_v34  ;;  %v566_v50 = vadd.f32 %v558_v37, %v501_v17 }
  0xe7   : > { %v637_v63 = vsel %vm624_vm0, %v4252_v44, 0.0 }
  0xe8   : > { %v579_v26 = vpop.permute.xlu1 %578  ;;  %v549_v28 = vpop.permute.xlu0 %548 }
  0xe9   : > { %v4229_v29 = vadd.f32 %v579_v26, %v560_v23  ;;  %v559_v47 = vmul.f32 %v4199_v30, %v549_v28  ;;  %v744_v30 = vld [vmem:[%s6443_s1 + $0x188] sm:$0xff] }
  0xeb   : > { %v625_v56 = vsel %vm624_vm0, %v4229_v29, 0.0  ;;  %v567_v55 = vadd.f32 %v559_v47, %v502_v54 }
  0xec   : > { %626 = vadd.xlane.f32.xlu0 %v625_v56  ;;  %v3941_v56 = vmov 1024.0  }
  0xed   : > { %v4276_v13 = vadd.f32 %v614_v3, %v567_v55  ;;  %3916 = vrcp.f32 %v3941_v56  ;;  %v878_v56 = vld [vmem:[%s6443_s1 + $0x218] sm:$0xff] }
  0xef   : > { %v646_v62 = vsel %vm624_vm0, %v4276_v13, 0.0 }
  0xf0   : > { %v589_v10 = vpop.permute.xlu0 %588  ;;  %v594_v57 = vpop.permute.xlu1 %593 }
  0xf1   : > { %v4257_v45 = vadd.f32 %v589_v10, %v562_v41  ;;  %v4274_v14 = vadd.f32 %v594_v57, %v563_v18 }
  0xf3   : > { %v631_v19 = vsel %vm624_vm0, %v4257_v45, 0.0  ;;  %v634_v23 = vsel %vm624_vm0, %v4274_v14, 0.0  ;;  %v3917_v5 = vpop.eup %3916 }
  0xf4   : > { %632 = vadd.xlane.f32.xlu2 %v631_v19  ;;  %638 = vadd.xlane.f32.xlu0 %v637_v63  ;;  %v663_v32 = vmul.f32 1024.0, %v3917_v5  ;;  %vm667_vm1 = vweird.f32 %v3917_v5 }
  0xf6   : > { %v664_v46 = vsub.f32 1.0, %v663_v32 }
  0xf8   : > { %v604_v12 = vpop.permute.xlu0 %603  ;;  %v609_v27 = vpop.permute.xlu1 %608  ;;  %v665_v16 = vmul.f32 %v3917_v5, %v664_v46 }
  0xf9   : > { %v4278_v20 = vadd.f32 %v604_v12, %v565_v52  ;;  %v4288_v26 = vadd.f32 %v609_v27, %v566_v50  ;;  %v803_v50 = vld [vmem:[%s6443_s1 + $0x1e0] sm:$0xff] }
  0xfa   : > { %v666_v0 = vadd.f32 %v3917_v5, %v665_v16 }
  0xfb   : > { %v640_v22 = vsel %vm624_vm0, %v4278_v20, 0.0  ;;  %v643_v28 = vsel %vm624_vm0, %v4288_v26, 0.0 }
  0xfc   : > { %635 = vadd.xlane.f32.xlu2 %v634_v23  ;;  %641 = vadd.xlane.f32.xlu1 %v640_v22  ;;  %v4313_v54 = vsel %vm667_vm1, %v3917_v5, %v666_v0  ;;  %v1101_v5 = vld [vmem:[%s6443_s1 + $0x268] sm:$0xff] }
  0xfd   : > { %647 = vadd.xlane.f32.xlu0 %v646_v62  ;;  %v799_v62 = vld [vmem:[%s6443_s1 + $0x1c0] sm:$0xff] }
 0x104   : > { %644 = vadd.xlane.f32.xlu2 %v643_v28  ;;  %v750_v28 = vld [vmem:[%s6443_s1 + $0x1b8] sm:$0xff] }
 0x111   : > { %753 = vperm.xlu0 %3913, %v743_v25   ;;  %v802_v25 = vld [vmem:[%s6443_s1 + $0x1d8] sm:$0xff] }
 0x115   : > { %758 = vperm.xlu1 %3914, %v744_v30   ;;  %v804_v30 = vld [vmem:[%s6443_s1 + $0x1e8] sm:$0xff] }
 0x119   : > { %768 = vperm.xlu0 %3913, %v746_v61   ;;  %v806_v61 = vld [vmem:[%s6443_s1 + $0x1f8] sm:$0xff] }
 0x11c   : > { %763 = vperm.xlu2 %3915, %v745_v7   ;;  %v876_v7 = vld [vmem:[%s6443_s1 + $0x208] sm:$0xff] }
 0x11d   : > { %773 = vperm.xlu1 %3914, %v747_v11   ;;  %v800_v11 = vld [vmem:[%s6443_s1 + $0x1c8] sm:$0xff] }
 0x121   : > { %778 = vperm.xlu0 %3913, %v748_v15   ;;  %v801_v15 = vld [vmem:[%s6443_s1 + $0x1d0] sm:$0xff] }
 0x124   : > { %783 = vperm.xlu2 %3915, %v749_v31   ;;  %v879_v31 = vld [vmem:[%s6443_s1 + $0x220] sm:$0xff] }
 0x153   : > { %v630_v33 = vpop.xlane.xlu1 %629 }
 0x15f   : > { %v627_v49 = vpop.xlane.xlu0 %626 }
 0x160   : > { %v649_v34 = vadd.f32 %v630_v33, %v627_v49  ;;  %v877_v49 = vld [vmem:[%s6443_s1 + $0x210] sm:$0xff]  ;;  %v882_v33 = vld [vmem:[%s6443_s1 + $0x238] sm:$0xff] }
 0x167   : > { %v633_v4 = vpop.xlane.xlu2 %632  ;;  %v639_v36 = vpop.xlane.xlu0 %638 }
 0x168   : > { %v650_v35 = vadd.f32 %v649_v34, %v633_v4  ;;  %v875_v4 = vld [vmem:[%s6443_s1 + $0x200] sm:$0xff]  ;;  %v880_v34 = vld [vmem:[%s6443_s1 + $0x228] sm:$0xff] }
 0x16f   : > { %v636_v59 = vpop.xlane.xlu2 %635  ;;  %v642_v6 = vpop.xlane.xlu1 %641 }
 0x170   : > { %v651_v1 = vadd.f32 %v650_v35, %v636_v59  ;;  %v648_v41 = vpop.xlane.xlu0 %647  ;;  %v1097_v35 = vld [vmem:[%s6443_s1 + $0x248] sm:$0xff]  ;;  %v881_v59 = vld [vmem:[%s6443_s1 + $0x230] sm:$0xff] }
 0x172   : > { %v652_v38 = vadd.f32 %v651_v1, %v639_v36  ;;  %v1098_v36 = vld [vmem:[%s6443_s1 + $0x250] sm:$0xff]  ;;  %v1099_v1 = vld [vmem:[%s6443_s1 + $0x258] sm:$0xff] }
 0x174   : > { %v653_v39 = vadd.f32 %v652_v38, %v642_v6  ;;  %v1096_v38 = vld [vmem:[%s6443_s1 + $0x240] sm:$0xff]  ;;  %v1102_v6 = vld [vmem:[%s6443_s1 + $0x270] sm:$0xff] }
 0x177   : > { %v645_v40 = vpop.xlane.xlu2 %644 }
 0x178   : > { %v654_v42 = vadd.f32 %v653_v39, %v645_v40  ;;  %v1100_v39 = vld [vmem:[%s6443_s1 + $0x260] sm:$0xff] }
 0x17a   : > { %v655_v47 = vadd.f32 %v654_v42, %v648_v41 }
 0x17c   : > { %v656_v10 = vrot.slane %v655_v47, 4 }
 0x17e   : > { %v657_v48 = vadd.f32 %v656_v10, %v655_v47 }
 0x17f   : > { %v4438_v40 = vpop.permute.xlu2 %763 }
 0x180   : > { %v658_v53 = vrot.slane %v657_v48, 2 }
 0x182   : > { %v659_v21 = vadd.f32 %v658_v53, %v657_v48 }
 0x183   : > { %v4433_v32 = vpop.permute.xlu0 %753 }
 0x184   : > { %v660_v51 = vrot.slane %v659_v21, 1 }
 0x186   : > { %v661_v57 = vadd.f32 %v660_v51, %v659_v21 }
 0x187   : > { %v4440_v42 = vpop.permute.xlu1 %758  ;;  %v784_v46 = vpop.permute.xlu2 %783 }
 0x188   : > { %v669_v58 = vmul.f32 %v4313_v54, %v661_v57 }
 0x18a   : > { %v4317_v60 = vsub.f32 %v4257_v45, %v669_v58  ;;  %v4320_v19 = vsub.f32 %v4206_v43, %v669_v58  ;;  %v4323_v63 = vsub.f32 %v4229_v29, %v669_v58  ;;  %v4332_v18 = vsub.f32 %v4278_v20, %v669_v58 }
 0x18b   : > { %v4338_v29 = vsub.f32 %v4252_v44, %v669_v58  ;;  %v4341_v2 = vsub.f32 %v4274_v14, %v669_v58  ;;  %v4352_v20 = vsub.f32 %v4276_v13, %v669_v58  ;;  %v4356_v37 = vsub.f32 %v4288_v26, %v669_v58  ;;  %v805_v26 = vld [vmem:[%s6443_s1 + $0x1f0] sm:$0xff]  ;;  %v769_v41 = vpop.permute.xlu0 %768 }
 0x18c   : > { %v680_v55 = vmul.f32 %v4317_v60, %v4317_v60  ;;  %v679_v8 = vmul.f32 %v4320_v19, %v4320_v19  ;;  %v678_v9 = vmul.f32 %v4323_v63, %v4323_v63  ;;  %v683_v3 = vmul.f32 %v4332_v18, %v4332_v18 }
 0x18d   : > { %v682_v52 = vmul.f32 %v4338_v29, %v4338_v29  ;;  %v681_v12 = vmul.f32 %v4341_v2, %v4341_v2  ;;  %v685_v23 = vmul.f32 %v4352_v20, %v4352_v20  ;;  %v684_v22 = vmul.f32 %v4356_v37, %v4356_v37 }
 0x18e   : > { %v692_v45 = vsel %vm624_vm0, %v680_v55, 0.0  ;;  %v689_v43 = vsel %vm624_vm0, %v679_v8, 0.0  ;;  %v686_v24 = vsel %vm624_vm0, %v678_v9, 0.0  ;;  %v701_v17 = vsel %vm624_vm0, %v683_v3, 0.0 }
 0x18f   : > { %693 = vadd.xlane.f32.xlu0 %v692_v45  ;;  %690 = vadd.xlane.f32.xlu2 %v689_v43  ;;  %v698_v44 = vsel %vm624_vm0, %v682_v52, 0.0  ;;  %v695_v14 = vsel %vm624_vm0, %v681_v12, 0.0  ;;  %v707_v27 = vsel %vm624_vm0, %v685_v23, 0.0  ;;  %v704_v13 = vsel %vm624_vm0, %v684_v22, 0.0  ;;  %v774_v47 = vpop.permute.xlu1 %773 }
 0x190   : > { %687 = vadd.xlane.f32.xlu1 %v686_v24 }
 0x193   : > { %v779_v10 = vpop.permute.xlu0 %778 }
 0x197   : > { %702 = vadd.xlane.f32.xlu0 %v701_v17  ;;  %699 = vadd.xlane.f32.xlu2 %v698_v44 }
 0x198   : > { %696 = vadd.xlane.f32.xlu1 %v695_v14 }
 0x19f   : > { %708 = vadd.xlane.f32.xlu2 %v707_v27 }
 0x1a0   : > { %705 = vadd.xlane.f32.xlu1 %v704_v13 }
 0x1ab   : > { %809 = vperm.xlu0 %3913, %v799_v62  }
 0x1b3   : > { %829 = vperm.xlu0 %3913, %v803_v50  }
 0x1b7   : > { %839 = vperm.xlu2 %3915, %v805_v26  }
 0x1b9   : > { %788 = vperm.xlu1 %3914, %v750_v28  }
 0x1bb   : > { %824 = vperm.xlu0 %3913, %v802_v25  }
 0x1bf   : > { %834 = vperm.xlu2 %3915, %v804_v30  }
 0x1c1   : > { %844 = vperm.xlu1 %3914, %v806_v61  }
 0x1c3   : > { %890 = vperm.xlu0 %3913, %v876_v7  }
 0x1c7   : > { %814 = vperm.xlu2 %3915, %v800_v11  }
 0x1c9   : > { %819 = vperm.xlu1 %3914, %v801_v15  }
 0x1cb   : > { %905 = vperm.xlu0 %3913, %v879_v31  }
 0x1cf   : > { %895 = vperm.xlu2 %3915, %v877_v49  }
 0x1d1   : > { %885 = vperm.xlu1 %3914, %v875_v4  }
 0x1d3   : > { %920 = vperm.xlu0 %3913, %v882_v33  }
 0x1d7   : > { %910 = vperm.xlu2 %3915, %v880_v34  }
 0x1d9   : > { %900 = vperm.xlu1 %3914, %v878_v56  }
 0x1db   : > { %1111 = vperm.xlu0 %3913, %v1097_v35  }
 0x1df   : > { %1116 = vperm.xlu2 %3915, %v1098_v36  }
 0x1e1   : > { %915 = vperm.xlu1 %3914, %v881_v59  }
 0x1e3   : > { %1121 = vperm.xlu0 %3913, %v1099_v1  }
 0x1e7   : > { %1131 = vperm.xlu2 %3915, %v1101_v5  }
 0x1e9   : > { %1106 = vperm.xlu1 %3914, %v1096_v38  }
 0x1eb   : > { %1136 = vperm.xlu0 %3913, %v1102_v6  }
 0x1f1   : > { %1126 = vperm.xlu1 %3914, %v1100_v39  }
 0x202   : > { %v691_v16 = vpop.xlane.xlu2 %690  ;;  %v694_v0 = vpop.xlane.xlu0 %693 }
 0x203   : > { %v688_v48 = vpop.xlane.xlu1 %687 }
 0x204   : > { %v710_v53 = vadd.f32 %v691_v16, %v688_v48 }
 0x206   : > { %v711_v21 = vadd.f32 %v710_v53, %v694_v0 }
 0x20a   : > { %v700_v51 = vpop.xlane.xlu2 %699  ;;  %v703_v8 = vpop.xlane.xlu0 %702 }
 0x20b   : > { %v697_v57 = vpop.xlane.xlu1 %696 }
 0x20c   : > { %v712_v58 = vadd.f32 %v711_v21, %v697_v57 }
 0x20e   : > { %v713_v55 = vadd.f32 %v712_v58, %v700_v51 }
 0x210   : > { %v714_v9 = vadd.f32 %v713_v55, %v703_v8 }
 0x212   : > { %v709_v24 = vpop.xlane.xlu2 %708 }
 0x213   : > { %v706_v45 = vpop.xlane.xlu1 %705 }
 0x214   : > { %v715_v43 = vadd.f32 %v714_v9, %v706_v45 }
 0x216   : > { %v716_v3 = vadd.f32 %v715_v43, %v709_v24  ;;  %v3862_v24 = vld [vmem:[%s6444_s2 + $0x8] sm:$0xff] }
 0x218   : > { %v717_v52 = vrot.slane %v716_v3, 4 }
 0x21a   : > { %v718_v12 = vadd.f32 %v717_v52, %v716_v3  ;;  %v840_v25 = vpop.permute.xlu2 %839  ;;  %v3863_v3 = vld [vmem:[%s6444_s2 + $0x10] sm:$0xff]  ;;  %v3864_v52 = vld [vmem:[%s6444_s2 + $0x18] sm:$0xff] }
 0x21c   : > { %v719_v17 = vrot.slane %v718_v12, 2 }
 0x21d   : > { %v810_v13 = vpop.permute.xlu0 %809 }
 0x21e   : > { %v720_v44 = vadd.f32 %v719_v17, %v718_v12 }
 0x220   : > { %v721_v14 = vrot.slane %v720_v44, 1 }
 0x222   : > { %v722_v23 = vadd.f32 %v721_v14, %v720_v44  ;;  %v835_v59 = vpop.permute.xlu2 %834 }
 0x224   : > { %v723_v22 = vmul.f32 %v722_v23, %v4313_v54 }
 0x225   : > { %v830_v11 = vpop.permute.xlu0 %829 }
 0x226   : > { %v724_v27 = vadd.f32 1e-05, %v723_v22 }
 0x228   : > { %3918 = vrsqrt.f32 %v724_v27  ;;  %vm731_vm3 = vweird.f32 %v724_v27 }
 0x22b   : > { %v789_v50 = vpop.permute.xlu1 %788 }
 0x22e   : > { %v3919_v62 = vpop.eup %3918 }
 0x22f   : > { %v726_v26 = vmul.f32 %v3919_v62, %v724_v27  ;;  %vm732_vm2 = vweird.f32 %v3919_v62 }
 0x230   : > { %vm733_vm4 = vmor %vm731_vm3, %vm732_vm2 }
 0x231   : > { %v727_v28 = vmul.f32 %v3919_v62, %v726_v26 }
 0x233   : > { %v728_v30 = vmul.f32 0.5, %v727_v28  ;;  %v845_v15 = vpop.permute.xlu1 %844 }
 0x235   : > { %v729_v61 = vsub.f32 1.5, %v728_v30 }
 0x237   : > { %v730_v7 = vmul.f32 %v3919_v62, %v729_v61 }
 0x239   : > { %v734_v31 = vsel %vm733_vm4, %v3919_v62, %v730_v7 }
 0x23a   : > { %v741_v49 = vmul.f32 %v734_v31, %v4356_v37  ;;  %v740_v4 = vmul.f32 %v734_v31, %v4332_v18  ;;  %v739_v33 = vmul.f32 %v734_v31, %v4338_v29  ;;  %v742_v34 = vmul.f32 %v734_v31, %v4352_v20 }
 0x23b   : > { %v738_v56 = vmul.f32 %v734_v31, %v4341_v2  ;;  %v737_v35 = vmul.f32 %v734_v31, %v4317_v60  ;;  %v735_v39 = vmul.f32 %v734_v31, %v4323_v63  ;;  %v736_v37 = vmul.f32 %v734_v31, %v4320_v19  ;;  %v825_v2 = vpop.permute.xlu0 %824 }
 0x23c   : > { %v797_v36 = vmul.f32 %v784_v46, %v741_v49  ;;  %v796_v1 = vmul.f32 %v779_v10, %v740_v4  ;;  %v795_v5 = vmul.f32 %v774_v47, %v739_v33  ;;  %v798_v38 = vmul.f32 %v789_v50, %v742_v34  ;;  %v820_v10 = vpop.permute.xlu1 %819 }
 0x23d   : > { %v794_v16 = vmul.f32 %v769_v41, %v738_v56  ;;  %v793_v20 = vmul.f32 %v4438_v40, %v737_v35  ;;  %v791_v60 = vmul.f32 %v4433_v32, %v735_v39  ;;  %v792_v46 = vmul.f32 %v4440_v42, %v736_v37  ;;  %v815_v41 = vpop.permute.xlu2 %814  ;;  %v3861_v42 = vld [vmem:[%s6444_s2] sm:$0xff]  ;;  %v1153_v37 = vld [vmem:[%s6443_s1 + $0x288] sm:$0xff] }
 0x23e   : > { %v853_v6 = vadd.f32 %v840_v25, %v797_v36  ;;  %v852_v18 = vadd.f32 %v835_v59, %v796_v1  ;;  %v851_v48 = vadd.f32 %v830_v11, %v795_v5  ;;  %v854_v29 = vadd.f32 %v845_v15, %v798_v38 }
 0x23f   : > { %v850_v47 = vadd.f32 %v825_v2, %v794_v16  ;;  %v849_v63 = vadd.f32 %v820_v10, %v793_v20  ;;  %v847_v19 = vadd.f32 %v810_v13, %v791_v60  ;;  %v848_v58 = vadd.f32 %v815_v41, %v792_v46  ;;  %v1152_v16 = vld [vmem:[%s6443_s1 + $0x280] sm:$0xff] }
 0x240   : > { %v861_v53 = vmax.f32 %v853_v6, 0.0  ;;  %v862_v0 = vmax.f32 %v854_v29, 0.0  ;;  %v860_v21 = vmax.f32 %v852_v18, 0.0  ;;  %v859_v51 = vmax.f32 %v851_v48, 0.0  ;;  %v1103_v18 = vld [vmem:[%s6443_s1 + $0x278] sm:$0xff] }
 0x241   : > { %v858_v55 = vmax.f32 %v850_v47, 0.0  ;;  %v857_v8 = vmax.f32 %v849_v63, 0.0  ;;  %v855_v9 = vmax.f32 %v847_v19, 0.0  ;;  %v856_v45 = vmax.f32 %v848_v58, 0.0 }
 0x242   : > { %v874_v57 = vpack.c.bf16 %v862_v0, %v861_v53  ;;  %v873_v40 = vpack.c.bf16 %v860_v21, %v859_v51 }
 0x243   : > { %v872_v43 = vpack.c.bf16 %v858_v55, %v857_v8  ;;  %v871_v32 = vpack.c.bf16 %v856_v45, %v855_v9  ;;  %v891_v23 = vpop.permute.xlu0 %890 }
 0x244   : > { %960 = vmatpush.bf16.msra.mxu1 %v874_v57  ;;  %v886_v12 = vpop.permute.xlu1 %885 }
 0x245   : > { %v896_v62 = vpop.permute.xlu2 %895 }
 0x248   : > { %961 = vmatpush.bf16.msra.mxu1 %v873_v40 }
 0x24b   : > { %v906_v11 = vpop.permute.xlu0 %905 }
 0x24c   : > { %962 = vmatpush.bf16.msra.mxu1 %v872_v43  ;;  %v901_v25 = vpop.permute.xlu1 %900 }
 0x24d   : > { %v911_v4 = vpop.permute.xlu2 %910 }
 0x250   : > { %963 = vmatpush.bf16.msra.mxu1 %v871_v32 }
 0x253   : > { %3730 = vmatmul.msk.bf16.vlgmr.msra.gmra.mxu1 %vm943_vm5, %v3861_v42  ;;  %v921_v5 = vpop.permute.xlu0 %920 }
 0x254   : > { %v916_v35 = vpop.permute.xlu1 %915 }
 0x255   : > { %v4510_v29 = vpop.permute.xlu2 %1116 }
 0x25b   : > { %v4508_v48 = vpop.permute.xlu0 %1111 }
 0x25c   : > { %v4512_v20 = vpop.permute.xlu1 %1106 }
 0x25d   : > { %v4516_v2 = vpop.permute.xlu2 %1131 }
 0x263   : > { %3731 = vmatmul.msk.bf16.gmra.mxu1 %vm943_vm5, %v3862_v24  ;;  %v4514_v53 = vpop.permute.xlu0 %1121 }
 0x264   : > { %v4518_v0 = vpop.permute.xlu1 %1126 }
 0x26b   : > { %v4520_v60 = vpop.permute.xlu0 %1136 }
 0x273   : > { %3732 = vmatmul.msk.bf16.gmra.mxu1 %vm943_vm5, %v3863_v3 }
 0x283   : > { %3733 = vmatmul.msk.bf16.gmra.mxu1 %vm943_vm5, %v3864_v52 }
 0x2d0   : > { %v965_v17 = vpop.f32.mrf.mxu1 }
 0x2d1   : > { %v4470_v44 = vadd.f32 %v965_v17, %v886_v12 }
 0x2d3   : > { %v985_v14 = vsel %vm624_vm0, %v4470_v44, 0.0 }
 0x2d4   : > { %986 = vadd.xlane.f32.xlu2 %v985_v14 }
 0x2d8   : > { %v967_v22 = vpop.f32.mrf.mxu1 }
 0x2d9   : > { %v4474_v27 = vadd.f32 %v967_v22, %v891_v23 }
 0x2db   : > { %v988_v13 = vsel %vm624_vm0, %v4474_v27, 0.0 }
 0x2dc   : > { %989 = vadd.xlane.f32.xlu1 %v988_v13 }
 0x2e0   : > { %v970_v50 = vpop.f32.mrf.mxu1 }
 0x2e1   : > { %v4478_v26 = vadd.f32 %v970_v50, %v896_v62 }
 0x2e3   : > { %v991_v28 = vsel %vm624_vm0, %v4478_v26, 0.0 }
 0x2e4   : > { %992 = vadd.xlane.f32.xlu0 %v991_v28 }
 0x2e8   : > { %v972_v30 = vpop.f32.mrf.mxu1 }
 0x2e9   : > { %v4482_v61 = vadd.f32 %v972_v30, %v901_v25 }
 0x2eb   : > { %v994_v7 = vsel %vm624_vm0, %v4482_v61, 0.0 }
 0x2ec   : > { %995 = vadd.xlane.f32.xlu2 %v994_v7 }
 0x2f0   : > { %v975_v15 = vpop.f32.mrf.mxu1 }
 0x2f1   : > { %v4486_v31 = vadd.f32 %v975_v15, %v906_v11 }
 0x2f3   : > { %v997_v49 = vsel %vm624_vm0, %v4486_v31, 0.0 }
 0x2f4   : > { %998 = vadd.xlane.f32.xlu1 %v997_v49 }
 0x2f8   : > { %v977_v33 = vpop.f32.mrf.mxu1 }
 0x2f9   : > { %v978_v34 = vadd.f32 %v977_v33, %v911_v4 }
 0x2fb   : > { %v1000_v56 = vsel %vm624_vm0, %v978_v34, 0.0 }
 0x2fc   : > { %1001 = vadd.xlane.f32.xlu0 %v1000_v56  ;;  %v1154_v56 = vld [vmem:[%s6443_s1 + $0x290] sm:$0xff] }
 0x300   : > { %v980_v36 = vpop.f32.mrf.mxu1 }
 0x301   : > { %v4491_v59 = vadd.f32 %v980_v36, %v916_v35  ;;  %v1156_v35 = vld [vmem:[%s6443_s1 + $0x2a0] sm:$0xff]  ;;  %v1157_v36 = vld [vmem:[%s6443_s1 + $0x2a8] sm:$0xff] }
 0x303   : > { %v1003_v1 = vsel %vm624_vm0, %v4491_v59, 0.0 }
 0x304   : > { %1004 = vadd.xlane.f32.xlu2 %v1003_v1  ;;  %v1228_v1 = vld [vmem:[%s6443_s1 + $0x2c0] sm:$0xff] }
 0x308   : > { %v982_v38 = vpop.f32.mrf.mxu1 }
 0x309   : > { %v4495_v6 = vadd.f32 %v982_v38, %v921_v5  ;;  %v1230_v5 = vld [vmem:[%s6443_s1 + $0x2d0] sm:$0xff]  ;;  %v1231_v38 = vld [vmem:[%s6443_s1 + $0x2d8] sm:$0xff] }
 0x30b   : > { %v1006_v39 = vsel %vm624_vm0, %v4495_v6, 0.0 }
 0x30c   : > { %1007 = vadd.xlane.f32.xlu1 %v1006_v39  ;;  %v1233_v39 = vld [vmem:[%s6443_s1 + $0x2e8] sm:$0xff] }
 0x310   : > { %1167 = vperm.xlu0 %3913, %v1153_v37   ;;  %v1234_v37 = vld [vmem:[%s6443_s1 + $0x2f0] sm:$0xff] }
 0x31c   : > { %1162 = vperm.xlu2 %3915, %v1152_v16  }
 0x325   : > { %1141 = vperm.xlu1 %3914, %v1103_v18   ;;  %v1450_v18 = vld [vmem:[%s6443_s1 + $0x310] sm:$0xff] }
 0x347   : > { %v987_v46 = vpop.xlane.xlu2 %986 }
 0x34f   : > { %v990_v47 = vpop.xlane.xlu1 %989 }
 0x350   : > { %v1009_v51 = vadd.f32 %v990_v47, %v987_v46  ;;  %v1448_v47 = vld [vmem:[%s6443_s1 + $0x300] sm:$0xff] }
 0x357   : > { %v993_v10 = vpop.xlane.xlu0 %992 }
 0x358   : > { %v1010_v63 = vadd.f32 %v1009_v51, %v993_v10  ;;  %v1454_v51 = vld [vmem:[%s6443_s1 + $0x330] sm:$0xff] }
 0x35f   : > { %v996_v21 = vpop.xlane.xlu2 %995 }
 0x360   : > { %v1011_v19 = vadd.f32 %v1010_v63, %v996_v21  ;;  %v1451_v21 = vld [vmem:[%s6443_s1 + $0x318] sm:$0xff]  ;;  %v1158_v63 = vld [vmem:[%s6443_s1 + $0x2b0] sm:$0xff] }
 0x367   : > { %v999_v57 = vpop.xlane.xlu1 %998 }
 0x368   : > { %v1012_v58 = vadd.f32 %v1011_v19, %v999_v57  ;;  %v1229_v57 = vld [vmem:[%s6443_s1 + $0x2c8] sm:$0xff]  ;;  %v1232_v19 = vld [vmem:[%s6443_s1 + $0x2e0] sm:$0xff] }
 0x36f   : > { %v1002_v41 = vpop.xlane.xlu0 %1001 }
 0x370   : > { %v1013_v8 = vadd.f32 %v1012_v58, %v1002_v41  ;;  %v1235_v41 = vld [vmem:[%s6443_s1 + $0x2f8] sm:$0xff]  ;;  %v1449_v58 = vld [vmem:[%s6443_s1 + $0x308] sm:$0xff] }
 0x377   : > { %v1005_v55 = vpop.xlane.xlu2 %1004 }
 0x378   : > { %v1014_v40 = vadd.f32 %v1013_v8, %v1005_v55  ;;  %v1453_v55 = vld [vmem:[%s6443_s1 + $0x328] sm:$0xff] }
 0x37f   : > { %v1008_v9 = vpop.xlane.xlu1 %1007  ;;  %v4633_v8 = vpop.permute.xlu2 %1162 }
 0x380   : > { %v1015_v45 = vadd.f32 %v1014_v40, %v1008_v9 }
 0x382   : > { %v1016_v43 = vrot.slane %v1015_v45, 4  ;;  %v4635_v40 = vpop.permute.xlu0 %1167 }
 0x384   : > { %v1017_v32 = vadd.f32 %v1016_v43, %v1015_v45 }
 0x386   : > { %v1018_v42 = vrot.slane %v1017_v32, 2 }
 0x388   : > { %v1019_v24 = vadd.f32 %v1018_v42, %v1017_v32 }
 0x38a   : > { %v1020_v3 = vrot.slane %v1019_v24, 1 }
 0x38c   : > { %v1021_v52 = vadd.f32 %v1020_v3, %v1019_v24 }
 0x38e   : > { %v1022_v12 = vmul.f32 %v1021_v52, %v4313_v54 }
 0x390   : > { %v4524_v17 = vsub.f32 %v4478_v26, %v1022_v12  ;;  %v4527_v14 = vsub.f32 %v4474_v27, %v1022_v12  ;;  %v4530_v23 = vsub.f32 %v4470_v44, %v1022_v12  ;;  %v4538_v50 = vsub.f32 %v978_v34, %v1022_v12  ;;  %v1155_v34 = vld [vmem:[%s6443_s1 + $0x298] sm:$0xff] }
 0x391   : > { %v4544_v44 = vsub.f32 %v4486_v31, %v1022_v12  ;;  %v4547_v25 = vsub.f32 %v4482_v61, %v1022_v12  ;;  %v4559_v61 = vsub.f32 %v4491_v59, %v1022_v12  ;;  %v1159_v59 = vld [vmem:[%s6443_s1 + $0x2b8] sm:$0xff]  ;;  %v4595_v16 = vsub.f32 %v4495_v6, %v1022_v12  ;;  %v1452_v6 = vld [vmem:[%s6443_s1 + $0x320] sm:$0xff] }
 0x392   : > { %v1033_v22 = vmul.f32 %v4524_v17, %v4524_v17  ;;  %v1032_v13 = vmul.f32 %v4527_v14, %v4527_v14  ;;  %v1031_v62 = vmul.f32 %v4530_v23, %v4530_v23  ;;  %v1036_v30 = vmul.f32 %v4538_v50, %v4538_v50 }
 0x393   : > { %v1035_v7 = vmul.f32 %v4544_v44, %v4544_v44  ;;  %v1034_v11 = vmul.f32 %v4547_v25, %v4547_v25  ;;  %v1037_v4 = vmul.f32 %v4559_v61, %v4559_v61  ;;  %v1038_v46 = vmul.f32 %v4595_v16, %v4595_v16 }
 0x394   : > { %v1045_v26 = vsel %vm624_vm0, %v1033_v22, 0.0  ;;  %v1042_v28 = vsel %vm624_vm0, %v1032_v13, 0.0  ;;  %v1039_v27 = vsel %vm624_vm0, %v1031_v62, 0.0  ;;  %v1054_v15 = vsel %vm624_vm0, %v1036_v30, 0.0 }
 0x395   : > { %1046 = vadd.xlane.f32.xlu1 %v1045_v26  ;;  %1043 = vadd.xlane.f32.xlu2 %v1042_v28  ;;  %v1051_v31 = vsel %vm624_vm0, %v1035_v7, 0.0  ;;  %v1048_v49 = vsel %vm624_vm0, %v1034_v11, 0.0  ;;  %v1057_v33 = vsel %vm624_vm0, %v1037_v4, 0.0  ;;  %v1060_v10 = vsel %vm624_vm0, %v1038_v46, 0.0 }
 0x396   : > { %1040 = vadd.xlane.f32.xlu0 %v1039_v27 }
 0x397   : > { %v1142_v43 = vpop.permute.xlu1 %1141 }
 0x39d   : > { %1055 = vadd.xlane.f32.xlu1 %v1054_v15  ;;  %1052 = vadd.xlane.f32.xlu2 %v1051_v31 }
 0x39e   : > { %1049 = vadd.xlane.f32.xlu0 %v1048_v49 }
 0x3a6   : > { %1058 = vadd.xlane.f32.xlu0 %v1057_v33 }
 0x3b5   : > { %1177 = vperm.xlu2 %3915, %v1155_v34  }
 0x3b6   : > { %1172 = vperm.xlu1 %3914, %v1154_v56  }
 0x3ba   : > { %1182 = vperm.xlu0 %3913, %v1156_v35  }
 0x3be   : > { %1187 = vperm.xlu1 %3914, %v1157_v36  }
 0x3c2   : > { %1197 = vperm.xlu0 %3913, %v1159_v59  }
 0x3c6   : > { %1238 = vperm.xlu1 %3914, %v1228_v1  }
 0x3ca   : > { %1248 = vperm.xlu0 %3913, %v1230_v5  }
 0x3ce   : > { %1253 = vperm.xlu1 %3914, %v1231_v38  }
 0x3d2   : > { %1263 = vperm.xlu0 %3913, %v1233_v39  }
 0x3d6   : > { %1268 = vperm.xlu1 %3914, %v1234_v37  }
 0x3da   : > { %1468 = vperm.xlu0 %3913, %v1450_v18  }
 0x3de   : > { %1458 = vperm.xlu1 %3914, %v1448_v47   ;;  %1061 = vadd.xlane.f32.xlu2 %v1060_v10 }
 0x3e2   : > { %1478 = vperm.xlu0 %3913, %v1452_v6  }
 0x3e6   : > { %1473 = vperm.xlu1 %3914, %v1451_v21  }
 0x3ee   : > { %1488 = vperm.xlu1 %3914, %v1454_v51  }
 0x3f6   : > { %1192 = vperm.xlu2 %3915, %v1158_v63  }
 0x3fe   : > { %1243 = vperm.xlu2 %3915, %v1229_v57  }
 0x406   : > { %1258 = vperm.xlu2 %3915, %v1232_v19  }
 0x408   : > { %v1044_v9 = vpop.xlane.xlu2 %1043  ;;  %v1047_v24 = vpop.xlane.xlu1 %1046 }
 0x409   : > { %v1041_v45 = vpop.xlane.xlu0 %1040 }
 0x40a   : > { %v1063_v42 = vadd.f32 %v1044_v9, %v1041_v45 }
 0x40c   : > { %v1064_v52 = vadd.f32 %v1063_v42, %v1047_v24 }
 0x40e   : > { %1273 = vperm.xlu2 %3915, %v1235_v41  }
 0x410   : > { %v1053_v32 = vpop.xlane.xlu2 %1052  ;;  %v1056_v62 = vpop.xlane.xlu1 %1055 }
 0x411   : > { %v1050_v3 = vpop.xlane.xlu0 %1049 }
 0x412   : > { %v1065_v12 = vadd.f32 %v1064_v52, %v1050_v3 }
 0x414   : > { %v1066_v13 = vadd.f32 %v1065_v12, %v1053_v32 }
 0x416   : > { %1463 = vperm.xlu2 %3915, %v1449_v58   ;;  %v1067_v28 = vadd.f32 %v1066_v13, %v1056_v62 }
 0x418   : > { %v1178_v22 = vpop.permute.xlu2 %1177 }
 0x419   : > { %v1059_v26 = vpop.xlane.xlu0 %1058 }
 0x41a   : > { %v1068_v27 = vadd.f32 %v1067_v28, %v1059_v26 }
 0x41e   : > { %1483 = vperm.xlu2 %3915, %v1453_v55  }
 0x428   : > { %v1173_v1 = vpop.permute.xlu1 %1172 }
 0x42c   : > { %v1183_v5 = vpop.permute.xlu0 %1182 }
 0x430   : > { %v1188_v63 = vpop.permute.xlu1 %1187 }
 0x434   : > { %v1198_v55 = vpop.permute.xlu0 %1197 }
 0x451   : > { %v1062_v30 = vpop.xlane.xlu2 %1061 }
 0x452   : > { %v1069_v7 = vadd.f32 %v1068_v27, %v1062_v30  ;;  %v1239_v27 = vpop.permute.xlu1 %1238 }
 0x454   : > { %v1070_v11 = vrot.slane %v1069_v7, 4 }
 0x456   : > { %v1071_v15 = vadd.f32 %v1070_v11, %v1069_v7 }
 0x458   : > { %v1072_v31 = vrot.slane %v1071_v15, 2 }
 0x45a   : > { %v1073_v49 = vadd.f32 %v1072_v31, %v1071_v15 }
 0x45c   : > { %v1074_v4 = vrot.slane %v1073_v49, 1 }
 0x45e   : > { %v1075_v33 = vadd.f32 %v1074_v4, %v1073_v49 }
 0x460   : > { %v1076_v34 = vmul.f32 %v1075_v33, %v4313_v54  ;;  %v1249_v33 = vpop.permute.xlu0 %1248 }
 0x462   : > { %v1077_v56 = vadd.f32 1e-05, %v1076_v34 }
 0x464   : > { %3920 = vrsqrt.f32 %v1077_v56  ;;  %vm1084_vm7 = vweird.f32 %v1077_v56 }
 0x46a   : > { %v3921_v35 = vpop.eup %3920 }
 0x46b   : > { %v1079_v36 = vmul.f32 %v3921_v35, %v1077_v56  ;;  %vm1085_vm6 = vweird.f32 %v3921_v35 }
 0x46c   : > { %vm1086_vm8 = vmor %vm1084_vm7, %vm1085_vm6 }
 0x46d   : > { %v1080_v59 = vmul.f32 %v3921_v35, %v1079_v36  ;;  %v1254_v36 = vpop.permute.xlu1 %1253 }
 0x46f   : > { %v1081_v38 = vmul.f32 0.5, %v1080_v59 }
 0x471   : > { %v1082_v39 = vsub.f32 1.5, %v1081_v38 }
 0x473   : > { %v1083_v37 = vmul.f32 %v3921_v35, %v1082_v39 }
 0x475   : > { %v1087_v18 = vsel %vm1086_vm8, %v3921_v35, %v1083_v37 }
 0x476   : > { %v1094_v46 = vmul.f32 %v1087_v18, %v4559_v61  ;;  %v1095_v47 = vmul.f32 %v1087_v18, %v4595_v16  ;;  %v1092_v10 = vmul.f32 %v1087_v18, %v4544_v44  ;;  %v1093_v6 = vmul.f32 %v1087_v18, %v4538_v50  ;;  %v1193_v61 = vpop.permute.xlu2 %1192 }
 0x477   : > { %v1090_v21 = vmul.f32 %v1087_v18, %v4524_v17  ;;  %v1091_v51 = vmul.f32 %v1087_v18, %v4547_v25  ;;  %v1088_v50 = vmul.f32 %v1087_v18, %v4530_v23  ;;  %v1089_v17 = vmul.f32 %v1087_v18, %v4527_v14 }
 0x478   : > { %v1150_v57 = vmul.f32 %v4520_v60, %v1094_v46  ;;  %v1151_v19 = vmul.f32 %v1142_v43, %v1095_v47  ;;  %v1148_v41 = vmul.f32 %v4518_v0, %v1092_v10  ;;  %v1149_v58 = vmul.f32 %v4516_v2, %v1093_v6  ;;  %v1264_v46 = vpop.permute.xlu0 %1263 }
 0x479   : > { %v1146_v16 = vmul.f32 %v4510_v29, %v1090_v21  ;;  %v1147_v44 = vmul.f32 %v4514_v53, %v1091_v51  ;;  %v1144_v0 = vmul.f32 %v4512_v20, %v1088_v50  ;;  %v1145_v2 = vmul.f32 %v4508_v48, %v1089_v17  ;;  %v3865_v48 = vld [vmem:[%s6445_s3] sm:$0xff]  ;;  %v1269_v21 = vpop.permute.xlu1 %1268 }
 0x47a   : > { %v1206_v9 = vadd.f32 %v1193_v61, %v1150_v57  ;;  %v1207_v25 = vadd.f32 %v1198_v55, %v1151_v19  ;;  %v1204_v45 = vadd.f32 %v1183_v5, %v1148_v41  ;;  %v1205_v32 = vadd.f32 %v1188_v63, %v1149_v58  ;;  %v1504_v61 = vld [vmem:[%s6443_s1 + $0x340] sm:$0xff] }
 0x47b   : > { %v1202_v42 = vadd.f32 %v1173_v1, %v1146_v16  ;;  %v1203_v52 = vadd.f32 %v1178_v22, %v1147_v44  ;;  %v1200_v53 = vadd.f32 %v4633_v8, %v1144_v0  ;;  %v1201_v13 = vadd.f32 %v4635_v40, %v1145_v2  ;;  %v3866_v8 = vld [vmem:[%s6445_s3 + $0x8] sm:$0xff]  ;;  %v3867_v40 = vld [vmem:[%s6445_s3 + $0x10] sm:$0xff]  ;;  %v3868_v22 = vld [vmem:[%s6445_s3 + $0x18] sm:$0xff] }
 0x47c   : > { %v1214_v60 = vmax.f32 %v1206_v9, 0.0  ;;  %v1215_v43 = vmax.f32 %v1207_v25, 0.0  ;;  %v1212_v3 = vmax.f32 %v1204_v45, 0.0  ;;  %v1213_v29 = vmax.f32 %v1205_v32, 0.0  ;;  %v1455_v16 = vld [vmem:[%s6443_s1 + $0x338] sm:$0xff]  ;;  %v1505_v44 = vld [vmem:[%s6443_s1 + $0x348] sm:$0xff] }
 0x47d   : > { %v1210_v14 = vmax.f32 %v1202_v42, 0.0  ;;  %v1211_v12 = vmax.f32 %v1203_v52, 0.0  ;;  %v1208_v26 = vmax.f32 %v1200_v53, 0.0  ;;  %v1209_v28 = vmax.f32 %v1201_v13, 0.0 }
 0x47e   : > { %v1227_v24 = vpack.c.bf16 %v1215_v43, %v1214_v60  ;;  %v1226_v23 = vpack.c.bf16 %v1213_v29, %v1212_v3  ;;  %v1244_v15 = vpop.permute.xlu2 %1243 }
 0x47f   : > { %v1225_v62 = vpack.c.bf16 %v1211_v12, %v1210_v14  ;;  %v1224_v20 = vpack.c.bf16 %v1209_v28, %v1208_v26 }
 0x480   : > { %1312 = vmatpush.bf16.msrb.mxu1 %v1227_v24  ;;  %v4708_v17 = vpop.permute.xlu0 %1468 }
 0x481   : > { %v4706_v50 = vpop.permute.xlu1 %1458 }
 0x484   : > { %1313 = vmatpush.bf16.msrb.mxu1 %v1226_v23 }
 0x486   : > { %v1259_v38 = vpop.permute.xlu2 %1258 }
 0x488   : > { %1314 = vmatpush.bf16.msrb.mxu1 %v1225_v62  ;;  %v4714_v45 = vpop.permute.xlu0 %1478 }
 0x489   : > { %v4710_v9 = vpop.permute.xlu1 %1473 }
 0x48c   : > { %1315 = vmatpush.bf16.msrb.mxu1 %v1224_v20 }
 0x48e   : > { %v1274_v19 = vpop.permute.xlu2 %1273 }
 0x48f   : > { %3750 = vmatmul.msk.bf16.vlgmr.msrb.gmra.mxu1 %vm943_vm5, %v3865_v48 }
 0x491   : > { %v4716_v32 = vpop.permute.xlu1 %1488 }
 0x496   : > { %v4712_v25 = vpop.permute.xlu2 %1463 }
 0x49e   : > { %v4718_v60 = vpop.permute.xlu2 %1483 }
 0x49f   : > { %3751 = vmatmul.msk.bf16.gmra.mxu1 %vm943_vm5, %v3866_v8 }
 0x4af   : > { %3752 = vmatmul.msk.bf16.gmra.mxu1 %vm943_vm5, %v3867_v40 }
 0x4bf   : > { %3753 = vmatmul.msk.bf16.gmra.mxu1 %vm943_vm5, %v3868_v22 }
 0x50c   : > { %v1317_v30 = vpop.f32.mrf.mxu1 }
 0x50d   : > { %v4671_v7 = vadd.f32 %v1317_v30, %v1239_v27 }
 0x50f   : > { %v1337_v11 = vsel %vm624_vm0, %v4671_v7, 0.0 }
 0x510   : > { %1338 = vadd.xlane.f32.xlu0 %v1337_v11 }
 0x514   : > { %v1319_v31 = vpop.f32.mrf.mxu1 }
 0x515   : > { %v4675_v49 = vadd.f32 %v1319_v31, %v1244_v15 }
 0x517   : > { %v1340_v4 = vsel %vm624_vm0, %v4675_v49, 0.0 }
 0x518   : > { %1341 = vadd.xlane.f32.xlu1 %v1340_v4 }
 0x51c   : > { %v1322_v34 = vpop.f32.mrf.mxu1 }
 0x51d   : > { %v4679_v56 = vadd.f32 %v1322_v34, %v1249_v33 }
 0x51f   : > { %v1343_v35 = vsel %vm624_vm0, %v4679_v56, 0.0 }
 0x520   : > { %1344 = vadd.xlane.f32.xlu2 %v1343_v35 }
 0x524   : > { %v1324_v59 = vpop.f32.mrf.mxu1 }
 0x525   : > { %v4683_v1 = vadd.f32 %v1324_v59, %v1254_v36 }
 0x527   : > { %v1346_v5 = vsel %vm624_vm0, %v4683_v1, 0.0 }
 0x528   : > { %1347 = vadd.xlane.f32.xlu0 %v1346_v5 }
 0x52c   : > { %v1327_v39 = vpop.f32.mrf.mxu1 }
 0x52d   : > { %v4687_v37 = vadd.f32 %v1327_v39, %v1259_v38 }
 0x52f   : > { %v1349_v18 = vsel %vm624_vm0, %v4687_v37, 0.0 }
 0x530   : > { %1350 = vadd.xlane.f32.xlu1 %v1349_v18 }
 0x534   : > { %v1329_v47 = vpop.f32.mrf.mxu1 }
 0x535   : > { %v1330_v10 = vadd.f32 %v1329_v47, %v1264_v46 }
 0x537   : > { %v1352_v6 = vsel %vm624_vm0, %v1330_v10, 0.0 }
 0x538   : > { %1353 = vadd.xlane.f32.xlu2 %v1352_v6 }
 0x53c   : > { %v1332_v51 = vpop.f32.mrf.mxu1 }
 0x53d   : > { %v4692_v63 = vadd.f32 %v1332_v51, %v1269_v21  ;;  %v1508_v51 = vld [vmem:[%s6443_s1 + $0x360] sm:$0xff] }
 0x53f   : > { %v1355_v57 = vsel %vm624_vm0, %v4692_v63, 0.0 }
 0x540   : > { %1356 = vadd.xlane.f32.xlu0 %v1355_v57  ;;  %v1507_v57 = vld [vmem:[%s6443_s1 + $0x358] sm:$0xff] }
 0x544   : > { %v1334_v41 = vpop.f32.mrf.mxu1 }
 0x545   : > { %v1335_v58 = vadd.f32 %v1334_v41, %v1274_v19  ;;  %v1511_v19 = vld [vmem:[%s6443_s1 + $0x378] sm:$0xff]  ;;  %v1509_v41 = vld [vmem:[%s6443_s1 + $0x368] sm:$0xff] }
 0x547   : > { %v1358_v55 = vsel %vm624_vm0, %v1335_v58, 0.0 }
 0x548   : > { %1359 = vadd.xlane.f32.xlu1 %v1358_v55  ;;  %v1590_v55 = vld [vmem:[%s6443_s1 + $0x390] sm:$0xff] }
 0x550   : > { %1514 = vperm.xlu2 %3915, %v1504_v61   ;;  %v1588_v61 = vld [vmem:[%s6443_s1 + $0x380] sm:$0xff] }
 0x554   : > { %1493 = vperm.xlu0 %3913, %v1455_v16   ;;  %v1589_v16 = vld [vmem:[%s6443_s1 + $0x388] sm:$0xff] }
 0x561   : > { %1519 = vperm.xlu1 %3914, %v1505_v44   ;;  %v1593_v44 = vld [vmem:[%s6443_s1 + $0x3a8] sm:$0xff] }
 0x583   : > { %v1339_v43 = vpop.xlane.xlu0 %1338 }
 0x58b   : > { %v1342_v42 = vpop.xlane.xlu1 %1341 }
 0x58c   : > { %v1361_v24 = vadd.f32 %v1342_v42, %v1339_v43  ;;  %v1591_v43 = vld [vmem:[%s6443_s1 + $0x398] sm:$0xff]  ;;  %v1592_v42 = vld [vmem:[%s6443_s1 + $0x3a0] sm:$0xff] }
 0x593   : > { %v1345_v0 = vpop.xlane.xlu2 %1344 }
 0x594   : > { %v1362_v3 = vadd.f32 %v1361_v24, %v1345_v0  ;;  %v1596_v0 = vld [vmem:[%s6443_s1 + $0x3c0] sm:$0xff]  ;;  %v1595_v24 = vld [vmem:[%s6443_s1 + $0x3b8] sm:$0xff] }
 0x59b   : > { %v1348_v2 = vpop.xlane.xlu0 %1347 }
 0x59c   : > { %v1363_v52 = vadd.f32 %v1362_v3, %v1348_v2  ;;  %v1594_v2 = vld [vmem:[%s6443_s1 + $0x3b0] sm:$0xff]  ;;  %v1599_v3 = vld [vmem:[%s6443_s1 + $0x3d8] sm:$0xff] }
 0x5a3   : > { %v1351_v29 = vpop.xlane.xlu1 %1350 }
 0x5a4   : > { %v1364_v23 = vadd.f32 %v1363_v52, %v1351_v29  ;;  %v1597_v29 = vld [vmem:[%s6443_s1 + $0x3c8] sm:$0xff]  ;;  %v1598_v52 = vld [vmem:[%s6443_s1 + $0x3d0] sm:$0xff] }
 0x5ab   : > { %v1354_v53 = vpop.xlane.xlu2 %1353 }
 0x5ac   : > { %v1365_v12 = vadd.f32 %v1364_v23, %v1354_v53  ;;  %v1602_v53 = vld [vmem:[%s6443_s1 + $0x3f0] sm:$0xff]  ;;  %v1600_v23 = vld [vmem:[%s6443_s1 + $0x3e0] sm:$0xff] }
 0x5b3   : > { %v1357_v14 = vpop.xlane.xlu0 %1356 }
 0x5b4   : > { %v1366_v13 = vadd.f32 %v1365_v12, %v1357_v14  ;;  %v1601_v14 = vld [vmem:[%s6443_s1 + $0x3e8] sm:$0xff]  ;;  %v2005_v12 = vld [vmem:[%s6443_s1 + $0x410] sm:$0xff] }
 0x5bb   : > { %v1360_v62 = vpop.xlane.xlu1 %1359 }
 0x5bc   : > { %v1367_v26 = vadd.f32 %v1366_v13, %v1360_v62  ;;  %v1603_v13 = vld [vmem:[%s6443_s1 + $0x3f8] sm:$0xff]  ;;  %v2004_v62 = vld [vmem:[%s6443_s1 + $0x408] sm:$0xff] }
 0x5be   : > { %v1368_v28 = vrot.slane %v1367_v26, 4 }
 0x5c0   : > { %v1369_v20 = vadd.f32 %v1368_v28, %v1367_v26  ;;  %v2009_v26 = vld [vmem:[%s6443_s1 + $0x430] sm:$0xff]  ;;  %v2003_v28 = vld [vmem:[%s6443_s1 + $0x400] sm:$0xff] }
 0x5c2   : > { %v1370_v48 = vrot.slane %v1369_v20, 2 }
 0x5c4   : > { %v1371_v8 = vadd.f32 %v1370_v48, %v1369_v20  ;;  %v2007_v20 = vld [vmem:[%s6443_s1 + $0x420] sm:$0xff]  ;;  %v2012_v48 = vld [vmem:[%s6443_s1 + $0x448] sm:$0xff] }
 0x5c6   : > { %v1372_v40 = vrot.slane %v1371_v8, 1 }
 0x5c8   : > { %v1373_v22 = vadd.f32 %v1372_v40, %v1371_v8  ;;  %v2006_v8 = vld [vmem:[%s6443_s1 + $0x418] sm:$0xff]  ;;  %v4854_v40 = vpop.permute.xlu0 %1493 }
 0x5ca   : > { %v1374_v27 = vmul.f32 %v1373_v22, %v4313_v54  ;;  %v4856_v22 = vpop.permute.xlu2 %1514 }
 0x5cc   : > { %v4722_v30 = vsub.f32 %v4679_v56, %v1374_v27  ;;  %v4725_v11 = vsub.f32 %v4675_v49, %v1374_v27  ;;  %v4728_v15 = vsub.f32 %v4671_v7, %v1374_v27  ;;  %v4736_v34 = vsub.f32 %v1330_v10, %v1374_v27 }
 0x5cd   : > { %v4742_v7 = vsub.f32 %v4687_v37, %v1374_v27  ;;  %v4745_v36 = vsub.f32 %v4683_v1, %v1374_v27  ;;  %v4755_v18 = vsub.f32 %v1335_v58, %v1374_v27  ;;  %v4759_v46 = vsub.f32 %v4692_v63, %v1374_v27  ;;  %v1506_v63 = vld [vmem:[%s6443_s1 + $0x350] sm:$0xff]  ;;  %v2010_v27 = vld [vmem:[%s6443_s1 + $0x438] sm:$0xff] }
 0x5ce   : > { %v1385_v31 = vmul.f32 %v4722_v30, %v4722_v30  ;;  %v1384_v4 = vmul.f32 %v4725_v11, %v4725_v11  ;;  %v1383_v33 = vmul.f32 %v4728_v15, %v4728_v15  ;;  %v1388_v59 = vmul.f32 %v4736_v34, %v4736_v34  ;;  %v1510_v58 = vld [vmem:[%s6443_s1 + $0x370] sm:$0xff] }
 0x5cf   : > { %v1387_v5 = vmul.f32 %v4742_v7, %v4742_v7  ;;  %v1386_v38 = vmul.f32 %v4745_v36, %v4745_v36  ;;  %v1390_v47 = vmul.f32 %v4755_v18, %v4755_v18  ;;  %v1389_v10 = vmul.f32 %v4759_v46, %v4759_v46 }
 0x5d0   : > { %v1397_v56 = vsel %vm624_vm0, %v1385_v31, 0.0  ;;  %v1394_v35 = vsel %vm624_vm0, %v1384_v4, 0.0  ;;  %v1391_v49 = vsel %vm624_vm0, %v1383_v33, 0.0  ;;  %v1406_v39 = vsel %vm624_vm0, %v1388_v59, 0.0  ;;  %v2015_v31 = vld [vmem:[%s6443_s1 + $0x460] sm:$0xff]  ;;  %v2008_v33 = vld [vmem:[%s6443_s1 + $0x428] sm:$0xff] }
 0x5d1   : > { %1398 = vadd.xlane.f32.xlu1 %v1397_v56  ;;  %1395 = vadd.xlane.f32.xlu0 %v1394_v35  ;;  %v1403_v37 = vsel %vm624_vm0, %v1387_v5, 0.0  ;;  %v1400_v1 = vsel %vm624_vm0, %v1386_v38, 0.0  ;;  %v1412_v6 = vsel %vm624_vm0, %v1390_v47, 0.0  ;;  %v1409_v21 = vsel %vm624_vm0, %v1389_v10, 0.0  ;;  %v2018_v59 = vld [vmem:[%s6443_s1 + $0x478] sm:$0xff] }
 0x5d2   : > { %1392 = vadd.xlane.f32.xlu2 %v1391_v49  ;;  %v2013_v49 = vld [vmem:[%s6443_s1 + $0x450] sm:$0xff] }
 0x5d3   : > { %v4864_v4 = vpop.permute.xlu1 %1519 }
 0x5d9   : > { %1407 = vadd.xlane.f32.xlu1 %v1406_v39  ;;  %1404 = vadd.xlane.f32.xlu0 %v1403_v37  ;;  %v2011_v39 = vld [vmem:[%s6443_s1 + $0x440] sm:$0xff] }
 0x5da   : > { %1401 = vadd.xlane.f32.xlu2 %v1400_v1 }
 0x5e1   : > { %1413 = vadd.xlane.f32.xlu0 %v1412_v6  ;;  %v2016_v6 = vld [vmem:[%s6443_s1 + $0x468] sm:$0xff] }
 0x5e2   : > { %1410 = vadd.xlane.f32.xlu2 %v1409_v21  ;;  %v2117_v21 = vld [vmem:[%s6443_s1 + $0x490] sm:$0xff] }
 0x5f2   : > { %1534 = vperm.xlu1 %3914, %v1508_v51  }
 0x5f5   : > { %1524 = vperm.xlu0 %3913, %v1506_v63   ;;  %v2014_v63 = vld [vmem:[%s6443_s1 + $0x458] sm:$0xff] }
 0x5fa   : > { %1529 = vperm.xlu2 %3915, %v1507_v57   ;;  %1549 = vperm.xlu1 %3914, %v1511_v19  }
 0x5fd   : > { %1539 = vperm.xlu0 %3913, %v1509_v41  }
 0x602   : > { %1544 = vperm.xlu2 %3915, %v1510_v58   ;;  %1616 = vperm.xlu1 %3914, %v1590_v55  }
 0x605   : > { %1606 = vperm.xlu0 %3913, %v1588_v61   ;;  %v2115_v61 = vld [vmem:[%s6443_s1 + $0x480] sm:$0xff] }
 0x60a   : > { %1611 = vperm.xlu2 %3915, %v1589_v16   ;;  %1631 = vperm.xlu1 %3914, %v1593_v44   ;;  %v2120_v16 = vld [vmem:[%s6443_s1 + $0x4a8] sm:$0xff] }
 0x60d   : > { %1621 = vperm.xlu0 %3913, %v1591_v43  }
 0x612   : > { %1626 = vperm.xlu2 %3915, %v1592_v42   ;;  %1646 = vperm.xlu1 %3914, %v1596_v0   ;;  %v2017_v42 = vld [vmem:[%s6443_s1 + $0x470] sm:$0xff] }
 0x615   : > { %1636 = vperm.xlu0 %3913, %v1594_v2  }
 0x61a   : > { %1641 = vperm.xlu2 %3915, %v1595_v24   ;;  %1661 = vperm.xlu1 %3914, %v1599_v3   ;;  %v2118_v24 = vld [vmem:[%s6443_s1 + $0x498] sm:$0xff]  ;;  %v2123_v3 = vld [vmem:[%s6443_s1 + $0x4c0] sm:$0xff] }
 0x61d   : > { %1651 = vperm.xlu0 %3913, %v1597_v29  }
 0x622   : > { %1656 = vperm.xlu2 %3915, %v1598_v52   ;;  %1676 = vperm.xlu1 %3914, %v1602_v53   ;;  %v2116_v53 = vld [vmem:[%s6443_s1 + $0x488] sm:$0xff] }
 0x625   : > { %1666 = vperm.xlu0 %3913, %v1600_v23  }
 0x62a   : > { %1671 = vperm.xlu2 %3915, %v1601_v14   ;;  %2031 = vperm.xlu1 %3914, %v2005_v12   ;;  %v2121_v12 = vld [vmem:[%s6443_s1 + $0x4b0] sm:$0xff] }
 0x62d   : > { %1681 = vperm.xlu0 %3913, %v1603_v13   ;;  %v2126_v13 = vld [vmem:[%s6443_s1 + $0x4d8] sm:$0xff] }
 0x632   : > { %2026 = vperm.xlu2 %3915, %v2004_v62   ;;  %2051 = vperm.xlu1 %3914, %v2009_v26   ;;  %v2119_v26 = vld [vmem:[%s6443_s1 + $0x4a0] sm:$0xff] }
 0x635   : > { %2021 = vperm.xlu0 %3913, %v2003_v28   ;;  %v2129_v28 = vld [vmem:[%s6443_s1 + $0x4f0] sm:$0xff] }
 0x63a   : > { %2041 = vperm.xlu2 %3915, %v2007_v20   ;;  %2066 = vperm.xlu1 %3914, %v2012_v48  }
 0x63d   : > { %2036 = vperm.xlu0 %3913, %v2006_v8   ;;  %v2122_v8 = vld [vmem:[%s6443_s1 + $0x4b8] sm:$0xff] }
 0x642   : > { %2056 = vperm.xlu2 %3915, %v2010_v27   ;;  %2081 = vperm.xlu1 %3914, %v2015_v31  }
 0x644   : > { %v1396_v56 = vpop.xlane.xlu0 %1395  ;;  %v1399_v38 = vpop.xlane.xlu1 %1398 }
 0x645   : > { %v1393_v35 = vpop.xlane.xlu2 %1392  ;;  %2046 = vperm.xlu0 %3913, %v2008_v33  }
 0x646   : > { %v1415_v5 = vadd.f32 %v1396_v56, %v1393_v35 }
 0x648   : > { %v1416_v37 = vadd.f32 %v1415_v5, %v1399_v38  ;;  %v2125_v38 = vld [vmem:[%s6443_s1 + $0x4d0] sm:$0xff] }
 0x64a   : > { %2071 = vperm.xlu2 %3915, %v2013_v49   ;;  %2096 = vperm.xlu1 %3914, %v2018_v59   ;;  %v2127_v59 = vld [vmem:[%s6443_s1 + $0x4e0] sm:$0xff] }
 0x64c   : > { %v1405_v47 = vpop.xlane.xlu0 %1404  ;;  %v1408_v57 = vpop.xlane.xlu1 %1407 }
 0x64d   : > { %v1402_v1 = vpop.xlane.xlu2 %1401  ;;  %2061 = vperm.xlu0 %3913, %v2011_v39  }
 0x64e   : > { %v1417_v10 = vadd.f32 %v1416_v37, %v1402_v1 }
 0x650   : > { %v1418_v51 = vadd.f32 %v1417_v10, %v1405_v47 }
 0x652   : > { %2086 = vperm.xlu2 %3915, %v2016_v6   ;;  %2143 = vperm.xlu1 %3914, %v2117_v21   ;;  %v1419_v19 = vadd.f32 %v1418_v51, %v1408_v57 }
 0x654   : > { %v1414_v55 = vpop.xlane.xlu0 %1413 }
 0x655   : > { %v1411_v41 = vpop.xlane.xlu2 %1410  ;;  %2076 = vperm.xlu0 %3913, %v2014_v63  }
 0x656   : > { %v1420_v58 = vadd.f32 %v1419_v19, %v1411_v41 }
 0x658   : > { %v1421_v44 = vadd.f32 %v1420_v58, %v1414_v55 }
 0x65a   : > { %v1422_v43 = vrot.slane %v1421_v44, 4  ;;  %2133 = vperm.xlu2 %3915, %v2115_v61   ;;  %2158 = vperm.xlu1 %3914, %v2120_v16  }
 0x65c   : > { %v1423_v0 = vadd.f32 %v1422_v43, %v1421_v44 }
 0x65d   : > { %2091 = vperm.xlu0 %3913, %v2017_v42   ;;  %v1530_v33 = vpop.permute.xlu2 %1529 }
 0x65e   : > { %v1424_v2 = vrot.slane %v1423_v0, 2 }
 0x660   : > { %v1425_v29 = vadd.f32 %v1424_v2, %v1423_v0 }
 0x662   : > { %v1426_v52 = vrot.slane %v1425_v29, 1  ;;  %2148 = vperm.xlu2 %3915, %v2118_v24   ;;  %2173 = vperm.xlu1 %3914, %v2123_v3  }
 0x664   : > { %v1427_v23 = vadd.f32 %v1426_v52, %v1425_v29  ;;  %v1535_v56 = vpop.permute.xlu1 %1534 }
 0x665   : > { %2138 = vperm.xlu0 %3913, %v2116_v53   ;;  %v1545_v57 = vpop.permute.xlu2 %1544 }
 0x666   : > { %v1428_v14 = vmul.f32 %v1427_v23, %v4313_v54  ;;  %v2124_v54 = vld [vmem:[%s6443_s1 + $0x4c8] sm:$0xff]  ;;  %v3872_v23 = vld [vmem:[%s6446_s4 + $0x18] sm:$0xff] }
 0x667   : > { %v1525_v35 = vpop.permute.xlu0 %1524 }
 0x668   : > { %v1429_v62 = vadd.f32 1e-05, %v1428_v14  ;;  %v3873_v14 = vld [vmem:[%s6446_s4 + $0x20] sm:$0xff] }
 0x66a   : > { %3922 = vrsqrt.f32 %v1429_v62  ;;  %2163 = vperm.xlu2 %3915, %v2121_v12   ;;  %2188 = vperm.xlu1 %3914, %v2126_v13   ;;  %vm1436_vm10 = vweird.f32 %v1429_v62  ;;  %v3874_v12 = vld [vmem:[%s6446_s4 + $0x28] sm:$0xff]  ;;  %v3875_v13 = vld [vmem:[%s6446_s4 + $0x30] sm:$0xff] }
 0x66d   : > { %2153 = vperm.xlu0 %3913, %v2119_v26  }
 0x66f   : > { %v1540_v58 = vpop.permute.xlu0 %1539 }
 0x670   : > { %v3923_v20 = vpop.eup %3922 }
 0x671   : > { %v1431_v48 = vmul.f32 %v3923_v20, %v1429_v62  ;;  %vm1437_vm9 = vweird.f32 %v3923_v20  ;;  %v3876_v62 = vld [vmem:[%s6446_s4 + $0x38] sm:$0xff] }
 0x672   : > { %2178 = vperm.xlu2 %3915, %v2124_v54   ;;  %2203 = vperm.xlu1 %3914, %v2129_v28   ;;  %vm1438_vm11 = vmor %vm1436_vm10, %vm1437_vm9 }
 0x673   : > { %v1432_v27 = vmul.f32 %v3923_v20, %v1431_v48  ;;  %v1612_v48 = vpop.permute.xlu2 %1611 }
 0x675   : > { %v1433_v31 = vmul.f32 0.5, %v1432_v27  ;;  %2168 = vperm.xlu0 %3913, %v2122_v8  }
 0x677   : > { %v1434_v49 = vsub.f32 1.5, %v1433_v31  ;;  %v1607_v26 = vpop.permute.xlu0 %1606 }
 0x679   : > { %v1435_v5 = vmul.f32 %v3923_v20, %v1434_v49 }
 0x67a   : > { %2193 = vperm.xlu2 %3915, %v2127_v59  }
 0x67b   : > { %v1439_v39 = vsel %vm1438_vm11, %v3923_v20, %v1435_v5 }
 0x67c   : > { %v1443_v37 = vmul.f32 %v1439_v39, %v4745_v36  ;;  %v1444_v1 = vmul.f32 %v1439_v39, %v4742_v7  ;;  %v1446_v47 = vmul.f32 %v1439_v39, %v4759_v46  ;;  %v1442_v10 = vmul.f32 %v1439_v39, %v4722_v30  ;;  %v1550_v46 = vpop.permute.xlu1 %1549 }
 0x67d   : > { %v1447_v6 = vmul.f32 %v1439_v39, %v4755_v18  ;;  %v1445_v21 = vmul.f32 %v1439_v39, %v4736_v34  ;;  %2183 = vperm.xlu0 %3913, %v2125_v38   ;;  %v1440_v30 = vmul.f32 %v1439_v39, %v4728_v15  ;;  %v1441_v18 = vmul.f32 %v1439_v39, %v4725_v11 }
 0x67e   : > { %v1500_v51 = vmul.f32 %v4714_v45, %v1444_v1  ;;  %v1502_v63 = vmul.f32 %v4716_v32, %v1446_v47  ;;  %v1499_v7 = vmul.f32 %v4710_v9, %v1443_v37  ;;  %v1498_v55 = vmul.f32 %v4708_v17, %v1442_v10  ;;  %v2128_v32 = vld [vmem:[%s6443_s1 + $0x4e8] sm:$0xff]  ;;  %v1627_v37 = vpop.permute.xlu2 %1626 }
 0x67f   : > { %v1503_v19 = vmul.f32 %v4854_v40, %v1447_v6  ;;  %v1501_v36 = vmul.f32 %v4718_v60, %v1445_v21  ;;  %v1496_v9 = vmul.f32 %v4706_v50, %v1440_v30  ;;  %v1497_v44 = vmul.f32 %v4712_v25, %v1441_v18  ;;  %v3869_v25 = vld [vmem:[%s6446_s4] sm:$0xff]  ;;  %v1622_v59 = vpop.permute.xlu0 %1621 }
 0x680   : > { %v1558_v41 = vadd.f32 %v1545_v57, %v1502_v63  ;;  %v1556_v34 = vadd.f32 %v1535_v56, %v1500_v51  ;;  %v1555_v16 = vadd.f32 %v1530_v33, %v1499_v7  ;;  %v1554_v15 = vadd.f32 %v1525_v35, %v1498_v55 }
 0x681   : > { %v1559_v45 = vadd.f32 %v1550_v46, %v1503_v19  ;;  %v1557_v61 = vadd.f32 %v1540_v58, %v1501_v36  ;;  %v1552_v17 = vadd.f32 %v4856_v22, %v1496_v9  ;;  %v1553_v3 = vadd.f32 %v4864_v4, %v1497_v44  ;;  %v3870_v22 = vld [vmem:[%s6446_s4 + $0x8] sm:$0xff]  ;;  %v3871_v4 = vld [vmem:[%s6446_s4 + $0x10] sm:$0xff] }
 0x682   : > { %v1566_v40 = vmax.f32 %v1558_v41, 0.0  ;;  %v1564_v43 = vmax.f32 %v1556_v34, 0.0  ;;  %v1563_v0 = vmax.f32 %v1555_v16, 0.0  ;;  %v1562_v2 = vmax.f32 %v1554_v15, 0.0 }
 0x683   : > { %v1567_v60 = vmax.f32 %v1559_v45, 0.0  ;;  %v1565_v42 = vmax.f32 %v1557_v61, 0.0  ;;  %v1560_v52 = vmax.f32 %v1552_v17, 0.0  ;;  %v1561_v53 = vmax.f32 %v1553_v3, 0.0 }
 0x684   : > { %v1585_v29 = vpack.c.bf16 %v1563_v0, %v1562_v2  ;;  %v1617_v33 = vpop.permute.xlu1 %1616 }
 0x685   : > { %2198 = vperm.xlu0 %3913, %v2128_v32   ;;  %v1587_v11 = vpack.c.bf16 %v1567_v60, %v1566_v40  ;;  %v1586_v24 = vpack.c.bf16 %v1565_v42, %v1564_v43  ;;  %v1584_v50 = vpack.c.bf16 %v1561_v53, %v1560_v52 }
 0x686   : > { %v1642_v41 = vpop.permute.xlu2 %1641 }
 0x687   : > { %1752 = vmatpush.bf16.msra.mxu2 %v1587_v11  ;;  %v1637_v57 = vpop.permute.xlu0 %1636 }
 0x68b   : > { %1753 = vmatpush.bf16.msra.mxu2 %v1586_v24 }
 0x68c   : > { %v1632_v6 = vpop.permute.xlu1 %1631 }
 0x68e   : > { %v1657_v9 = vpop.permute.xlu2 %1656 }
 0x68f   : > { %1754 = vmatpush.bf16.msra.mxu2 %v1585_v29  ;;  %v1652_v55 = vpop.permute.xlu0 %1651 }
 0x693   : > { %1755 = vmatpush.bf16.msra.mxu2 %v1584_v50 }
 0x694   : > { %v1647_v18 = vpop.permute.xlu1 %1646 }
 0x696   : > { %3786 = vmatmul.msk.bf16.vlgmr.msra.gmra.mxu2 %vm943_vm5, %v3869_v25  ;;  %v1672_v2 = vpop.permute.xlu2 %1671 }
 0x697   : > { %v1667_v60 = vpop.permute.xlu0 %1666 }
 0x69c   : > { %v1662_v15 = vpop.permute.xlu1 %1661 }
 0x69e   : > { %v5037_v25 = vpop.permute.xlu2 %2026 }
 0x69f   : > { %v1682_v11 = vpop.permute.xlu0 %1681  ;;  %6459 = vst [vmem:[#allocation3_spill] sm:$0xff] %v5037_v25 }
 0x6a4   : > { %v1677_v3 = vpop.permute.xlu1 %1676 }
 0x6a6   : > { %3787 = vmatmul.msk.bf16.gmra.mxu2 %vm943_vm5, %v3870_v22 }
 0x6a7   : > { %v5031_v29 = vpop.permute.xlu0 %2021 }
 0x6a8   : > { %6458 = vst [vmem:[#allocation2_spill] sm:$0xff] %v5031_v29 }
 0x6ac   : > { %v5039_v22 = vpop.permute.xlu1 %2031 }
 0x6b6   : > { %3788 = vmatmul.msk.bf16.gmra.mxu2 %vm943_vm5, %v3871_v4 }
 0x6c6   : > { %3789 = vmatmul.msk.bf16.gmra.mxu2 %vm943_vm5, %v3872_v23  ;;  %v5041_v23 = vpop.permute.xlu0 %2036 }
 0x6c7   : > { %6460 = vst [vmem:[#allocation4_spill] sm:$0xff] %v5041_v23 }
 0x6d6   : > { %3790 = vmatmul.msk.bf16.gmra.mxu2 %vm943_vm5, %v3873_v14 }
 0x6e6   : > { %3791 = vmatmul.msk.bf16.gmra.mxu2 %vm943_vm5, %v3874_v12 }
 0x6f6   : > { %3792 = vmatmul.msk.bf16.gmra.mxu2 %vm943_vm5, %v3875_v13  ;;  %v5047_v13 = vpop.permute.xlu2 %2041 }
 0x706   : > { %3793 = vmatmul.msk.bf16.gmra.mxu2 %vm943_vm5, %v3876_v62  ;;  %vm3618_vm5 = vcmask 7168  }
 0x719   : > { %v1757_v54 = vpop.f32.mrf.mxu2 }
 0x71a   : > { %v4983_v28 = vadd.f32 %v1757_v54, %v1607_v26  ;;  %v5049_v26 = vpop.permute.xlu1 %2051 }
 0x71c   : > { %v1797_v20 = vsel %vm624_vm0, %v4983_v28, 0.0 }
 0x71d   : > { %1798 = vadd.xlane.f32.xlu2 %v1797_v20  ;;  %v5053_v20 = vpop.permute.xlu0 %2046 }
 0x721   : > { %v1759_v8 = vpop.f32.mrf.mxu2 }
 0x722   : > { %v4987_v27 = vadd.f32 %v1759_v8, %v1612_v48 }
 0x724   : > { %v1800_v31 = vsel %vm624_vm0, %v4987_v27, 0.0 }
 0x725   : > { %1801 = vadd.xlane.f32.xlu1 %v1800_v31  ;;  %v5057_v31 = vpop.permute.xlu2 %2056 }
 0x729   : > { %v1762_v56 = vpop.f32.mrf.mxu2 }
 0x72a   : > { %v4991_v35 = vadd.f32 %v1762_v56, %v1617_v33  ;;  %v5061_v56 = vpop.permute.xlu1 %2066 }
 0x72c   : > { %v1803_v49 = vsel %vm624_vm0, %v4991_v35, 0.0 }
 0x72d   : > { %1804 = vadd.xlane.f32.xlu0 %v1803_v49 }
 0x731   : > { %v1764_v5 = vpop.f32.mrf.mxu2 }
 0x732   : > { %v4995_v38 = vadd.f32 %v1764_v5, %v1622_v59  ;;  %v5065_v59 = vpop.permute.xlu0 %2061  ;;  %v2284_v5 = vld [vmem:[%s6443_s1 + $0x508] sm:$0xff] }
 0x734   : > { %v1806_v39 = vsel %vm624_vm0, %v4995_v38, 0.0 }
 0x735   : > { %1807 = vadd.xlane.f32.xlu2 %v1806_v39  ;;  %v5070_v39 = vpop.permute.xlu2 %2071 }
 0x739   : > { %v1767_v1 = vpop.f32.mrf.mxu2 }
 0x73a   : > { %v4999_v47 = vadd.f32 %v1767_v1, %v1627_v37  ;;  %v5072_v37 = vpop.permute.xlu1 %2081  ;;  %v2283_v1 = vld [vmem:[%s6443_s1 + $0x500] sm:$0xff] }
 0x73c   : > { %v1809_v10 = vsel %vm624_vm0, %v4999_v47, 0.0 }
 0x73d   : > { %1810 = vadd.xlane.f32.xlu1 %v1809_v10  ;;  %v5077_v10 = vpop.permute.xlu0 %2076 }
 0x741   : > { %v1769_v21 = vpop.f32.mrf.mxu2 }
 0x742   : > { %v5003_v51 = vadd.f32 %v1769_v21, %v1632_v6  ;;  %v5079_v6 = vpop.permute.xlu2 %2086  ;;  %v5081_v21 = vpop.permute.xlu1 %2096 }
 0x744   : > { %v1812_v63 = vsel %vm624_vm0, %v5003_v51, 0.0 }
 0x745   : > { %1813 = vadd.xlane.f32.xlu0 %v1812_v63  ;;  %v5083_v63 = vpop.permute.xlu0 %2091 }
 0x749   : > { %v1772_v19 = vpop.f32.mrf.mxu2 }
 0x74a   : > { %v5007_v36 = vadd.f32 %v1772_v19, %v1637_v57  ;;  %v2130_v57 = vld [vmem:[%s6443_s1 + $0x4f8] sm:$0xff]  ;;  %v5088_v19 = vpop.permute.xlu2 %2133 }
 0x74b   : > { %6461 = vst [vmem:[#allocation5_spill] sm:$0xff] %v5088_v19 }
 0x74c   : > { %v1815_v7 = vsel %vm624_vm0, %v5007_v36, 0.0 }
 0x74d   : > { %1816 = vadd.xlane.f32.xlu2 %v1815_v7  ;;  %v5090_v7 = vpop.permute.xlu1 %2143 }
 0x74e   : > { %6462 = vst [vmem:[#allocation6_spill] sm:$0xff] %v5090_v7 }
 0x751   : > { %v1774_v46 = vpop.f32.mrf.mxu2 }
 0x752   : > { %v5011_v58 = vadd.f32 %v1774_v46, %v1642_v41  ;;  %v5092_v41 = vpop.permute.xlu0 %2138  ;;  %v5094_v46 = vpop.permute.xlu2 %2148 }
 0x753   : > { %6463 = vst [vmem:[#allocation7_spill] sm:$0xff] %v5092_v41 }
 0x754   : > { %v1818_v30 = vsel %vm624_vm0, %v5011_v58, 0.0  ;;  %6464 = vst [vmem:[#allocation8_spill] sm:$0xff] %v5094_v46  ;;  %v3942_v46 = vmov 2048.0  }
 0x755   : > { %1819 = vadd.xlane.f32.xlu1 %v1818_v30  ;;  %v5096_v30 = vpop.permute.xlu1 %2158  ;;  %3924 = vrcp.f32 %v3942_v46 }
 0x756   : > { %6465 = vst [vmem:[#allocation9_spill] sm:$0xff] %v5096_v30 }
 0x759   : > { %v1777_v34 = vpop.f32.mrf.mxu2 }
 0x75a   : > { %v5015_v45 = vadd.f32 %v1777_v34, %v1647_v18  ;;  %v5098_v18 = vpop.permute.xlu0 %2153  ;;  %v5100_v34 = vpop.permute.xlu2 %2163 }
 0x75b   : > { %v3925_v30 = vpop.eup %3924 }
 0x75c   : > { %v1821_v61 = vsel %vm624_vm0, %v5015_v45, 0.0  ;;  %vm1871_vm12 = vweird.f32 %v3925_v30 }
 0x75d   : > { %1822 = vadd.xlane.f32.xlu0 %v1821_v61 }
 0x761   : > { %v1779_v32 = vpop.f32.mrf.mxu2 }
 0x762   : > { %v5019_v40 = vadd.f32 %v1779_v32, %v1652_v55  ;;  %v5102_v55 = vpop.permute.xlu1 %2173  ;;  %v5104_v61 = vpop.permute.xlu0 %2168 }
 0x763   : > { %v5106_v32 = vpop.permute.xlu2 %2178 }
 0x764   : > { %v1824_v16 = vsel %vm624_vm0, %v5019_v40, 0.0 }
 0x765   : > { %1825 = vadd.xlane.f32.xlu2 %v1824_v16 }
 0x769   : > { %v1782_v44 = vpop.f32.mrf.mxu2 }
 0x76a   : > { %v5023_v43 = vadd.f32 %v1782_v44, %v1657_v9  ;;  %v5110_v16 = vpop.permute.xlu0 %2183 }
 0x76b   : > { %v5112_v9 = vpop.permute.xlu2 %2193 }
 0x76c   : > { %v1827_v42 = vsel %vm624_vm0, %v5023_v43, 0.0 }
 0x76d   : > { %1828 = vadd.xlane.f32.xlu1 %v1827_v42 }
 0x771   : > { %v1784_v17 = vpop.f32.mrf.mxu2 }
 0x772   : > { %v5027_v0 = vadd.f32 %v1784_v17, %v1662_v15  ;;  %v5116_v15 = vpop.permute.xlu0 %2198 }
 0x774   : > { %v1830_v24 = vsel %vm624_vm0, %v5027_v0, 0.0 }
 0x775   : > { %1831 = vadd.xlane.f32.xlu0 %v1830_v24 }
 0x779   : > { %v1787_v52 = vpop.f32.mrf.mxu2 }
 0x77a   : > { %v5033_v53 = vadd.f32 %v1787_v52, %v1667_v60  ;;  %v5108_v60 = vpop.permute.xlu1 %2188 }
 0x77c   : > { %v1833_v50 = vsel %vm624_vm0, %v5033_v53, 0.0 }
 0x77d   : > { %1834 = vadd.xlane.f32.xlu2 %v1833_v50 }
 0x781   : > { %v1789_v4 = vpop.f32.mrf.mxu2 }
 0x782   : > { %v5043_v14 = vadd.f32 %v1789_v4, %v1672_v2  ;;  %v5114_v44 = vpop.permute.xlu1 %2203 }
 0x784   : > { %v1836_v12 = vsel %vm624_vm0, %v5043_v14, 0.0 }
 0x785   : > { %1837 = vadd.xlane.f32.xlu1 %v1836_v12 }
 0x789   : > { %v1792_v62 = vpop.f32.mrf.mxu2 }
 0x78a   : > { %v5051_v54 = vadd.f32 %v1792_v62, %v1677_v3 }
 0x78c   : > { %v1839_v48 = vsel %vm624_vm0, %v5051_v54, 0.0 }
 0x78d   : > { %1840 = vadd.xlane.f32.xlu0 %v1839_v48 }
 0x790   : > { %v1799_v42 = vpop.xlane.xlu2 %1798 }
 0x791   : > { %v1794_v8 = vpop.f32.mrf.mxu2 }
 0x792   : > { %v5059_v33 = vadd.f32 %v1794_v8, %v1682_v11 }
 0x794   : > { %v1842_v49 = vsel %vm624_vm0, %v5059_v33, 0.0 }
 0x795   : > { %1843 = vadd.xlane.f32.xlu2 %v1842_v49 }
 0x798   : > { %v1802_v11 = vpop.xlane.xlu1 %1801 }
 0x799   : > { %v1845_v52 = vadd.f32 %v1802_v11, %v1799_v42 }
 0x79e   : > { %2322 = vperm.xlu1 %3914, %v2284_v5  }
 0x7a0   : > { %v1805_v17 = vpop.xlane.xlu0 %1804 }
 0x7a1   : > { %2317 = vperm.xlu0 %3913, %v2283_v1   ;;  %v1846_v50 = vadd.f32 %v1845_v52, %v1805_v17  ;;  %v1867_v52 = vmul.f32 2048.0, %v3925_v30 }
 0x7a8   : > { %v1808_v2 = vpop.xlane.xlu2 %1807 }
 0x7a9   : > { %v1847_v12 = vadd.f32 %v1846_v50, %v1808_v2 }
 0x7ad   : > { %2208 = vperm.xlu2 %3915, %v2130_v57  }
 0x7b0   : > { %v1811_v24 = vpop.xlane.xlu1 %1810 }
 0x7b1   : > { %v1848_v48 = vadd.f32 %v1847_v12, %v1811_v24 }
 0x7b8   : > { %v1814_v3 = vpop.xlane.xlu0 %1813 }
 0x7b9   : > { %v1849_v49 = vadd.f32 %v1848_v48, %v1814_v3  ;;  %v1868_v3 = vsub.f32 1.0, %v1867_v52 }
 0x7bb   : > { %v1869_v48 = vmul.f32 %v3925_v30, %v1868_v3 }
 0x7bd   : > { %v1870_v46 = vadd.f32 %v3925_v30, %v1869_v48 }
 0x7c0   : > { %v1817_v4 = vpop.xlane.xlu2 %1816 }
 0x7c1   : > { %v1850_v5 = vadd.f32 %v1849_v49, %v1817_v4 }
 0x7c8   : > { %v1820_v62 = vpop.xlane.xlu1 %1819 }
 0x7c9   : > { %v1851_v57 = vadd.f32 %v1850_v5, %v1820_v62 }
 0x7d0   : > { %v1823_v8 = vpop.xlane.xlu0 %1822 }
 0x7d1   : > { %v1852_v19 = vadd.f32 %v1851_v57, %v1823_v8 }
 0x7d8   : > { %v1826_v1 = vpop.xlane.xlu2 %1825 }
 0x7d9   : > { %v1853_v29 = vadd.f32 %v1852_v19, %v1826_v1 }
 0x7e0   : > { %v1829_v41 = vpop.xlane.xlu1 %1828 }
 0x7e1   : > { %v1854_v7 = vadd.f32 %v1853_v29, %v1829_v41  ;;  %v5118_v41 = vsel %vm1871_vm12, %v3925_v30, %v1870_v46 }
 0x7e8   : > { %v1832_v25 = vpop.xlane.xlu0 %1831 }
 0x7e9   : > { %v1855_v42 = vadd.f32 %v1854_v7, %v1832_v25 }
 0x7f0   : > { %v1835_v23 = vpop.xlane.xlu2 %1834 }
 0x7f1   : > { %v1856_v17 = vadd.f32 %v1855_v42, %v1835_v23 }
 0x7f8   : > { %v1838_v11 = vpop.xlane.xlu1 %1837 }
 0x7f9   : > { %v1857_v24 = vadd.f32 %v1856_v17, %v1838_v11 }
 0x800   : > { %v1841_v2 = vpop.xlane.xlu0 %1840 }
 0x801   : > { %v1858_v50 = vadd.f32 %v1857_v24, %v1841_v2 }
 0x808   : > { %v1844_v4 = vpop.xlane.xlu2 %1843 }
 0x809   : > { %v1859_v12 = vadd.f32 %v1858_v50, %v1844_v4 }
 0x80b   : > { %v1860_v62 = vrot.slane %v1859_v12, 4 }
 0x80d   : > { %v1861_v8 = vadd.f32 %v1860_v62, %v1859_v12 }
 0x80f   : > { %v1862_v49 = vrot.slane %v1861_v8, 2 }
 0x811   : > { %v1863_v19 = vadd.f32 %v1862_v49, %v1861_v8 }
 0x813   : > { %v1864_v29 = vrot.slane %v1863_v19, 1 }
 0x815   : > { %v1865_v25 = vadd.f32 %v1864_v29, %v1863_v19 }
 0x817   : > { %v5121_v23 = vmul.f32 %v5118_v41, %v1865_v25 }
 0x819   : > { %v5125_v7 = vsub.f32 %v4991_v35, %v5121_v23  ;;  %v5129_v5 = vsub.f32 %v4987_v27, %v5121_v23  ;;  %v5133_v1 = vsub.f32 %v4983_v28, %v5121_v23  ;;  %v5143_v35 = vsub.f32 %v5003_v51, %v5121_v23 }
 0x81a   : > { %v5150_v17 = vsub.f32 %v4999_v47, %v5121_v23  ;;  %v5154_v2 = vsub.f32 %v4995_v38, %v5121_v23  ;;  %v5166_v3 = vsub.f32 %v5015_v45, %v5121_v23  ;;  %v5170_v38 = vsub.f32 %v5011_v58, %v5121_v23 }
 0x81b   : > { %v1892_v30 = vmul.f32 %v5125_v7, %v5125_v7  ;;  %v1891_v57 = vmul.f32 %v5129_v5, %v5129_v5  ;;  %v1890_v42 = vmul.f32 %v5133_v1, %v5133_v1  ;;  %v1895_v51 = vmul.f32 %v5143_v35, %v5143_v35 }
 0x81c   : > { %v1894_v52 = vmul.f32 %v5150_v17, %v5150_v17  ;;  %v1893_v24 = vmul.f32 %v5154_v2, %v5154_v2  ;;  %v5175_v12 = vsub.f32 %v5007_v36, %v5121_v23  ;;  %v1898_v62 = vmul.f32 %v5166_v3, %v5166_v3 }
 0x81d   : > { %v1912_v27 = vsel %vm624_vm0, %v1892_v30, 0.0  ;;  %v1909_v11 = vsel %vm624_vm0, %v1891_v57, 0.0  ;;  %v1906_v28 = vsel %vm624_vm0, %v1890_v42, 0.0  ;;  %v1921_v50 = vsel %vm624_vm0, %v1895_v51, 0.0 }
 0x81e   : > { %1913 = vadd.xlane.f32.xlu2 %v1912_v27  ;;  %1910 = vadd.xlane.f32.xlu0 %v1909_v11  ;;  %v1918_v47 = vsel %vm624_vm0, %v1894_v52, 0.0  ;;  %v1915_v4 = vsel %vm624_vm0, %v1893_v24, 0.0  ;;  %v1897_v45 = vmul.f32 %v5170_v38, %v5170_v38  ;;  %v1896_v48 = vmul.f32 %v5175_v12, %v5175_v12  ;;  %v2285_v24 = vld [vmem:[%s6443_s1 + $0x510] sm:$0xff] }
 0x81f   : > { %1907 = vadd.xlane.f32.xlu1 %v1906_v28  ;;  %v1930_v58 = vsel %vm624_vm0, %v1898_v62, 0.0  ;;  %v5187_v49 = vsub.f32 %v5027_v0, %v5121_v23  ;;  %v5191_v36 = vsub.f32 %v5023_v43, %v5121_v23  ;;  %v5196_v19 = vsub.f32 %v5019_v40, %v5121_v23  ;;  %v2290_v62 = vld [vmem:[%s6443_s1 + $0x538] sm:$0xff] }
 0x820   : > { %v1927_v8 = vsel %vm624_vm0, %v1897_v45, 0.0  ;;  %v1924_v46 = vsel %vm624_vm0, %v1896_v48, 0.0  ;;  %v5208_v57 = vsub.f32 %v5051_v54, %v5121_v23  ;;  %v5212_v40 = vsub.f32 %v5043_v14, %v5121_v23  ;;  %v2292_v45 = vld [vmem:[%s6443_s1 + $0x548] sm:$0xff]  ;;  %v2291_v48 = vld [vmem:[%s6443_s1 + $0x540] sm:$0xff] }
 0x821   : > { %v1901_v29 = vmul.f32 %v5187_v49, %v5187_v49  ;;  %v1900_v0 = vmul.f32 %v5191_v36, %v5191_v36  ;;  %v1899_v25 = vmul.f32 %v5196_v19, %v5196_v19  ;;  %v5217_v27 = vsub.f32 %v5033_v53, %v5121_v23  ;;  %v2286_v53 = vld [vmem:[%s6443_s1 + $0x518] sm:$0xff] }
 0x822   : > { %v1904_v11 = vmul.f32 %v5208_v57, %v5208_v57  ;;  %v1903_v54 = vmul.f32 %v5212_v40, %v5212_v40 }
 0x823   : > { %v1939_v43 = vsel %vm624_vm0, %v1901_v29, 0.0  ;;  %v1936_v30 = vsel %vm624_vm0, %v1900_v0, 0.0  ;;  %v1933_v42 = vsel %vm624_vm0, %v1899_v25, 0.0  ;;  %v1902_v28 = vmul.f32 %v5217_v27, %v5217_v27  ;;  %v2296_v29 = vld [vmem:[%s6443_s1 + $0x568] sm:$0xff]  ;;  %v2298_v0 = vld [vmem:[%s6443_s1 + $0x578] sm:$0xff]  ;;  %v2297_v25 = vld [vmem:[%s6443_s1 + $0x570] sm:$0xff] }
 0x824   : > { %v1948_v14 = vsel %vm624_vm0, %v1904_v11, 0.0  ;;  %v1945_v51 = vsel %vm624_vm0, %v1903_v54, 0.0  ;;  %v2304_v11 = vld [vmem:[%s6443_s1 + $0x5a8] sm:$0xff]  ;;  %v2303_v54 = vld [vmem:[%s6443_s1 + $0x5a0] sm:$0xff] }
 0x825   : > { %v1942_v52 = vsel %vm624_vm0, %v1902_v28, 0.0  ;;  %v2307_v28 = vld [vmem:[%s6443_s1 + $0x5c0] sm:$0xff] }
 0x826   : > { %1922 = vadd.xlane.f32.xlu2 %v1921_v50  ;;  %1919 = vadd.xlane.f32.xlu0 %v1918_v47  ;;  %v2287_v50 = vld [vmem:[%s6443_s1 + $0x520] sm:$0xff]  ;;  %v2289_v47 = vld [vmem:[%s6443_s1 + $0x530] sm:$0xff] }
 0x827   : > { %1916 = vadd.xlane.f32.xlu1 %v1915_v4  ;;  %v2288_v4 = vld [vmem:[%s6443_s1 + $0x528] sm:$0xff] }
 0x82e   : > { %1931 = vadd.xlane.f32.xlu2 %v1930_v58  ;;  %1928 = vadd.xlane.f32.xlu0 %v1927_v8  ;;  %v2293_v58 = vld [vmem:[%s6443_s1 + $0x550] sm:$0xff]  ;;  %v2295_v8 = vld [vmem:[%s6443_s1 + $0x560] sm:$0xff] }
 0x82f   : > { %1925 = vadd.xlane.f32.xlu1 %v1924_v46  ;;  %v2294_v46 = vld [vmem:[%s6443_s1 + $0x558] sm:$0xff] }
 0x836   : > { %1940 = vadd.xlane.f32.xlu2 %v1939_v43  ;;  %1937 = vadd.xlane.f32.xlu0 %v1936_v30  ;;  %v2299_v43 = vld [vmem:[%s6443_s1 + $0x580] sm:$0xff]  ;;  %v2301_v30 = vld [vmem:[%s6443_s1 + $0x590] sm:$0xff] }
 0x837   : > { %1934 = vadd.xlane.f32.xlu1 %v1933_v42  ;;  %v2300_v42 = vld [vmem:[%s6443_s1 + $0x588] sm:$0xff] }
 0x83e   : > { %1949 = vadd.xlane.f32.xlu2 %v1948_v14  ;;  %1946 = vadd.xlane.f32.xlu0 %v1945_v51  ;;  %v2306_v14 = vld [vmem:[%s6443_s1 + $0x5b8] sm:$0xff] }
 0x83f   : > { %1943 = vadd.xlane.f32.xlu1 %v1942_v52  ;;  %v2310_v51 = vld [vmem:[%s6443_s1 + $0x5d8] sm:$0xff]  ;;  %v2309_v52 = vld [vmem:[%s6443_s1 + $0x5d0] sm:$0xff] }
 0x852   : > { %2332 = vperm.xlu0 %3913, %v2286_v53   ;;  %v2313_v53 = vld [vmem:[%s6443_s1 + $0x5f0] sm:$0xff] }
 0x856   : > { %2327 = vperm.xlu2 %3915, %v2285_v24   ;;  %v5302_v24 = vsub.f32 %v5059_v33, %v5121_v23  ;;  %v3043_v33 = vld [vmem:[%s6443_s1 + $0x608] sm:$0xff]  ;;  %v3045_v23 = vld [vmem:[%s6443_s1 + $0x618] sm:$0xff] }
 0x858   : > { %2337 = vperm.xlu1 %3914, %v2287_v50   ;;  %v2312_v50 = vld [vmem:[%s6443_s1 + $0x5e8] sm:$0xff] }
 0x85a   : > { %2347 = vperm.xlu0 %3913, %v2289_v47   ;;  %v1905_v47 = vmul.f32 %v5302_v24, %v5302_v24 }
 0x85e   : > { %2342 = vperm.xlu2 %3915, %v2288_v4   ;;  %v3042_v4 = vld [vmem:[%s6443_s1 + $0x600] sm:$0xff] }
 0x860   : > { %2352 = vperm.xlu1 %3914, %v2290_v62   ;;  %v1951_v62 = vsel %vm624_vm0, %v1905_v47, 0.0  ;;  %v3061_v47 = vld [vmem:[%s6443_s1 + $0x698] sm:$0xff] }
 0x862   : > { %2362 = vperm.xlu0 %3913, %v2292_v45   ;;  %v3046_v45 = vld [vmem:[%s6443_s1 + $0x620] sm:$0xff] }
 0x866   : > { %2357 = vperm.xlu2 %3915, %v2291_v48   ;;  %v5322_v48 = vpop.permute.xlu1 %2322 }
 0x868   : > { %2367 = vperm.xlu1 %3914, %v2293_v58   ;;  %v3047_v58 = vld [vmem:[%s6443_s1 + $0x628] sm:$0xff] }
 0x86a   : > { %2377 = vperm.xlu0 %3913, %v2295_v8   ;;  %v3049_v8 = vld [vmem:[%s6443_s1 + $0x638] sm:$0xff] }
 0x86e   : > { %2372 = vperm.xlu2 %3915, %v2294_v46  }
 0x870   : > { %2382 = vperm.xlu1 %3914, %v2296_v29   ;;  %v3050_v29 = vld [vmem:[%s6443_s1 + $0x640] sm:$0xff] }
 0x872   : > { %2392 = vperm.xlu0 %3913, %v2298_v0   ;;  %v2302_v0 = vld [vmem:[%s6443_s1 + $0x598] sm:$0xff] }
 0x876   : > { %2387 = vperm.xlu2 %3915, %v2297_v25   ;;  %v3052_v25 = vld [vmem:[%s6443_s1 + $0x650] sm:$0xff] }
 0x878   : > { %2397 = vperm.xlu1 %3914, %v2299_v43  }
 0x87a   : > { %2407 = vperm.xlu0 %3913, %v2301_v30   ;;  %v3053_v30 = vld [vmem:[%s6443_s1 + $0x658] sm:$0xff] }
 0x87e   : > { %2402 = vperm.xlu2 %3915, %v2300_v42   ;;  %v2305_v42 = vld [vmem:[%s6443_s1 + $0x5b0] sm:$0xff] }
 0x882   : > { %2422 = vperm.xlu0 %3913, %v2304_v11   ;;  %v3055_v11 = vld [vmem:[%s6443_s1 + $0x668] sm:$0xff] }
 0x886   : > { %2417 = vperm.xlu2 %3915, %v2303_v54   ;;  %v3056_v54 = vld [vmem:[%s6443_s1 + $0x670] sm:$0xff] }
 0x88a   : > { %2437 = vperm.xlu0 %3913, %v2307_v28   ;;  %v2308_v28 = vld [vmem:[%s6443_s1 + $0x5c8] sm:$0xff] }
 0x88e   : > { %2432 = vperm.xlu2 %3915, %v2306_v14  }
 0x892   : > { %2452 = vperm.xlu0 %3913, %v2310_v51   ;;  %v1908_v46 = vpop.xlane.xlu1 %1907  ;;  %v3058_v51 = vld [vmem:[%s6443_s1 + $0x680] sm:$0xff] }
 0x896   : > { %2447 = vperm.xlu2 %3915, %v2309_v52   ;;  %v3059_v52 = vld [vmem:[%s6443_s1 + $0x688] sm:$0xff] }
 0x89a   : > { %2467 = vperm.xlu0 %3913, %v2313_v53   ;;  %v1917_v43 = vpop.xlane.xlu1 %1916  ;;  %v2311_v53 = vld [vmem:[%s6443_s1 + $0x5e0] sm:$0xff] }
 0x89e   : > { %2462 = vperm.xlu2 %3915, %v2312_v50  }
 0x8a2   : > { %1952 = vadd.xlane.f32.xlu1 %v1951_v62  ;;  %3076 = vperm.xlu0 %3913, %v3042_v4   ;;  %v1926_v14 = vpop.xlane.xlu1 %1925  ;;  %v3062_v4 = vld [vmem:[%s6443_s1 + $0x6a0] sm:$0xff]  ;;  %v2314_v62 = vld [vmem:[%s6443_s1 + $0x5f8] sm:$0xff] }
 0x8a6   : > { %3081 = vperm.xlu2 %3915, %v3043_v33   ;;  %v3064_v33 = vld [vmem:[%s6443_s1 + $0x6b0] sm:$0xff] }
 0x8aa   : > { %3091 = vperm.xlu0 %3913, %v3045_v23   ;;  %v1935_v50 = vpop.xlane.xlu1 %1934  ;;  %v5375_v23 = vpop.permute.xlu0 %2317 }
 0x8ae   : > { %3096 = vperm.xlu2 %3915, %v3046_v45  }
 0x8b2   : > { %3101 = vperm.xlu0 %3913, %v3047_v58   ;;  %v1944_v45 = vpop.xlane.xlu1 %1943  ;;  %v3065_v58 = vld [vmem:[%s6443_s1 + $0x6b8] sm:$0xff] }
 0x8b6   : > { %3111 = vperm.xlu2 %3915, %v3049_v8   ;;  %v3044_v8 = vld [vmem:[%s6443_s1 + $0x610] sm:$0xff] }
 0x8ba   : > { %3116 = vperm.xlu0 %3913, %v3050_v29   ;;  %v5383_v29 = vpop.permute.xlu2 %2208 }
 0x8bb   : > { %2412 = vperm.xlu1 %3914, %v2302_v0   ;;  %v3067_v0 = vld [vmem:[%s6443_s1 + $0x6c8] sm:$0xff] }
 0x8be   : > { %3126 = vperm.xlu2 %3915, %v3052_v25   ;;  %v1911_v25 = vpop.xlane.xlu0 %1910 }
 0x8c2   : > { %3131 = vperm.xlu0 %3913, %v3053_v30  }
 0x8c3   : > { %2427 = vperm.xlu1 %3914, %v2305_v42   ;;  %v3068_v42 = vld [vmem:[%s6443_s1 + $0x6d0] sm:$0xff] }
 0x8c6   : > { %3141 = vperm.xlu2 %3915, %v3055_v11   ;;  %v1954_v11 = vadd.f32 %v1911_v25, %v1908_v46  ;;  %v3071_v46 = vld [vmem:[%s6443_s1 + $0x6e8] sm:$0xff] }
 0x8ca   : > { %3146 = vperm.xlu0 %3913, %v3056_v54   ;;  %v5388_v30 = vpop.permute.xlu1 %2337  ;;  %v3048_v54 = vld [vmem:[%s6443_s1 + $0x630] sm:$0xff] }
 0x8cb   : > { %2442 = vperm.xlu1 %3914, %v2308_v28   ;;  %v1914_v28 = vpop.xlane.xlu2 %1913 }
 0x8ce   : > { %3156 = vperm.xlu2 %3915, %v3058_v51   ;;  %v3070_v51 = vld [vmem:[%s6443_s1 + $0x6e0] sm:$0xff] }
 0x8d2   : > { %3161 = vperm.xlu0 %3913, %v3059_v52   ;;  %v1955_v52 = vadd.f32 %v1954_v11, %v1914_v28  ;;  %v3268_v28 = vld [vmem:[%s6443_s1 + $0x710] sm:$0xff] }
 0x8d3   : > { %2457 = vperm.xlu1 %3914, %v2311_v53  }
 0x8d4   : > { %v1956_v53 = vadd.f32 %v1955_v52, %v1917_v43  ;;  %v1923_v43 = vpop.xlane.xlu2 %1922 }
 0x8d6   : > { %3171 = vperm.xlu2 %3915, %v3061_v47   ;;  %v5399_v47 = vpop.permute.xlu1 %2352 }
 0x8da   : > { %3176 = vperm.xlu0 %3913, %v3062_v4   ;;  %v3051_v4 = vld [vmem:[%s6443_s1 + $0x648] sm:$0xff] }
 0x8db   : > { %2472 = vperm.xlu1 %3914, %v2314_v62   ;;  %v1920_v62 = vpop.xlane.xlu0 %1919 }
 0x8dc   : > { %v1932_v52 = vpop.xlane.xlu2 %1931 }
 0x8de   : > { %3186 = vperm.xlu2 %3915, %v3064_v33   ;;  %v1957_v33 = vadd.f32 %v1956_v53, %v1920_v62  ;;  %v5416_v11 = vpop.permute.xlu1 %2367 }
 0x8e2   : > { %3191 = vperm.xlu0 %3913, %v3065_v58   ;;  %v3073_v58 = vld [vmem:[%s6443_s1 + $0x6f8] sm:$0xff] }
 0x8e3   : > { %3086 = vperm.xlu1 %3914, %v3044_v8   ;;  %v1958_v8 = vadd.f32 %v1957_v33, %v1923_v43  ;;  %v3271_v33 = vld [vmem:[%s6443_s1 + $0x728] sm:$0xff] }
 0x8e5   : > { %v1959_v25 = vadd.f32 %v1958_v8, %v1926_v14  ;;  %v3269_v14 = vld [vmem:[%s6443_s1 + $0x718] sm:$0xff]  ;;  %v3272_v8 = vld [vmem:[%s6443_s1 + $0x730] sm:$0xff] }
 0x8e6   : > { %3201 = vperm.xlu2 %3915, %v3067_v0   ;;  %v3266_v0 = vld [vmem:[%s6443_s1 + $0x700] sm:$0xff]  ;;  %v5427_v62 = vpop.permute.xlu1 %2382 }
 0x8ea   : > { %3206 = vperm.xlu0 %3913, %v3068_v42   ;;  %v3054_v42 = vld [vmem:[%s6443_s1 + $0x660] sm:$0xff] }
 0x8eb   : > { %3106 = vperm.xlu1 %3914, %v3048_v54   ;;  %v1929_v54 = vpop.xlane.xlu0 %1928 }
 0x8ee   : > { %3216 = vperm.xlu2 %3915, %v3070_v51   ;;  %v1960_v51 = vadd.f32 %v1959_v25, %v1929_v54 }
 0x8f0   : > { %v1961_v53 = vadd.f32 %v1960_v51, %v1932_v52  ;;  %v3275_v52 = vld [vmem:[%s6443_s1 + $0x748] sm:$0xff] }
 0x8f2   : > { %3221 = vperm.xlu0 %3913, %v3071_v46   ;;  %v3057_v46 = vld [vmem:[%s6443_s1 + $0x678] sm:$0xff] }
 0x8f3   : > { %3121 = vperm.xlu1 %3914, %v3051_v4   ;;  %v1962_v4 = vadd.f32 %v1961_v53, %v1935_v50  ;;  %v1941_v50 = vpop.xlane.xlu2 %1940  ;;  %v3063_v53 = vld [vmem:[%s6443_s1 + $0x6a8] sm:$0xff] }
 0x8f6   : > { %3231 = vperm.xlu2 %3915, %v3073_v58   ;;  %v1938_v58 = vpop.xlane.xlu0 %1937 }
 0x8f7   : > { %v1963_v43 = vadd.f32 %v1962_v4, %v1938_v58 }
 0x8f9   : > { %v1964_v25 = vadd.f32 %v1963_v43, %v1941_v50  ;;  %v3278_v43 = vld [vmem:[%s6443_s1 + $0x760] sm:$0xff] }
 0x8fa   : > { %3300 = vperm.xlu0 %3913, %v3266_v0   ;;  %v3060_v0 = vld [vmem:[%s6443_s1 + $0x690] sm:$0xff] }
 0x8fb   : > { %3136 = vperm.xlu1 %3914, %v3054_v42   ;;  %v3274_v42 = vld [vmem:[%s6443_s1 + $0x740] sm:$0xff]  ;;  %v1965_v54 = vadd.f32 %v1964_v25, %v1944_v45  ;;  %v3277_v45 = vld [vmem:[%s6443_s1 + $0x758] sm:$0xff]  ;;  %v3280_v25 = vld [vmem:[%s6443_s1 + $0x770] sm:$0xff] }
 0x8fe   : > { %3310 = vperm.xlu2 %3915, %v3268_v28   ;;  %v5441_v28 = vpop.permute.xlu1 %2397  ;;  %v1947_v51 = vpop.xlane.xlu0 %1946 }
 0x902   : > { %3315 = vperm.xlu0 %3913, %v3269_v14   ;;  %v1966_v14 = vadd.f32 %v1965_v54, %v1947_v51  ;;  %v3281_v51 = vld [vmem:[%s6443_s1 + $0x778] sm:$0xff] }
 0x903   : > { %3151 = vperm.xlu1 %3914, %v3057_v46   ;;  %v1950_v46 = vpop.xlane.xlu2 %1949 }
 0x904   : > { %v1967_v4 = vadd.f32 %v1966_v14, %v1950_v46  ;;  %v3069_v14 = vld [vmem:[%s6443_s1 + $0x6d8] sm:$0xff]  ;;  %v3283_v46 = vld [vmem:[%s6443_s1 + $0x788] sm:$0xff] }
 0x906   : > { %3325 = vperm.xlu2 %3915, %v3271_v33  }
 0x90a   : > { %3330 = vperm.xlu0 %3913, %v3272_v8  }
 0x90b   : > { %3166 = vperm.xlu1 %3914, %v3060_v0   ;;  %v3066_v0 = vld [vmem:[%s6443_s1 + $0x6c0] sm:$0xff] }
 0x90e   : > { %3340 = vperm.xlu2 %3915, %v3274_v42  }
 0x912   : > { %3345 = vperm.xlu0 %3913, %v3275_v52  }
 0x913   : > { %3181 = vperm.xlu1 %3914, %v3063_v53  }
 0x915   : > { %v1953_v33 = vpop.xlane.xlu1 %1952 }
 0x916   : > { %v1968_v58 = vadd.f32 %v1967_v4, %v1953_v33  ;;  %3355 = vperm.xlu2 %3915, %v3277_v45   ;;  %v3284_v33 = vld [vmem:[%s6443_s1 + $0x790] sm:$0xff] }
 0x918   : > { %v1969_v8 = vrot.slane %v1968_v58, 4 }
 0x91a   : > { %v1970_v50 = vadd.f32 %v1969_v8, %v1968_v58  ;;  %3360 = vperm.xlu0 %3913, %v3278_v43   ;;  %v3072_v58 = vld [vmem:[%s6443_s1 + $0x6f0] sm:$0xff]  ;;  %v3286_v43 = vld [vmem:[%s6443_s1 + $0x7a0] sm:$0xff] }
 0x91b   : > { %3196 = vperm.xlu1 %3914, %v3066_v0   ;;  %v3287_v0 = vld [vmem:[%s6443_s1 + $0x7a8] sm:$0xff] }
 0x91c   : > { %v1971_v42 = vrot.slane %v1970_v50, 2 }
 0x91e   : > { %v1972_v54 = vadd.f32 %v1971_v42, %v1970_v50  ;;  %3370 = vperm.xlu2 %3915, %v3280_v25   ;;  %v3267_v50 = vld [vmem:[%s6443_s1 + $0x708] sm:$0xff] }
 0x920   : > { %v1973_v52 = vrot.slane %v1972_v54, 1 }
 0x922   : > { %v1974_v53 = vadd.f32 %v1973_v52, %v1972_v54  ;;  %3375 = vperm.xlu0 %3913, %v3281_v51   ;;  %v3289_v54 = vld [vmem:[%s6443_s1 + $0x7b8] sm:$0xff] }
 0x923   : > { %3211 = vperm.xlu1 %3914, %v3069_v14   ;;  %v3290_v14 = vld [vmem:[%s6443_s1 + $0x7c0] sm:$0xff] }
 0x924   : > { %v1975_v45 = vmul.f32 %v1974_v53, %v5118_v41  ;;  %v3270_v53 = vld [vmem:[%s6443_s1 + $0x720] sm:$0xff] }
 0x926   : > { %v1976_v4 = vadd.f32 1e-05, %v1975_v45  ;;  %3385 = vperm.xlu2 %3915, %v3283_v46  }
 0x928   : > { %3926 = vrsqrt.f32 %v1976_v4  ;;  %vm1983_vm14 = vweird.f32 %v1976_v4 }
 0x92a   : > { %3390 = vperm.xlu0 %3913, %v3284_v33  }
 0x92b   : > { %3226 = vperm.xlu1 %3914, %v3072_v58  }
 0x92e   : > { %v3927_v8 = vpop.eup %3926  ;;  %3400 = vperm.xlu2 %3915, %v3286_v43  }
 0x92f   : > { %v1978_v41 = vmul.f32 %v3927_v8, %v1976_v4  ;;  %vm1984_vm13 = vweird.f32 %v3927_v8 }
 0x930   : > { %vm1985_vm15 = vmor %vm1983_vm14, %vm1984_vm13 }
 0x931   : > { %v1979_v25 = vmul.f32 %v3927_v8, %v1978_v41 }
 0x932   : > { %3405 = vperm.xlu0 %3913, %v3287_v0  }
 0x933   : > { %v1980_v42 = vmul.f32 0.5, %v1979_v25  ;;  %3305 = vperm.xlu1 %3914, %v3267_v50  }
 0x935   : > { %v1981_v51 = vsub.f32 1.5, %v1980_v42 }
 0x936   : > { %3415 = vperm.xlu2 %3915, %v3289_v54  }
 0x937   : > { %v1982_v52 = vmul.f32 %v3927_v8, %v1981_v51 }
 0x939   : > { %v5495_v46 = vsel %vm1985_vm15, %v3927_v8, %v1982_v52 }
 0x93a   : > { %3420 = vperm.xlu0 %3913, %v3290_v14   ;;  %v2001_v45 = vmul.f32 %v5495_v46, %v5208_v57  ;;  %v2002_v33 = vmul.f32 %v5495_v46, %v5302_v24  ;;  %v1999_v4 = vmul.f32 %v5495_v46, %v5217_v27  ;;  %v2000_v58 = vmul.f32 %v5495_v46, %v5212_v40 }
 0x93b   : > { %3320 = vperm.xlu1 %3914, %v3270_v53   ;;  %v1997_v43 = vmul.f32 %v5495_v46, %v5191_v36  ;;  %v1998_v8 = vmul.f32 %v5495_v46, %v5187_v49  ;;  %v1995_v41 = vmul.f32 %v5495_v46, %v5166_v3  ;;  %v1996_v57 = vmul.f32 %v5495_v46, %v5196_v19 }
 0x93c   : > { %v2113_v24 = vmul.f32 %v5083_v63, %v2001_v45  ;;  %v2114_v27 = vmul.f32 %v5081_v21, %v2002_v33  ;;  %v2111_v0 = vmul.f32 %v5072_v37, %v1999_v4  ;;  %v2112_v40 = vmul.f32 %v5079_v6, %v2000_v58  ;;  %v3273_v21 = vld [vmem:[%s6443_s1 + $0x738] sm:$0xff] }
 0x93d   : > { %v2109_v50 = vmul.f32 %v5070_v39, %v1997_v43  ;;  %v2110_v36 = vmul.f32 %v5077_v10, %v1998_v8  ;;  %v2107_v6 = vmul.f32 %v5065_v59, %v1995_v41  ;;  %v2108_v39 = vmul.f32 %v5061_v56, %v1996_v57  ;;  %v6467_v57 = vld [vmem:[#allocation4_spill] sm:$0xff] }
 0x93e   : > { %v2225_v49 = vadd.f32 %v5114_v44, %v2113_v24  ;;  %v2226_v25 = vadd.f32 %v5383_v29, %v2114_v27  ;;  %v2223_v3 = vadd.f32 %v5112_v9, %v2111_v0  ;;  %v2224_v19 = vadd.f32 %v5116_v15, %v2112_v40  ;;  %v6468_v24 = vld [vmem:[#allocation6_spill] sm:$0xff] }
 0x93f   : > { %v2221_v10 = vadd.f32 %v5110_v16, %v2109_v50  ;;  %v2222_v44 = vadd.f32 %v5108_v60, %v2110_v36  ;;  %v1993_v9 = vmul.f32 %v5495_v46, %v5175_v12  ;;  %v1994_v15 = vmul.f32 %v5495_v46, %v5170_v38  ;;  %v6469_v27 = vld [vmem:[#allocation2_spill] sm:$0xff]  ;;  %v6471_v36 = vld [vmem:[#allocation8_spill] sm:$0xff] }
 0x940   : > { %v2241_v63 = vmax.f32 %v2225_v49, 0.0  ;;  %v2242_v37 = vmax.f32 %v2226_v25, 0.0  ;;  %v2239_v42 = vmax.f32 %v2223_v3, 0.0  ;;  %v2240_v54 = vmax.f32 %v2224_v19, 0.0  ;;  %v5568_v25 = vpop.permute.xlu0 %2332  ;;  %v6472_v3 = vld [vmem:[#allocation5_spill] sm:$0xff] }
 0x941   : > { %v2219_v59 = vadd.f32 %v5102_v55, %v2107_v6  ;;  %v2220_v56 = vadd.f32 %v5106_v32, %v2108_v39  ;;  %v2237_v51 = vmax.f32 %v2221_v10, 0.0  ;;  %v2238_v52 = vmax.f32 %v2222_v44, 0.0  ;;  %v3276_v55 = vld [vmem:[%s6443_s1 + $0x750] sm:$0xff]  ;;  %v6473_v6 = vld [vmem:[#allocation7_spill] sm:$0xff]  ;;  %v5575_v10 = vpop.permute.xlu2 %2327 }
 0x942   : > { %v2282_v29 = vpack.c.bf16 %v2242_v37, %v2241_v63  ;;  %v1991_v60 = vmul.f32 %v5495_v46, %v5150_v17  ;;  %v2281_v16 = vpack.c.bf16 %v2240_v54, %v2239_v42  ;;  %v2105_v14 = vmul.f32 %v5049_v26, %v1993_v9  ;;  %v3282_v42 = vld [vmem:[%s6443_s1 + $0x780] sm:$0xff] }
 0x943   : > { %3335 = vperm.xlu1 %3914, %v3273_v21   ;;  %v2106_v12 = vmul.f32 %v5057_v31, %v1994_v15  ;;  %v1992_v38 = vmul.f32 %v5495_v46, %v5143_v35  ;;  %v2235_v32 = vmax.f32 %v2219_v59, 0.0  ;;  %v2236_v53 = vmax.f32 %v2220_v56, 0.0  ;;  %v3877_v59 = vld [vmem:[%s6447_s5] sm:$0xff]  ;;  %v3285_v56 = vld [vmem:[%s6443_s1 + $0x798] sm:$0xff] }
 0x944   : > { %2571 = vmatpush.bf16.msra.mxu0 %v2282_v29  ;;  %3893 = vmatpush.bf16.msra.mxu3 %v2282_v29  ;;  %v2280_v45 = vpack.c.bf16 %v2238_v52, %v2237_v51  ;;  %v2103_v33 = vmul.f32 %v5047_v13, %v1991_v60  ;;  %v1989_v17 = vmul.f32 %v5495_v46, %v5125_v7  ;;  %v3885_v51 = vld [vmem:[%s6447_s5 + $0x40] sm:$0xff] }
 0x945   : > { %v2217_v26 = vadd.f32 %v5100_v34, %v2105_v14  ;;  %v2218_v31 = vadd.f32 %v5104_v61, %v2106_v12  ;;  %v2104_v35 = vmul.f32 %v5053_v20, %v1992_v38  ;;  %v1990_v4 = vmul.f32 %v5495_v46, %v5154_v2  ;;  %v6466_v20 = vld [vmem:[#allocation9_spill] sm:$0xff]  ;;  %v3878_v12 = vld [vmem:[%s6447_s5 + $0x8] sm:$0xff] }
 0x946   : > { %v2279_v58 = vpack.c.bf16 %v2236_v53, %v2235_v32  ;;  %v2215_v43 = vadd.f32 %v5098_v18, %v2103_v33  ;;  %v2101_v13 = vmul.f32 %v5039_v22, %v1989_v17  ;;  %v1987_v7 = vmul.f32 %v5495_v46, %v5133_v1  ;;  %v3279_v18 = vld [vmem:[%s6443_s1 + $0x768] sm:$0xff]  ;;  %v3879_v33 = vld [vmem:[%s6447_s5 + $0x10] sm:$0xff] }
 0x947   : > { %v1988_v34 = vmul.f32 %v5495_v46, %v5129_v5  ;;  %v2233_v61 = vmax.f32 %v2217_v26, 0.0  ;;  %v2234_v8 = vmax.f32 %v2218_v31, 0.0  ;;  %v2216_v41 = vadd.f32 %v6466_v20, %v2104_v35  ;;  %v6470_v1 = vld [vmem:[#allocation3_spill] sm:$0xff]  ;;  %v3887_v17 = vld [vmem:[%s6447_s5 + $0x50] sm:$0xff]  ;;  %v3889_v20 = vld [vmem:[%s6447_s5 + $0x60] sm:$0xff] }
 0x948   : > { %2572 = vmatpush.bf16.msra.mxu0 %v2281_v16  ;;  %3894 = vmatpush.bf16.msra.mxu3 %v2281_v16  ;;  %v2102_v2 = vmul.f32 %v6467_v57, %v1990_v4  ;;  %v2213_v22 = vadd.f32 %v6468_v24, %v2101_v13  ;;  %v2099_v0 = vmul.f32 %v6469_v27, %v1987_v7  ;;  %v2231_v5 = vmax.f32 %v2215_v43, 0.0  ;;  %v5577_v9 = vpop.permute.xlu0 %2347  ;;  %v3288_v16 = vld [vmem:[%s6443_s1 + $0x7b0] sm:$0xff]  ;;  %v3291_v38 = vld [vmem:[%s6443_s1 + $0x7c8] sm:$0xff]  ;;  %v3880_v4 = vld [vmem:[%s6447_s5 + $0x18] sm:$0xff]  ;;  %v5632_v7 = vpop.permute.xlu1 %2412 }
 0x949   : > { %v2100_v40 = vmul.f32 %v6470_v1, %v1988_v34  ;;  %v2278_v50 = vpack.c.bf16 %v2234_v8, %v2233_v61  ;;  %v2232_v46 = vmax.f32 %v2216_v41, 0.0  ;;  %v5588_v52 = vpop.permute.xlu2 %2342  ;;  %v3888_v43 = vld [vmem:[%s6447_s5 + $0x58] sm:$0xff]  ;;  %v3881_v61 = vld [vmem:[%s6447_s5 + $0x20] sm:$0xff]  ;;  %v3890_v27 = vld [vmem:[%s6447_s5 + $0x68] sm:$0xff] }
 0x94a   : > { %v2214_v49 = vadd.f32 %v6471_v36, %v2102_v2  ;;  %v2211_v19 = vadd.f32 %v6472_v3, %v2099_v0  ;;  %v2229_v63 = vmax.f32 %v2213_v22, 0.0  ;;  %v3882_v22 = vld [vmem:[%s6447_s5 + $0x28] sm:$0xff]  ;;  %v3891_v36 = vld [vmem:[%s6447_s5 + $0x70] sm:$0xff] }
 0x94b   : > { %3350 = vperm.xlu1 %3914, %v3276_v55   ;;  %v2277_v21 = vpack.c.bf16 %v2232_v46, %v2231_v5  ;;  %v2212_v39 = vadd.f32 %v6473_v6, %v2100_v40  ;;  %v3886_v55 = vld [vmem:[%s6447_s5 + $0x48] sm:$0xff]  ;;  %v3883_v5 = vld [vmem:[%s6447_s5 + $0x30] sm:$0xff] }
 0x94c   : > { %2573 = vmatpush.bf16.msra.mxu0 %v2280_v45  ;;  %3895 = vmatpush.bf16.msra.mxu3 %v2280_v45  ;;  %v2230_v37 = vmax.f32 %v2214_v49, 0.0  ;;  %v2227_v29 = vmax.f32 %v2211_v19, 0.0 }
 0x94d   : > { %v2228_v54 = vmax.f32 %v2212_v39, 0.0 }
 0x94e   : > { %v2276_v44 = vpack.c.bf16 %v2230_v37, %v2229_v63  ;;  %v3884_v63 = vld [vmem:[%s6447_s5 + $0x38] sm:$0xff] }
 0x94f   : > { %v2275_v15 = vpack.c.bf16 %v2228_v54, %v2227_v29  ;;  %v3892_v37 = vld [vmem:[%s6447_s5 + $0x78] sm:$0xff] }
 0x950   : > { %2574 = vmatpush.bf16.msra.mxu0 %v2279_v58  ;;  %3896 = vmatpush.bf16.msra.mxu3 %v2279_v58  ;;  %v5590_v60 = vpop.permute.xlu0 %2362  ;;  %v5644_v41 = vpop.permute.xlu1 %2427 }
 0x951   : > { %v5595_v14 = vpop.permute.xlu2 %2357 }
 0x953   : > { %3365 = vperm.xlu1 %3914, %v3279_v18  }
 0x954   : > { %2575 = vmatpush.bf16.msra.mxu0 %v2278_v50  ;;  %3897 = vmatpush.bf16.msra.mxu3 %v2278_v50 }
 0x958   : > { %2576 = vmatpush.bf16.msra.mxu0 %v2277_v21  ;;  %3898 = vmatpush.bf16.msra.mxu3 %v2277_v21  ;;  %v5606_v32 = vpop.permute.xlu0 %2377  ;;  %v5650_v18 = vpop.permute.xlu1 %2442 }
 0x959   : > { %v5608_v53 = vpop.permute.xlu2 %2372 }
 0x95b   : > { %3380 = vperm.xlu1 %3914, %v3282_v42  }
 0x95c   : > { %2577 = vmatpush.bf16.msra.mxu0 %v2276_v44  ;;  %3899 = vmatpush.bf16.msra.mxu3 %v2276_v44 }
 0x960   : > { %2578 = vmatpush.bf16.msra.mxu0 %v2275_v15  ;;  %3900 = vmatpush.bf16.msra.mxu3 %v2275_v15  ;;  %v5610_v45 = vpop.permute.xlu0 %2392  ;;  %v5662_v1 = vpop.permute.xlu1 %2457 }
 0x961   : > { %v5618_v26 = vpop.permute.xlu2 %2387 }
 0x963   : > { %3395 = vperm.xlu1 %3914, %v3285_v56   ;;  %2579 = vmatmul.bf16.vlgmr.msra.gmra.mxu0 %v3877_v59 }
 0x964   : > { %2619 = vmatmul.bf16.vlgmr.msra.gmra.mxu3 %v3885_v51 }
 0x968   : > { %v5620_v31 = vpop.permute.xlu0 %2407  ;;  %v5671_v46 = vpop.permute.xlu1 %2472 }
 0x969   : > { %v2403_v35 = vpop.permute.xlu2 %2402 }
 0x96b   : > { %3410 = vperm.xlu1 %3914, %v3288_v16  }
 0x970   : > { %v5625_v58 = vpop.permute.xlu0 %2422  ;;  %v5680_v19 = vpop.permute.xlu1 %3086 }
 0x971   : > { %v5630_v13 = vpop.permute.xlu2 %2417  ;;  %6478 = vst [vmem:[#allocation3_spill] sm:$0xff] %v5680_v19 }
 0x973   : > { %3425 = vperm.xlu1 %3914, %v3291_v38   ;;  %2584 = vmatmul.bf16.gmra.mxu0 %v3878_v12 }
 0x974   : > { %2624 = vmatmul.bf16.gmra.mxu3 %v3886_v55 }
 0x978   : > { %v5634_v34 = vpop.permute.xlu0 %2437  ;;  %v5692_v39 = vpop.permute.xlu1 %3106 }
 0x979   : > { %v5639_v8 = vpop.permute.xlu2 %2432  ;;  %6481 = vst [vmem:[#allocation7_spill] sm:$0xff] %v5692_v39 }
 0x980   : > { %v5646_v57 = vpop.permute.xlu0 %2452  ;;  %v5698_v29 = vpop.permute.xlu1 %3121 }
 0x981   : > { %v5648_v2 = vpop.permute.xlu2 %2447  ;;  %6484 = vst [vmem:[#allocation12_spill] sm:$0xff] %v5698_v29 }
 0x983   : > { %2589 = vmatmul.bf16.gmra.mxu0 %v3879_v33 }
 0x984   : > { %2629 = vmatmul.bf16.gmra.mxu3 %v3887_v17 }
 0x988   : > { %v5652_v24 = vpop.permute.xlu0 %2467  ;;  %v5709_v12 = vpop.permute.xlu1 %3136 }
 0x989   : > { %v5660_v0 = vpop.permute.xlu2 %2462  ;;  %6487 = vst [vmem:[#allocation15_spill] sm:$0xff] %v5709_v12 }
 0x990   : > { %v5664_v40 = vpop.permute.xlu0 %3076 }
 0x991   : > { %6474 = vst [vmem:[#allocation9_spill] sm:$0xff] %v5664_v40  ;;  %v5666_v50 = vpop.permute.xlu2 %3081 }
 0x992   : > { %6475 = vst [vmem:[#allocation4_spill] sm:$0xff] %v5666_v50 }
 0x993   : > { %2594 = vmatmul.bf16.gmra.mxu0 %v3880_v4 }
 0x994   : > { %2634 = vmatmul.bf16.gmra.mxu3 %v3888_v43 }
 0x998   : > { %v5676_v49 = vpop.permute.xlu0 %3091 }
 0x999   : > { %6476 = vst [vmem:[#allocation6_spill] sm:$0xff] %v5676_v49  ;;  %v5678_v3 = vpop.permute.xlu2 %3096 }
 0x99a   : > { %6477 = vst [vmem:[#allocation2_spill] sm:$0xff] %v5678_v3 }
 0x9a0   : > { %v5682_v21 = vpop.permute.xlu0 %3101 }
 0x9a1   : > { %6479 = vst [vmem:[#allocation8_spill] sm:$0xff] %v5682_v21  ;;  %v5690_v6 = vpop.permute.xlu2 %3111 }
 0x9a2   : > { %6480 = vst [vmem:[#allocation5_spill] sm:$0xff] %v5690_v6 }
 0x9a3   : > { %2599 = vmatmul.bf16.gmra.mxu0 %v3881_v61 }
 0x9a4   : > { %2639 = vmatmul.bf16.gmra.mxu3 %v3889_v20 }
 0x9a8   : > { %v5694_v42 = vpop.permute.xlu0 %3116 }
 0x9a9   : > { %6482 = vst [vmem:[#allocation10_spill] sm:$0xff] %v5694_v42  ;;  %v5696_v44 = vpop.permute.xlu2 %3126 }
 0x9aa   : > { %6483 = vst [vmem:[#allocation11_spill] sm:$0xff] %v5696_v44 }
 0x9b0   : > { %v5700_v54 = vpop.permute.xlu0 %3131 }
 0x9b1   : > { %6485 = vst [vmem:[#allocation13_spill] sm:$0xff] %v5700_v54  ;;  %v5707_v51 = vpop.permute.xlu2 %3141 }
 0x9b2   : > { %6486 = vst [vmem:[#allocation14_spill] sm:$0xff] %v5707_v51 }
 0x9b3   : > { %2604 = vmatmul.bf16.gmra.mxu0 %v3882_v22 }
 0x9b4   : > { %2644 = vmatmul.bf16.gmra.mxu3 %v3890_v27 }
 0x9b8   : > { %v5714_v33 = vpop.permute.xlu0 %3146 }
 0x9b9   : > { %6488 = vst [vmem:[#allocation16_spill] sm:$0xff] %v5714_v33  ;;  %v5721_v43 = vpop.permute.xlu2 %3156 }
 0x9ba   : > { %6489 = vst [vmem:[#allocation17_spill] sm:$0xff] %v5721_v43 }
 0x9c3   : > { %2609 = vmatmul.bf16.gmra.mxu0 %v3883_v5 }
 0x9c4   : > { %2649 = vmatmul.bf16.gmra.mxu3 %v3891_v36  ;;  %v5736_v36 = vpop.permute.xlu0 %3161 }
 0x9c5   : > { %6491 = vst [vmem:[#allocation19_spill] sm:$0xff] %v5736_v36 }
 0x9d3   : > { %2614 = vmatmul.bf16.gmra.mxu0 %v3884_v63 }
 0x9d4   : > { %2654 = vmatmul.bf16.gmra.mxu3 %v3892_v37 }
 0x9e0   : > { %v2580_v15 = vpop.f32.mrf.mxu0 }
 0x9e1   : > { %v5703_v59 = vadd.f32 %v2580_v15, %v5375_v23  ;;  %v5744_v15 = vpop.permute.xlu2 %3171 }
 0x9e2   : > { %6492 = vst [vmem:[#allocation20_spill] sm:$0xff] %v5744_v15 }
 0x9e3   : > { %v2660_v56 = vsel %vm624_vm0, %v5703_v59, 0.0 }
 0x9e4   : > { %2661 = vadd.xlane.f32.xlu2 %v2660_v56 }
 0x9e7   : > { %v2620_v16 = vpop.f32.mrf.mxu3 }
 0x9e8   : > { %v5712_v38 = vadd.f32 %v2620_v16, %v5441_v28  ;;  %v2582_v55 = vpop.f32.mrf.mxu0  ;;  %v5728_v28 = vpop.permute.xlu1 %3151 }
 0x9e9   : > { %v5719_v23 = vadd.f32 %v2582_v55, %v5322_v48  ;;  %6490 = vst [vmem:[#allocation18_spill] sm:$0xff] %v5728_v28 }
 0x9ea   : > { %v2708_v17 = vsel %vm624_vm0, %v5712_v38, 0.0 }
 0x9eb   : > { %2709 = vadd.xlane.f32.xlu0 %v2708_v17  ;;  %v2663_v27 = vsel %vm624_vm0, %v5719_v23, 0.0  ;;  %v5752_v17 = vpop.permute.xlu0 %3176 }
 0x9ec   : > { %6494 = vst [vmem:[#allocation22_spill] sm:$0xff] %v5752_v17 }
 0x9ef   : > { %v2622_v4 = vpop.f32.mrf.mxu3 }
 0x9f0   : > { %v5723_v61 = vadd.f32 %v2622_v4, %v2403_v35  ;;  %v2585_v20 = vpop.f32.mrf.mxu0  ;;  %v5750_v55 = vpop.permute.xlu1 %3166 }
 0x9f1   : > { %v5726_v22 = vadd.f32 %v2585_v20, %v5575_v10  ;;  %6493 = vst [vmem:[#allocation21_spill] sm:$0xff] %v5750_v55 }
 0x9f2   : > { %v2711_v5 = vsel %vm624_vm0, %v5723_v61, 0.0 }
 0x9f3   : > { %2664 = vadd.xlane.f32.xlu0 %v2663_v27  ;;  %2712 = vadd.xlane.f32.xlu2 %v2711_v5  ;;  %v2666_v48 = vsel %vm624_vm0, %v5726_v22, 0.0  ;;  %v5759_v27 = vpop.permute.xlu2 %3186 }
 0x9f4   : > { %2667 = vadd.xlane.f32.xlu1 %v2666_v48  ;;  %6495 = vst [vmem:[#allocation23_spill] sm:$0xff] %v5759_v27 }
 0x9f7   : > { %v2625_v35 = vpop.f32.mrf.mxu3 }
 0x9f8   : > { %v5739_v10 = vadd.f32 %v2625_v35, %v5620_v31  ;;  %v2587_v63 = vpop.f32.mrf.mxu0  ;;  %v5761_v5 = vpop.permute.xlu1 %3181 }
 0x9f9   : > { %v5742_v37 = vadd.f32 %v2587_v63, %v5568_v25  ;;  %6496 = vst [vmem:[#allocation24_spill] sm:$0xff] %v5761_v5  ;;  %v5766_v63 = vpop.permute.xlu0 %3191 }
 0x9fa   : > { %v2714_v16 = vsel %vm624_vm0, %v5739_v10, 0.0  ;;  %6497 = vst [vmem:[#allocation25_spill] sm:$0xff] %v5766_v63 }
 0x9fb   : > { %v2669_v56 = vsel %vm624_vm0, %v5742_v37, 0.0 }
 0x9fc   : > { %2670 = vadd.xlane.f32.xlu2 %v2669_v56  ;;  %2715 = vadd.xlane.f32.xlu1 %v2714_v16 }
 0x9ff   : > { %v2627_v31 = vpop.f32.mrf.mxu3 }
 0xa00   : > { %v5755_v4 = vadd.f32 %v2627_v31, %v5632_v7  ;;  %v2590_v25 = vpop.f32.mrf.mxu0  ;;  %v5780_v5 = vpop.permute.xlu1 %3196 }
 0xa01   : > { %v5764_v48 = vadd.f32 %v2590_v25, %v5388_v30  ;;  %6499 = vst [vmem:[#allocation27_spill] sm:$0xff] %v5780_v5  ;;  %v5785_v27 = vpop.permute.xlu0 %3206 }
 0xa02   : > { %v2717_v20 = vsel %vm624_vm0, %v5755_v4, 0.0  ;;  %6501 = vst [vmem:[#allocation29_spill] sm:$0xff] %v5785_v27 }
 0xa03   : > { %2718 = vadd.xlane.f32.xlu0 %v2717_v20  ;;  %v2672_v16 = vsel %vm624_vm0, %v5764_v48, 0.0  ;;  %v5775_v20 = vpop.permute.xlu2 %3201 }
 0xa04   : > { %6498 = vst [vmem:[#allocation26_spill] sm:$0xff] %v5775_v20 }
 0xa07   : > { %v2630_v35 = vpop.f32.mrf.mxu3 }
 0xa08   : > { %v5769_v56 = vadd.f32 %v2630_v35, %v5630_v13  ;;  %v2592_v7 = vpop.f32.mrf.mxu0  ;;  %v5799_v5 = vpop.permute.xlu1 %3211 }
 0xa09   : > { %v5778_v30 = vadd.f32 %v2592_v7, %v5588_v52  ;;  %6503 = vst [vmem:[#allocation31_spill] sm:$0xff] %v5799_v5 }
 0xa0a   : > { %v2720_v31 = vsel %vm624_vm0, %v5769_v56, 0.0 }
 0xa0b   : > { %2673 = vadd.xlane.f32.xlu0 %v2672_v16  ;;  %2721 = vadd.xlane.f32.xlu2 %v2720_v31  ;;  %v2675_v63 = vsel %vm624_vm0, %v5778_v30, 0.0  ;;  %v5794_v31 = vpop.permute.xlu2 %3216 }
 0xa0c   : > { %6502 = vst [vmem:[#allocation30_spill] sm:$0xff] %v5794_v31 }
 0xa0f   : > { %v2632_v25 = vpop.f32.mrf.mxu3 }
 0xa10   : > { %v5783_v13 = vadd.f32 %v2632_v25, %v5625_v58  ;;  %v2595_v35 = vpop.f32.mrf.mxu0 }
 0xa11   : > { %v5792_v52 = vadd.f32 %v2595_v35, %v5577_v9 }
 0xa12   : > { %6500 = vst [vmem:[#allocation28_spill] sm:$0xff] %v5783_v13  ;;  %v2723_v16 = vsel %vm624_vm0, %v5783_v13, 0.0 }
 0xa13   : > { %2676 = vadd.xlane.f32.xlu2 %v2675_v63  ;;  %2724 = vadd.xlane.f32.xlu1 %v2723_v16  ;;  %v2678_v27 = vsel %vm624_vm0, %v5792_v52, 0.0  ;;  %v5805_v63 = vpop.permute.xlu0 %3221 }
 0xa14   : > { %6504 = vst [vmem:[#allocation32_spill] sm:$0xff] %v5805_v63 }
 0xa17   : > { %v2635_v7 = vpop.f32.mrf.mxu3 }
 0xa18   : > { %v5797_v58 = vadd.f32 %v2635_v7, %v5644_v41  ;;  %v2597_v25 = vpop.f32.mrf.mxu0  ;;  %v5813_v7 = vpop.permute.xlu2 %3231 }
 0xa19   : > { %v5808_v9 = vadd.f32 %v2597_v25, %v5399_v47  ;;  %6505 = vst [vmem:[#allocation33_spill] sm:$0xff] %v5813_v7 }
 0xa1a   : > { %v2726_v20 = vsel %vm624_vm0, %v5797_v58, 0.0 }
 0xa1b   : > { %2727 = vadd.xlane.f32.xlu0 %v2726_v20  ;;  %2679 = vadd.xlane.f32.xlu1 %v2678_v27  ;;  %v2681_v5 = vsel %vm624_vm0, %v5808_v9, 0.0  ;;  %v5819_v27 = vpop.permute.xlu1 %3226  ;;  %v5821_v20 = vpop.permute.xlu0 %3300 }
 0xa1c   : > { %6506 = vst [vmem:[#allocation34_spill] sm:$0xff] %v5819_v27 }
 0xa1d   : > { %6507 = vst [vmem:[#allocation35_spill] sm:$0xff] %v5821_v20 }
 0xa1f   : > { %v2637_v35 = vpop.f32.mrf.mxu3 }
 0xa20   : > { %v5811_v41 = vadd.f32 %v2637_v35, %v5639_v8  ;;  %v2600_v16 = vpop.f32.mrf.mxu0 }
 0xa21   : > { %v5824_v47 = vadd.f32 %v2600_v16, %v5595_v14 }
 0xa22   : > { %v2729_v31 = vsel %vm624_vm0, %v5811_v41, 0.0 }
 0xa23   : > { %2682 = vadd.xlane.f32.xlu0 %v2681_v5  ;;  %2730 = vadd.xlane.f32.xlu2 %v2729_v31  ;;  %v2684_v7 = vsel %vm624_vm0, %v5824_v47, 0.0  ;;  %v5833_v5 = vpop.permute.xlu2 %3310  ;;  %v5835_v31 = vpop.permute.xlu1 %3305 }
 0xa24   : > { %6509 = vst [vmem:[#allocation37_spill] sm:$0xff] %v5833_v5  ;;  %v5840_v27 = vpop.permute.xlu0 %3315 }
 0xa25   : > { %6510 = vst [vmem:[#allocation38_spill] sm:$0xff] %v5835_v31 }
 0xa26   : > { %6511 = vst [vmem:[#allocation39_spill] sm:$0xff] %v5840_v27 }
 0xa27   : > { %v2640_v8 = vpop.f32.mrf.mxu3 }
 0xa28   : > { %v5827_v25 = vadd.f32 %v2640_v8, %v5634_v34  ;;  %v2602_v35 = vpop.f32.mrf.mxu0 }
 0xa29   : > { %v5838_v14 = vadd.f32 %v2602_v35, %v5590_v60 }
 0xa2a   : > { %6508 = vst [vmem:[#allocation36_spill] sm:$0xff] %v5827_v25  ;;  %v2732_v63 = vsel %vm624_vm0, %v5827_v25, 0.0 }
 0xa2b   : > { %2685 = vadd.xlane.f32.xlu2 %v2684_v7  ;;  %2733 = vadd.xlane.f32.xlu1 %v2732_v63  ;;  %v2687_v63 = vsel %vm624_vm0, %v5838_v14, 0.0  ;;  %v5849_v7 = vpop.permute.xlu2 %3325  ;;  %v5854_v15 = vpop.permute.xlu1 %3320 }
 0xa2c   : > { %6513 = vst [vmem:[#allocation41_spill] sm:$0xff] %v5849_v7  ;;  %v5859_v17 = vpop.permute.xlu0 %3330 }
 0xa2d   : > { %6514 = vst [vmem:[#allocation42_spill] sm:$0xff] %v5854_v15 }
 0xa2e   : > { %6516 = vst [vmem:[#allocation44_spill] sm:$0xff] %v5859_v17 }
 0xa2f   : > { %v2642_v16 = vpop.f32.mrf.mxu3 }
 0xa30   : > { %v5843_v34 = vadd.f32 %v2642_v16, %v5650_v18  ;;  %v2605_v8 = vpop.f32.mrf.mxu0 }
 0xa31   : > { %v5852_v60 = vadd.f32 %v2605_v8, %v5416_v11 }
 0xa32   : > { %6512 = vst [vmem:[#allocation40_spill] sm:$0xff] %v5843_v34  ;;  %v2735_v55 = vsel %vm624_vm0, %v5843_v34, 0.0 }
 0xa33   : > { %2736 = vadd.xlane.f32.xlu0 %v2735_v55  ;;  %2688 = vadd.xlane.f32.xlu1 %v2687_v63  ;;  %v2690_v28 = vsel %vm624_vm0, %v5852_v60, 0.0  ;;  %v5868_v63 = vpop.permute.xlu2 %3340  ;;  %v5873_v43 = vpop.permute.xlu1 %3335 }
 0xa34   : > { %6517 = vst [vmem:[#allocation45_spill] sm:$0xff] %v5868_v63 }
 0xa35   : > { %6519 = vst [vmem:[#allocation47_spill] sm:$0xff] %v5873_v43 }
 0xa37   : > { %v2645_v35 = vpop.f32.mrf.mxu3 }
 0xa38   : > { %v5857_v18 = vadd.f32 %v2645_v35, %v5648_v2  ;;  %v2607_v16 = vpop.f32.mrf.mxu0 }
 0xa39   : > { %v5866_v11 = vadd.f32 %v2607_v16, %v5608_v53 }
 0xa3a   : > { %6515 = vst [vmem:[#allocation43_spill] sm:$0xff] %v5857_v18  ;;  %v2738_v55 = vsel %vm624_vm0, %v5857_v18, 0.0 }
 0xa3b   : > { %2691 = vadd.xlane.f32.xlu0 %v2690_v28  ;;  %2739 = vadd.xlane.f32.xlu2 %v2738_v55  ;;  %v2693_v36 = vsel %vm624_vm0, %v5866_v11, 0.0  ;;  %v5879_v28 = vpop.permute.xlu0 %3345 }
 0xa3c   : > { %6520 = vst [vmem:[#allocation48_spill] sm:$0xff] %v5879_v28 }
 0xa3f   : > { %v2647_v8 = vpop.f32.mrf.mxu3 }
 0xa40   : > { %v5871_v2 = vadd.f32 %v2647_v8, %v5646_v57  ;;  %v2610_v35 = vpop.f32.mrf.mxu0  ;;  %v5887_v8 = vpop.permute.xlu2 %3355 }
 0xa41   : > { %v5882_v53 = vadd.f32 %v2610_v35, %v5606_v32  ;;  %6522 = vst [vmem:[#allocation50_spill] sm:$0xff] %v5887_v8 }
 0xa42   : > { %6518 = vst [vmem:[#allocation46_spill] sm:$0xff] %v5871_v2  ;;  %v2741_v12 = vsel %vm624_vm0, %v5871_v2, 0.0 }
 0xa43   : > { %2694 = vadd.xlane.f32.xlu2 %v2693_v36  ;;  %2742 = vadd.xlane.f32.xlu1 %v2741_v12  ;;  %v2696_v33 = vsel %vm624_vm0, %v5882_v53, 0.0  ;;  %v5893_v12 = vpop.permute.xlu1 %3350  ;;  %v5895_v36 = vpop.permute.xlu0 %3360 }
 0xa44   : > { %6523 = vst [vmem:[#allocation51_spill] sm:$0xff] %v5893_v12 }
 0xa45   : > { %6524 = vst [vmem:[#allocation52_spill] sm:$0xff] %v5895_v36 }
 0xa47   : > { %v2650_v16 = vpop.f32.mrf.mxu3 }
 0xa48   : > { %v5885_v57 = vadd.f32 %v2650_v16, %v5662_v1  ;;  %v2612_v55 = vpop.f32.mrf.mxu0 }
 0xa49   : > { %v5898_v32 = vadd.f32 %v2612_v55, %v5427_v62 }
 0xa4a   : > { %6521 = vst [vmem:[#allocation49_spill] sm:$0xff] %v5885_v57  ;;  %v2744_v51 = vsel %vm624_vm0, %v5885_v57, 0.0 }
 0xa4b   : > { %2745 = vadd.xlane.f32.xlu0 %v2744_v51  ;;  %2697 = vadd.xlane.f32.xlu1 %v2696_v33  ;;  %v2699_v28 = vsel %vm624_vm0, %v5898_v32, 0.0  ;;  %v5907_v51 = vpop.permute.xlu2 %3370  ;;  %v5909_v33 = vpop.permute.xlu1 %3365 }
 0xa4c   : > { %6526 = vst [vmem:[#allocation54_spill] sm:$0xff] %v5907_v51  ;;  %v5914_v36 = vpop.permute.xlu0 %3375 }
 0xa4d   : > { %6527 = vst [vmem:[#allocation55_spill] sm:$0xff] %v5909_v33 }
 0xa4e   : > { %6528 = vst [vmem:[#allocation56_spill] sm:$0xff] %v5914_v36 }
 0xa4f   : > { %v2652_v1 = vpop.f32.mrf.mxu3 }
 0xa50   : > { %v5901_v35 = vadd.f32 %v2652_v1, %v5660_v0  ;;  %v2615_v16 = vpop.f32.mrf.mxu0 }
 0xa51   : > { %v5912_v62 = vadd.f32 %v2615_v16, %v5618_v26 }
 0xa52   : > { %6525 = vst [vmem:[#allocation53_spill] sm:$0xff] %v5901_v35  ;;  %v2747_v29 = vsel %vm624_vm0, %v5901_v35, 0.0 }
 0xa53   : > { %2700 = vadd.xlane.f32.xlu0 %v2699_v28  ;;  %2748 = vadd.xlane.f32.xlu2 %v2747_v29  ;;  %v2702_v1 = vsel %vm624_vm0, %v5912_v62, 0.0  ;;  %v5923_v51 = vpop.permute.xlu2 %3385  ;;  %v5928_v16 = vpop.permute.xlu1 %3380 }
 0xa54   : > { %6530 = vst [vmem:[#allocation58_spill] sm:$0xff] %v5923_v51  ;;  %v5930_v36 = vpop.permute.xlu0 %3390 }
 0xa55   : > { %6531 = vst [vmem:[#allocation59_spill] sm:$0xff] %v5928_v16 }
 0xa56   : > { %6532 = vst [vmem:[#allocation60_spill] sm:$0xff] %v5930_v36 }
 0xa57   : > { %v2655_v55 = vpop.f32.mrf.mxu3 }
 0xa58   : > { %v5917_v0 = vadd.f32 %v2655_v55, %v5652_v24  ;;  %v2617_v29 = vpop.f32.mrf.mxu0  ;;  %v3293_v55 = vld [vmem:[%s6443_s1 + $0x7d8] sm:$0xff] }
 0xa59   : > { %v5926_v26 = vadd.f32 %v2617_v29, %v5610_v45  ;;  %v3292_v45 = vld [vmem:[%s6443_s1 + $0x7d0] sm:$0xff] }
 0xa5a   : > { %6529 = vst [vmem:[#allocation57_spill] sm:$0xff] %v5917_v0  ;;  %v2750_v28 = vsel %vm624_vm0, %v5917_v0, 0.0 }
 0xa5b   : > { %2703 = vadd.xlane.f32.xlu2 %v2702_v1  ;;  %2751 = vadd.xlane.f32.xlu1 %v2750_v28  ;;  %v2705_v24 = vsel %vm624_vm0, %v5926_v26, 0.0  ;;  %v5937_v1 = vpop.permute.xlu2 %3400  ;;  %v5939_v28 = vpop.permute.xlu1 %3395 }
 0xa5c   : > { %6533 = vst [vmem:[#allocation61_spill] sm:$0xff] %v5937_v1  ;;  %v5941_v51 = vpop.permute.xlu0 %3405 }
 0xa5d   : > { %6534 = vst [vmem:[#allocation62_spill] sm:$0xff] %v5939_v28  ;;  %v3294_v28 = vld [vmem:[%s6443_s1 + $0x7e0] sm:$0xff] }
 0xa5e   : > { %6535 = vst [vmem:[#allocation63_spill] sm:$0xff] %v5941_v51 }
 0xa63   : > { %2706 = vadd.xlane.f32.xlu1 %v2705_v24  ;;  %v5946_v29 = vpop.permute.xlu2 %3415  ;;  %v5948_v36 = vpop.permute.xlu1 %3410 }
 0xa64   : > { %6536 = vst [vmem:[#allocation64_spill] sm:$0xff] %v5946_v29  ;;  %v5950_v24 = vpop.permute.xlu0 %3420 }
 0xa65   : > { %6537 = vst [vmem:[#allocation65_spill] sm:$0xff] %v5948_v36  ;;  %v2657_v36 = vpop.f32.mrf.mxu3 }
 0xa66   : > { %6538 = vst [vmem:[#allocation66_spill] sm:$0xff] %v5950_v24  ;;  %v5961_v24 = vadd.f32 %v2657_v36, %v5671_v46 }
 0xa67   : > { %3435 = vperm.xlu0 %3913, %v3293_v55   ;;  %v3295_v55 = vld [vmem:[%s6443_s1 + $0x7e8] sm:$0xff] }
 0xa68   : > { %6540 = vst [vmem:[#allocation68_spill] sm:$0xff] %v5961_v24  ;;  %v2753_v44 = vsel %vm624_vm0, %v5961_v24, 0.0 }
 0xa6b   : > { %v2662_v51 = vpop.xlane.xlu2 %2661  ;;  %v5958_v1 = vpop.permute.xlu1 %3425 }
 0xa6c   : > { %6539 = vst [vmem:[#allocation67_spill] sm:$0xff] %v5958_v1  ;;  %v2710_v16 = vpop.xlane.xlu0 %2709 }
 0xa73   : > { %3430 = vperm.xlu2 %3915, %v3292_v45   ;;  %v2713_v29 = vpop.xlane.xlu2 %2712  ;;  %v2668_v45 = vpop.xlane.xlu1 %2667 }
 0xa74   : > { %v2665_v33 = vpop.xlane.xlu0 %2664 }
 0xa75   : > { %v2756_v36 = vadd.f32 %v2665_v33, %v2662_v51 }
 0xa77   : > { %v2757_v20 = vadd.f32 %v2756_v36, %v2668_v45 }
 0xa7b   : > { %3445 = vperm.xlu2 %3915, %v3295_v55   ;;  %v2671_v12 = vpop.xlane.xlu2 %2670  ;;  %v2716_v8 = vpop.xlane.xlu1 %2715 }
 0xa7c   : > { %3440 = vperm.xlu1 %3914, %v3294_v28   ;;  %v2719_v17 = vpop.xlane.xlu0 %2718  ;;  %v2758_v21 = vadd.f32 %v2757_v20, %v2671_v12 }
 0xa83   : > { %v2722_v54 = vpop.xlane.xlu2 %2721 }
 0xa84   : > { %v2674_v28 = vpop.xlane.xlu0 %2673 }
 0xa86   : > { %v2725_v55 = vpop.xlane.xlu1 %2724 }
 0xa8b   : > { %v2677_v39 = vpop.xlane.xlu2 %2676 }
 0xa8e   : > { %v2680_v1 = vpop.xlane.xlu1 %2679  ;;  %v2728_v43 = vpop.xlane.xlu0 %2727 }
 0xa91   : > { %2754 = vadd.xlane.f32.xlu0 %v2753_v44  ;;  %v2759_v44 = vadd.f32 %v2758_v21, %v2674_v28 }
 0xa93   : > { %v2760_v31 = vadd.f32 %v2759_v44, %v2677_v39 }
 0xa95   : > { %v2761_v5 = vadd.f32 %v2760_v31, %v2680_v1 }
 0xa96   : > { %v2731_v63 = vpop.xlane.xlu2 %2730  ;;  %v2683_v6 = vpop.xlane.xlu0 %2682 }
 0xa97   : > { %v2762_v0 = vadd.f32 %v2761_v5, %v2683_v6 }
 0xa9e   : > { %v2734_v27 = vpop.xlane.xlu1 %2733  ;;  %v2686_v42 = vpop.xlane.xlu2 %2685 }
 0xa9f   : > { %v2763_v2 = vadd.f32 %v2762_v0, %v2686_v42 }
 0xaa6   : > { %v2689_v15 = vpop.xlane.xlu1 %2688  ;;  %v2737_v49 = vpop.xlane.xlu0 %2736 }
 0xaa7   : > { %v2764_v35 = vadd.f32 %v2763_v2, %v2689_v15 }
 0xaae   : > { %v2740_v46 = vpop.xlane.xlu2 %2739  ;;  %v2692_v3 = vpop.xlane.xlu0 %2691 }
 0xaaf   : > { %v2765_v57 = vadd.f32 %v2764_v35, %v2692_v3 }
 0xab6   : > { %v2743_v7 = vpop.xlane.xlu1 %2742  ;;  %v2695_v40 = vpop.xlane.xlu2 %2694 }
 0xab7   : > { %v2766_v18 = vadd.f32 %v2765_v57, %v2695_v40  ;;  %v3943_v40 = vmov 4096.0  }
 0xab8   : > { %3928 = vrcp.f32 %v3943_v40 }
 0xabe   : > { %v2698_v50 = vpop.xlane.xlu1 %2697  ;;  %v2746_v19 = vpop.xlane.xlu0 %2745 }
 0xabf   : > { %v2767_v13 = vadd.f32 %v2766_v18, %v2698_v50 }
 0xac6   : > { %v2749_v24 = vpop.xlane.xlu2 %2748  ;;  %v2701_v34 = vpop.xlane.xlu0 %2700 }
 0xac7   : > { %v2768_v33 = vadd.f32 %v2767_v13, %v2701_v34  ;;  %v3929_v13 = vpop.eup %3928 }
 0xac8   : > { %v2794_v57 = vmul.f32 4096.0, %v3929_v13  ;;  %vm2798_vm1 = vweird.f32 %v3929_v13 }
 0xace   : > { %v2752_v25 = vpop.xlane.xlu1 %2751  ;;  %v2704_v51 = vpop.xlane.xlu2 %2703 }
 0xacf   : > { %v2769_v45 = vadd.f32 %v2768_v33, %v2704_v51 }
 0xad6   : > { %v2707_v36 = vpop.xlane.xlu1 %2706 }
 0xad7   : > { %v2770_v20 = vadd.f32 %v2769_v45, %v2707_v36 }
 0xad9   : > { %v2771_v12 = vadd.f32 %v2770_v20, %v2710_v16  ;;  %v5965_v18 = vpop.permute.xlu0 %3435 }
 0xadb   : > { %v2772_v21 = vadd.f32 %v2771_v12, %v2713_v29 }
 0xadd   : > { %v2773_v39 = vadd.f32 %v2772_v21, %v2716_v8 }
 0xadf   : > { %v2774_v31 = vadd.f32 %v2773_v39, %v2719_v17  ;;  %v2795_v17 = vsub.f32 1.0, %v2794_v57 }
 0xae1   : > { %v2775_v1 = vadd.f32 %v2774_v31, %v2722_v54 }
 0xae3   : > { %v2776_v28 = vadd.f32 %v2775_v1, %v2725_v55 }
 0xae5   : > { %v2777_v6 = vadd.f32 %v2776_v28, %v2728_v43  ;;  %v2796_v43 = vmul.f32 %v3929_v13, %v2795_v17 }
 0xae7   : > { %v2778_v5 = vadd.f32 %v2777_v6, %v2731_v63 }
 0xae9   : > { %v2779_v42 = vadd.f32 %v2778_v5, %v2734_v27 }
 0xaeb   : > { %v2780_v15 = vadd.f32 %v2779_v42, %v2737_v49  ;;  %v2797_v49 = vadd.f32 %v3929_v13, %v2796_v43 }
 0xaed   : > { %v2781_v3 = vadd.f32 %v2780_v15, %v2740_v46  ;;  %v5967_v55 = vsel %vm2798_vm1, %v3929_v13, %v2797_v49 }
 0xaef   : > { %v2782_v2 = vadd.f32 %v2781_v3, %v2743_v7 }
 0xaf1   : > { %v2783_v50 = vadd.f32 %v2782_v2, %v2746_v19 }
 0xaf3   : > { %v2784_v34 = vadd.f32 %v2783_v50, %v2749_v24 }
 0xaf5   : > { %v2785_v35 = vadd.f32 %v2784_v34, %v2752_v25 }
 0xb04   : > { %v2755_v0 = vpop.xlane.xlu0 %2754 }
 0xb05   : > { %v2786_v8 = vadd.f32 %v2785_v35, %v2755_v0 }
 0xb07   : > { %v2787_v54 = vrot.slane %v2786_v8, 4 }
 0xb09   : > { %v2788_v16 = vadd.f32 %v2787_v54, %v2786_v8 }
 0xb0b   : > { %v2789_v63 = vrot.slane %v2788_v16, 2 }
 0xb0d   : > { %v2790_v27 = vadd.f32 %v2789_v63, %v2788_v16 }
 0xb0f   : > { %v2791_v7 = vrot.slane %v2790_v27, 1 }
 0xb11   : > { %v2792_v29 = vadd.f32 %v2791_v7, %v2790_v27 }
 0xb13   : > { %v5970_v19 = vmul.f32 %v5967_v55, %v2792_v29 }
 0xb15   : > { %v5974_v25 = vsub.f32 %v5703_v59, %v5970_v19  ;;  %v5978_v24 = vsub.f32 %v5719_v23, %v5970_v19  ;;  %v5982_v46 = vsub.f32 %v5726_v22, %v5970_v19  ;;  %v5992_v59 = vsub.f32 %v5764_v48, %v5970_v19 }
 0xb16   : > { %v5996_v23 = vsub.f32 %v5778_v30, %v5970_v19  ;;  %v6003_v20 = vsub.f32 %v5742_v37, %v5970_v19  ;;  %v6013_v21 = vsub.f32 %v5808_v9, %v5970_v19  ;;  %v6017_v37 = vsub.f32 %v5824_v47, %v5970_v19 }
 0xb17   : > { %v2835_v44 = vmul.f32 %v5982_v46, %v5982_v46  ;;  %v2834_v51 = vmul.f32 %v5978_v24, %v5978_v24  ;;  %v2833_v33 = vmul.f32 %v5974_v25, %v5974_v25  ;;  %v2837_v30 = vmul.f32 %v5992_v59, %v5992_v59 }
 0xb18   : > { %v2838_v48 = vmul.f32 %v5996_v23, %v5996_v23  ;;  %v2836_v12 = vmul.f32 %v6003_v20, %v6003_v20  ;;  %v6023_v1 = vsub.f32 %v5792_v52, %v5970_v19  ;;  %v2841_v9 = vmul.f32 %v6017_v37, %v6017_v37 }
 0xb19   : > { %v2871_v22 = vsel %vm624_vm0, %v2835_v44, 0.0  ;;  %v2868_v45 = vsel %vm624_vm0, %v2834_v51, 0.0  ;;  %v2865_v36 = vsel %vm624_vm0, %v2833_v33, 0.0  ;;  %v2877_v31 = vsel %vm624_vm0, %v2837_v30, 0.0 }
 0xb1a   : > { %2872 = vadd.xlane.f32.xlu0 %v2871_v22  ;;  %2869 = vadd.xlane.f32.xlu1 %v2868_v45  ;;  %v2880_v39 = vsel %vm624_vm0, %v2838_v48, 0.0  ;;  %v2874_v28 = vsel %vm624_vm0, %v2836_v12, 0.0  ;;  %v2840_v47 = vmul.f32 %v6013_v21, %v6013_v21  ;;  %v2839_v6 = vmul.f32 %v6023_v1, %v6023_v1 }
 0xb1b   : > { %2866 = vadd.xlane.f32.xlu2 %v2865_v36  ;;  %v6034_v5 = vsub.f32 %v5852_v60, %v5970_v19  ;;  %v6038_v52 = vsub.f32 %v5866_v11, %v5970_v19  ;;  %v2889_v42 = vsel %vm624_vm0, %v2841_v9, 0.0  ;;  %v6044_v3 = vsub.f32 %v5838_v14, %v5970_v19  ;;  %v6541_v36 = vld [vmem:[#allocation28_spill] sm:$0xff] }
 0xb1c   : > { %v2886_v15 = vsel %vm624_vm0, %v2840_v47, 0.0  ;;  %v2883_v2 = vsel %vm624_vm0, %v2839_v6, 0.0  ;;  %v6055_v50 = vsub.f32 %v5898_v32, %v5970_v19  ;;  %v6059_v14 = vsub.f32 %v5912_v62, %v5970_v19 }
 0xb1d   : > { %v2844_v60 = vmul.f32 %v6038_v52, %v6038_v52  ;;  %v2843_v11 = vmul.f32 %v6034_v5, %v6034_v5  ;;  %v2842_v40 = vmul.f32 %v6044_v3, %v6044_v3  ;;  %v6065_v57 = vsub.f32 %v5882_v53, %v5970_v19 }
 0xb1e   : > { %v2847_v32 = vmul.f32 %v6059_v14, %v6059_v14  ;;  %v2846_v62 = vmul.f32 %v6055_v50, %v6055_v50  ;;  %v6076_v8 = vsub.f32 %v5712_v38, %v5970_v19  ;;  %v6080_v53 = vsub.f32 %v5723_v61, %v5970_v19 }
 0xb1f   : > { %v2898_v13 = vsel %vm624_vm0, %v2844_v60, 0.0  ;;  %v2895_v34 = vsel %vm624_vm0, %v2843_v11, 0.0  ;;  %v2892_v35 = vsel %vm624_vm0, %v2842_v40, 0.0  ;;  %v2845_v0 = vmul.f32 %v6065_v57, %v6065_v57 }
 0xb20   : > { %v2907_v17 = vsel %vm624_vm0, %v2847_v32, 0.0  ;;  %v2904_v54 = vsel %vm624_vm0, %v2846_v62, 0.0  ;;  %v6086_v16 = vsub.f32 %v5926_v26, %v5970_v19  ;;  %v2850_v38 = vmul.f32 %v6080_v53, %v6080_v53 }
 0xb21   : > { %v2901_v43 = vsel %vm624_vm0, %v2845_v0, 0.0  ;;  %v2849_v61 = vmul.f32 %v6076_v8, %v6076_v8  ;;  %v6097_v27 = vsub.f32 %v5755_v4, %v5970_v19  ;;  %v6101_v26 = vsub.f32 %v5769_v56, %v5970_v19 }
 0xb22   : > { %2881 = vadd.xlane.f32.xlu0 %v2880_v39  ;;  %2878 = vadd.xlane.f32.xlu1 %v2877_v31  ;;  %v2848_v63 = vmul.f32 %v6086_v16, %v6086_v16  ;;  %v2916_v49 = vsel %vm624_vm0, %v2850_v38, 0.0  ;;  %v6107_v29 = vsub.f32 %v5739_v10, %v5970_v19  ;;  %v6118_v33 = vsub.f32 %v5797_v58, %v5970_v19  ;;  %v6542_v39 = vld [vmem:[#allocation40_spill] sm:$0xff] }
 0xb23   : > { %2875 = vadd.xlane.f32.xlu2 %v2874_v28  ;;  %v2913_v7 = vsel %vm624_vm0, %v2849_v61, 0.0  ;;  %v2853_v4 = vmul.f32 %v6101_v26, %v6101_v26  ;;  %v2852_v56 = vmul.f32 %v6097_v27, %v6097_v27  ;;  %v6122_v10 = vsub.f32 %v5811_v41, %v5970_v19  ;;  %v6543_v28 = vld [vmem:[#allocation43_spill] sm:$0xff] }
 0xb24   : > { %v2910_v44 = vsel %vm624_vm0, %v2848_v63, 0.0  ;;  %v2851_v51 = vmul.f32 %v6107_v29, %v6107_v29  ;;  %v6128_v48 = vsub.f32 %v6541_v36, %v5970_v19  ;;  %v2855_v41 = vmul.f32 %v6118_v33, %v6118_v33 }
 0xb25   : > { %v2925_v22 = vsel %vm624_vm0, %v2853_v4, 0.0  ;;  %v2922_v45 = vsel %vm624_vm0, %v2852_v56, 0.0  ;;  %v2856_v58 = vmul.f32 %v6122_v10, %v6122_v10  ;;  %v6139_v31 = vsub.f32 %v6542_v39, %v5970_v19  ;;  %v6549_v56 = vld [vmem:[#allocation57_spill] sm:$0xff]  ;;  %v6204_v39 = vpop.permute.xlu1 %3440 }
 0xb26   : > { %v2919_v30 = vsel %vm624_vm0, %v2851_v51, 0.0  ;;  %v2854_v12 = vmul.f32 %v6128_v48, %v6128_v48  ;;  %v6143_v9 = vsub.f32 %v6543_v28, %v5970_v19  ;;  %v2931_v6 = vsel %vm624_vm0, %v2855_v41, 0.0  ;;  %v6199_v41 = vpop.permute.xlu2 %3430 }
 0xb27   : > { %v2934_v47 = vsel %vm624_vm0, %v2856_v58, 0.0  ;;  %v2858_v11 = vmul.f32 %v6139_v31, %v6139_v31  ;;  %v6187_v51 = vsub.f32 %v6549_v56, %v5970_v19 }
 0xb28   : > { %v2859_v60 = vmul.f32 %v6143_v9, %v6143_v9 }
 0xb29   : > { %v2940_v0 = vsel %vm624_vm0, %v2858_v11, 0.0  ;;  %v2863_v36 = vmul.f32 %v6187_v51, %v6187_v51 }
 0xb2a   : > { %2890 = vadd.xlane.f32.xlu0 %v2889_v42  ;;  %2887 = vadd.xlane.f32.xlu1 %v2886_v15  ;;  %v6544_v42 = vld [vmem:[#allocation36_spill] sm:$0xff]  ;;  %v2943_v62 = vsel %vm624_vm0, %v2859_v60, 0.0 }
 0xb2b   : > { %2884 = vadd.xlane.f32.xlu2 %v2883_v2  ;;  %v6149_v15 = vsub.f32 %v6544_v42, %v5970_v19  ;;  %v2928_v2 = vsel %vm624_vm0, %v2854_v12, 0.0  ;;  %v2955_v58 = vsel %vm624_vm0, %v2863_v36, 0.0  ;;  %v3297_v12 = vld [vmem:[%s6443_s1 + $0x7f8] sm:$0xff] }
 0xb2d   : > { %v2857_v40 = vmul.f32 %v6149_v15, %v6149_v15 }
 0xb2e   : > { %v6206_v28 = vpop.permute.xlu2 %3445 }
 0xb32   : > { %2899 = vadd.xlane.f32.xlu0 %v2898_v13  ;;  %2896 = vadd.xlane.f32.xlu1 %v2895_v34  ;;  %v6545_v13 = vld [vmem:[#allocation49_spill] sm:$0xff] }
 0xb33   : > { %2893 = vadd.xlane.f32.xlu2 %v2892_v35  ;;  %v6160_v34 = vsub.f32 %v6545_v13, %v5970_v19  ;;  %v6546_v35 = vld [vmem:[#allocation53_spill] sm:$0xff] }
 0xb34   : > { %v6164_v32 = vsub.f32 %v6546_v35, %v5970_v19 }
 0xb35   : > { %v2861_v61 = vmul.f32 %v6160_v34, %v6160_v34 }
 0xb36   : > { %v2862_v38 = vmul.f32 %v6164_v32, %v6164_v32 }
 0xb37   : > { %v2949_v4 = vsel %vm624_vm0, %v2861_v61, 0.0 }
 0xb3a   : > { %2908 = vadd.xlane.f32.xlu0 %v2907_v17  ;;  %2905 = vadd.xlane.f32.xlu1 %v2904_v54  ;;  %v6547_v17 = vld [vmem:[#allocation46_spill] sm:$0xff] }
 0xb3b   : > { %2902 = vadd.xlane.f32.xlu2 %v2901_v43  ;;  %v6170_v54 = vsub.f32 %v6547_v17, %v5970_v19  ;;  %v2937_v43 = vsel %vm624_vm0, %v2857_v40, 0.0 }
 0xb3d   : > { %v2860_v63 = vmul.f32 %v6170_v54, %v6170_v54 }
 0xb42   : > { %2917 = vadd.xlane.f32.xlu0 %v2916_v49  ;;  %2914 = vadd.xlane.f32.xlu1 %v2913_v7  ;;  %v6548_v49 = vld [vmem:[#allocation68_spill] sm:$0xff] }
 0xb43   : > { %2911 = vadd.xlane.f32.xlu2 %v2910_v44  ;;  %v6181_v7 = vsub.f32 %v6548_v49, %v5970_v19  ;;  %v2952_v44 = vsel %vm624_vm0, %v2862_v38, 0.0  ;;  %v3296_v19 = vld [vmem:[%s6443_s1 + $0x7f0] sm:$0xff] }
 0xb4a   : > { %2926 = vadd.xlane.f32.xlu0 %v2925_v22  ;;  %2923 = vadd.xlane.f32.xlu1 %v2922_v45  ;;  %v2946_v22 = vsel %vm624_vm0, %v2860_v63, 0.0  ;;  %v2864_v45 = vmul.f32 %v6181_v7, %v6181_v7 }
 0xb4b   : > { %2920 = vadd.xlane.f32.xlu2 %v2919_v30 }
 0xb4c   : > { %v2958_v30 = vsel %vm624_vm0, %v2864_v45, 0.0 }
 0xb52   : > { %2935 = vadd.xlane.f32.xlu0 %v2934_v47  ;;  %2932 = vadd.xlane.f32.xlu1 %v2931_v6 }
 0xb53   : > { %2929 = vadd.xlane.f32.xlu2 %v2928_v2 }
 0xb5a   : > { %2944 = vadd.xlane.f32.xlu0 %v2943_v62  ;;  %2941 = vadd.xlane.f32.xlu1 %v2940_v0 }
 0xb5b   : > { %2938 = vadd.xlane.f32.xlu2 %v2937_v43 }
 0xb62   : > { %2953 = vadd.xlane.f32.xlu0 %v2952_v44  ;;  %2950 = vadd.xlane.f32.xlu1 %v2949_v4 }
 0xb63   : > { %2947 = vadd.xlane.f32.xlu2 %v2946_v22 }
 0xb6a   : > { %2959 = vadd.xlane.f32.xlu1 %v2958_v30 }
 0xb6b   : > { %2956 = vadd.xlane.f32.xlu2 %v2955_v58 }
 0xb76   : > { %3450 = vperm.xlu0 %3913, %v3296_v19  }
 0xb83   : > { %3455 = vperm.xlu1 %3914, %v3297_v12  }
 0xb8d   : > { %v2873_v47 = vpop.xlane.xlu0 %2872  ;;  %v2870_v6 = vpop.xlane.xlu1 %2869 }
 0xb8e   : > { %v2867_v42 = vpop.xlane.xlu2 %2866 }
 0xb8f   : > { %v2961_v2 = vadd.f32 %v2870_v6, %v2867_v42 }
 0xb91   : > { %v2962_v40 = vadd.f32 %v2961_v2, %v2873_v47 }
 0xb95   : > { %v2882_v60 = vpop.xlane.xlu0 %2881  ;;  %v2879_v11 = vpop.xlane.xlu1 %2878 }
 0xb96   : > { %v2876_v13 = vpop.xlane.xlu2 %2875 }
 0xb97   : > { %v2963_v35 = vadd.f32 %v2962_v40, %v2876_v13 }
 0xb99   : > { %v2964_v62 = vadd.f32 %v2963_v35, %v2879_v11 }
 0xb9b   : > { %v2965_v43 = vadd.f32 %v2964_v62, %v2882_v60 }
 0xb9d   : > { %v2891_v0 = vpop.xlane.xlu0 %2890  ;;  %v2888_v17 = vpop.xlane.xlu1 %2887 }
 0xb9e   : > { %v2885_v38 = vpop.xlane.xlu2 %2884 }
 0xb9f   : > { %v2966_v61 = vadd.f32 %v2965_v43, %v2885_v38 }
 0xba1   : > { %v2967_v63 = vadd.f32 %v2966_v61, %v2888_v17 }
 0xba3   : > { %v2968_v4 = vadd.f32 %v2967_v63, %v2891_v0 }
 0xba5   : > { %v2900_v49 = vpop.xlane.xlu0 %2899  ;;  %v2897_v44 = vpop.xlane.xlu1 %2896 }
 0xba6   : > { %v2894_v56 = vpop.xlane.xlu2 %2893 }
 0xba7   : > { %v2969_v22 = vadd.f32 %v2968_v4, %v2894_v56 }
 0xba9   : > { %v2970_v45 = vadd.f32 %v2969_v22, %v2897_v44 }
 0xbab   : > { %v2971_v58 = vadd.f32 %v2970_v45, %v2900_v49 }
 0xbad   : > { %v2909_v36 = vpop.xlane.xlu0 %2908  ;;  %v2906_v30 = vpop.xlane.xlu1 %2905 }
 0xbae   : > { %v2903_v19 = vpop.xlane.xlu2 %2902 }
 0xbaf   : > { %v2972_v12 = vadd.f32 %v2971_v58, %v2903_v19 }
 0xbb1   : > { %v2973_v47 = vadd.f32 %v2972_v12, %v2906_v30 }
 0xbb3   : > { %v2974_v2 = vadd.f32 %v2973_v47, %v2909_v36 }
 0xbb5   : > { %v2918_v6 = vpop.xlane.xlu0 %2917  ;;  %v2915_v42 = vpop.xlane.xlu1 %2914 }
 0xbb6   : > { %v2912_v11 = vpop.xlane.xlu2 %2911 }
 0xbb7   : > { %v2975_v60 = vadd.f32 %v2974_v2, %v2912_v11 }
 0xbb9   : > { %v2976_v40 = vadd.f32 %v2975_v60, %v2915_v42 }
 0xbbb   : > { %v2977_v35 = vadd.f32 %v2976_v40, %v2918_v6 }
 0xbbd   : > { %v2924_v13 = vpop.xlane.xlu1 %2923  ;;  %v2927_v62 = vpop.xlane.xlu0 %2926 }
 0xbbe   : > { %v2921_v17 = vpop.xlane.xlu2 %2920 }
 0xbbf   : > { %v2978_v0 = vadd.f32 %v2977_v35, %v2921_v17 }
 0xbc1   : > { %v2979_v43 = vadd.f32 %v2978_v0, %v2924_v13 }
 0xbc3   : > { %v2980_v61 = vadd.f32 %v2979_v43, %v2927_v62 }
 0xbc5   : > { %v2933_v38 = vpop.xlane.xlu1 %2932  ;;  %v2936_v49 = vpop.xlane.xlu0 %2935 }
 0xbc6   : > { %v2930_v63 = vpop.xlane.xlu2 %2929 }
 0xbc7   : > { %v2981_v44 = vadd.f32 %v2980_v61, %v2930_v63 }
 0xbc9   : > { %v2982_v4 = vadd.f32 %v2981_v44, %v2933_v38 }
 0xbcb   : > { %v2983_v22 = vadd.f32 %v2982_v4, %v2936_v49 }
 0xbcd   : > { %v2942_v56 = vpop.xlane.xlu1 %2941  ;;  %v2945_v58 = vpop.xlane.xlu0 %2944 }
 0xbce   : > { %v2939_v45 = vpop.xlane.xlu2 %2938 }
 0xbcf   : > { %v2984_v30 = vadd.f32 %v2983_v22, %v2939_v45 }
 0xbd1   : > { %v2985_v36 = vadd.f32 %v2984_v30, %v2942_v56 }
 0xbd3   : > { %v2986_v19 = vadd.f32 %v2985_v36, %v2945_v58 }
 0xbd5   : > { %v2951_v12 = vpop.xlane.xlu1 %2950  ;;  %v2954_v2 = vpop.xlane.xlu0 %2953 }
 0xbd6   : > { %v2948_v47 = vpop.xlane.xlu2 %2947 }
 0xbd7   : > { %v2987_v6 = vadd.f32 %v2986_v19, %v2948_v47  ;;  %v6551_v47 = vld [vmem:[#allocation4_spill] sm:$0xff] }
 0xbd9   : > { %v2988_v42 = vadd.f32 %v2987_v6, %v2951_v12 }
 0xbdb   : > { %v2989_v11 = vadd.f32 %v2988_v42, %v2954_v2 }
 0xbdd   : > { %v2960_v13 = vpop.xlane.xlu1 %2959 }
 0xbde   : > { %v2957_v60 = vpop.xlane.xlu2 %2956 }
 0xbdf   : > { %v2990_v40 = vadd.f32 %v2989_v11, %v2957_v60  ;;  %v6552_v11 = vld [vmem:[#allocation37_spill] sm:$0xff] }
 0xbe1   : > { %v2991_v35 = vadd.f32 %v2990_v40, %v2960_v13  ;;  %v6553_v40 = vld [vmem:[#allocation38_spill] sm:$0xff] }
 0xbe3   : > { %v2992_v62 = vrot.slane %v2991_v35, 4 }
 0xbe5   : > { %v2993_v17 = vadd.f32 %v2992_v62, %v2991_v35 }
 0xbe7   : > { %v2994_v0 = vrot.slane %v2993_v17, 2 }
 0xbe9   : > { %v2995_v43 = vadd.f32 %v2994_v0, %v2993_v17 }
 0xbeb   : > { %v2996_v38 = vrot.slane %v2995_v43, 1 }
 0xbed   : > { %v2997_v61 = vadd.f32 %v2996_v38, %v2995_v43  ;;  %v6554_v43 = vld [vmem:[#allocation9_spill] sm:$0xff] }
 0xbef   : > { %v2998_v63 = vmul.f32 %v2997_v61, %v5967_v55  ;;  %v6550_v55 = vld [vmem:[#allocation3_spill] sm:$0xff]  ;;  %v6555_v61 = vld [vmem:[#allocation8_spill] sm:$0xff] }
 0xbf1   : > { %v2999_v44 = vadd.f32 1e-05, %v2998_v63 }
 0xbf3   : > { %3930 = vrsqrt.f32 %v2999_v44  ;;  %vm3006_vm3 = vweird.f32 %v2999_v44 }
 0xbf9   : > { %v3931_v49 = vpop.eup %3930 }
 0xbfa   : > { %v3001_v4 = vmul.f32 %v3931_v49, %v2999_v44  ;;  %vm3007_vm2 = vweird.f32 %v3931_v49  ;;  %v6557_v44 = vld [vmem:[#allocation35_spill] sm:$0xff] }
 0xbfb   : > { %vm3008_vm4 = vmor %vm3006_vm3, %vm3007_vm2 }
 0xbfc   : > { %v3002_v56 = vmul.f32 %v3931_v49, %v3001_v4  ;;  %v6558_v4 = vld [vmem:[#allocation41_spill] sm:$0xff] }
 0xbfe   : > { %v3003_v22 = vmul.f32 0.5, %v3002_v56 }
 0xc00   : > { %v3004_v45 = vsub.f32 1.5, %v3003_v22 }
 0xc02   : > { %v3005_v30 = vmul.f32 %v3931_v49, %v3004_v45  ;;  %v6560_v45 = vld [vmem:[#allocation42_spill] sm:$0xff] }
 0xc04   : > { %v6209_v36 = vsel %vm3008_vm4, %v3931_v49, %v3005_v30 }
 0xc05   : > { %v3011_v58 = vmul.f32 %v6209_v36, %v5978_v24  ;;  %v3012_v19 = vmul.f32 %v6209_v36, %v5982_v46  ;;  %v3010_v42 = vmul.f32 %v6209_v36, %v5974_v25  ;;  %v3015_v2 = vmul.f32 %v6209_v36, %v5996_v23 }
 0xc06   : > { %v3014_v24 = vmul.f32 %v6209_v36, %v5992_v59  ;;  %v3013_v46 = vmul.f32 %v6209_v36, %v6003_v20  ;;  %v3017_v17 = vmul.f32 %v6209_v36, %v6013_v21  ;;  %v3018_v25 = vmul.f32 %v6209_v36, %v6017_v37  ;;  %v6556_v59 = vld [vmem:[#allocation2_spill] sm:$0xff] }
 0xc07   : > { %v3236_v12 = vmul.f32 %v6550_v55, %v3012_v19  ;;  %v3235_v6 = vmul.f32 %v6551_v47, %v3011_v58  ;;  %v3234_v38 = vmul.f32 %v6554_v43, %v3010_v42  ;;  %v3239_v63 = vmul.f32 %v6555_v61, %v3015_v2  ;;  %v6559_v21 = vld [vmem:[#allocation6_spill] sm:$0xff] }
 0xc08   : > { %v3238_v20 = vmul.f32 %v6556_v59, %v3014_v24  ;;  %v3237_v22 = vmul.f32 %v6559_v21, %v3013_v46  ;;  %v6561_v19 = vld [vmem:[#allocation10_spill] sm:$0xff]  ;;  %v3016_v42 = vmul.f32 %v6209_v36, %v6023_v1  ;;  %v3019_v59 = vmul.f32 %v6209_v36, %v6044_v3 }
 0xc09   : > { %v3460_v60 = vadd.f32 %v6552_v11, %v3236_v12  ;;  %v3459_v13 = vadd.f32 %v6553_v40, %v3235_v6  ;;  %v3458_v49 = vadd.f32 %v6557_v44, %v3234_v38  ;;  %v3463_v56 = vadd.f32 %v6558_v4, %v3239_v63  ;;  %v6562_v12 = vld [vmem:[#allocation5_spill] sm:$0xff]  ;;  %v6563_v11 = vld [vmem:[#allocation39_spill] sm:$0xff]  ;;  %v6569_v44 = vld [vmem:[#allocation44_spill] sm:$0xff] }
 0xc0a   : > { %v3462_v37 = vadd.f32 %v6560_v45, %v3238_v20  ;;  %v3242_v55 = vmul.f32 %v6561_v19, %v3018_v25  ;;  %v3241_v47 = vmul.f32 %v6562_v12, %v3017_v17  ;;  %v3020_v40 = vmul.f32 %v6209_v36, %v6034_v5  ;;  %v6565_v17 = vld [vmem:[#allocation47_spill] sm:$0xff]  ;;  %v6567_v5 = vld [vmem:[#allocation13_spill] sm:$0xff]  ;;  %v6570_v45 = vld [vmem:[#allocation50_spill] sm:$0xff] }
 0xc0b   : > { %v3492_v35 = vmax.f32 %v3460_v60, 0.0  ;;  %v3491_v62 = vmax.f32 %v3459_v13, 0.0  ;;  %v3490_v30 = vmax.f32 %v3458_v49, 0.0  ;;  %v3495_v58 = vmax.f32 %v3463_v56, 0.0  ;;  %v6568_v63 = vld [vmem:[#allocation11_spill] sm:$0xff]  ;;  %v6572_v19 = vld [vmem:[#allocation12_spill] sm:$0xff] }
 0xc0c   : > { %v3494_v6 = vmax.f32 %v3462_v37, 0.0  ;;  %v3461_v60 = vadd.f32 %v6563_v11, %v3237_v22  ;;  %v3021_v13 = vmul.f32 %v6209_v36, %v6038_v52  ;;  %v3465_v25 = vadd.f32 %v6565_v17, %v3241_v47 }
 0xc0d   : > { %v3528_v23 = vsel %vm624_vm0, %v3492_v35, -inf  ;;  %v3525_v0 = vsel %vm624_vm0, %v3491_v62, -inf  ;;  %v3522_v2 = vsel %vm624_vm0, %v3490_v30, -inf  ;;  %v3537_v24 = vsel %vm624_vm0, %v3495_v58, -inf  ;;  %v6564_v35 = vld [vmem:[#allocation45_spill] sm:$0xff]  ;;  %v6571_v30 = vld [vmem:[#allocation51_spill] sm:$0xff] }
 0xc0e   : > { %3529 = vmax.xlane.f32.xlu1 %v3528_v23  ;;  %3526 = vmax.xlane.f32.xlu0 %v3525_v0  ;;  %v3534_v46 = vsel %vm624_vm0, %v3494_v6, -inf  ;;  %v3466_v62 = vadd.f32 %v6564_v35, %v3242_v55  ;;  %v3493_v1 = vmax.f32 %v3461_v60, 0.0  ;;  %v6566_v23 = vld [vmem:[#allocation7_spill] sm:$0xff]  ;;  %v3497_v38 = vmax.f32 %v3465_v25, 0.0  ;;  %v6575_v60 = vld [vmem:[#allocation48_spill] sm:$0xff] }
 0xc0f   : > { %3523 = vmax.xlane.f32.xlu2 %v3522_v2  ;;  %v3240_v0 = vmul.f32 %v6566_v23, %v3016_v42  ;;  %v3245_v61 = vmul.f32 %v6567_v5, %v3021_v13  ;;  %v3244_v52 = vmul.f32 %v6568_v63, %v3020_v40  ;;  %v3023_v4 = vmul.f32 %v6209_v36, %v6055_v50  ;;  %v6573_v50 = vld [vmem:[#allocation16_spill] sm:$0xff]  ;;  %v6574_v42 = vld [vmem:[#allocation14_spill] sm:$0xff]  ;;  %v6577_v25 = vld [vmem:[#allocation55_spill] sm:$0xff] }
 0xc10   : > { %v3498_v43 = vmax.f32 %v3466_v62, 0.0  ;;  %v3531_v20 = vsel %vm624_vm0, %v3493_v1, -inf  ;;  %v3024_v56 = vmul.f32 %v6209_v36, %v6059_v14  ;;  %v3543_v22 = vsel %vm624_vm0, %v3497_v38, -inf  ;;  %v6576_v62 = vld [vmem:[#allocation54_spill] sm:$0xff]  ;;  %v6578_v23 = vld [vmem:[#allocation15_spill] sm:$0xff] }
 0xc11   : > { %v3464_v49 = vadd.f32 %v6569_v44, %v3240_v0  ;;  %v3469_v37 = vadd.f32 %v6570_v45, %v3245_v61  ;;  %v3468_v58 = vadd.f32 %v6571_v30, %v3244_v52  ;;  %v3243_v55 = vmul.f32 %v6572_v19, %v3019_v59  ;;  %v6580_v61 = vld [vmem:[#allocation17_spill] sm:$0xff]  ;;  %v6581_v59 = vld [vmem:[#allocation52_spill] sm:$0xff]  ;;  %v6583_v45 = vld [vmem:[#allocation59_spill] sm:$0xff] }
 0xc12   : > { %v3546_v21 = vsel %vm624_vm0, %v3498_v43, -inf  ;;  %v3248_v6 = vmul.f32 %v6573_v50, %v3024_v56  ;;  %v3247_v14 = vmul.f32 %v6574_v42, %v3023_v4  ;;  %v3022_v2 = vmul.f32 %v6209_v36, %v6065_v57  ;;  %v6584_v30 = vld [vmem:[#allocation18_spill] sm:$0xff] }
 0xc13   : > { %v3496_v3 = vmax.f32 %v3464_v49, 0.0  ;;  %v3501_v12 = vmax.f32 %v3469_v37, 0.0  ;;  %v3500_v47 = vmax.f32 %v3468_v58, 0.0  ;;  %v3467_v40 = vadd.f32 %v6575_v60, %v3243_v55 }
 0xc14   : > { %v3026_v13 = vmul.f32 %v6209_v36, %v6076_v8  ;;  %v3472_v17 = vadd.f32 %v6576_v62, %v3248_v6  ;;  %v3471_v1 = vadd.f32 %v6577_v25, %v3247_v14  ;;  %v3246_v0 = vmul.f32 %v6578_v23, %v3022_v2  ;;  %v6579_v8 = vld [vmem:[#allocation19_spill] sm:$0xff]  ;;  %v6587_v6 = vld [vmem:[#allocation56_spill] sm:$0xff] }
 0xc15   : > { %v3540_v11 = vsel %vm624_vm0, %v3496_v3, -inf  ;;  %v3552_v35 = vsel %vm624_vm0, %v3500_v47, -inf  ;;  %v3499_v57 = vmax.f32 %v3467_v40, 0.0  ;;  %v3025_v63 = vmul.f32 %v6209_v36, %v6086_v16  ;;  %v6588_v40 = vld [vmem:[#allocation61_spill] sm:$0xff] }
 0xc16   : > { %3538 = vmax.xlane.f32.xlu1 %v3537_v24  ;;  %3535 = vmax.xlane.f32.xlu0 %v3534_v46  ;;  %v3027_v24 = vmul.f32 %v6209_v36, %v6080_v53  ;;  %v3555_v46 = vsel %vm624_vm0, %v3501_v12, -inf  ;;  %v3504_v43 = vmax.f32 %v3472_v17, 0.0  ;;  %v3503_v38 = vmax.f32 %v3471_v1, 0.0  ;;  %v6586_v12 = vld [vmem:[#allocation20_spill] sm:$0xff] }
 0xc17   : > { %3532 = vmax.xlane.f32.xlu2 %v3531_v20  ;;  %v3250_v53 = vmul.f32 %v6580_v61, %v3026_v13  ;;  %v3549_v52 = vsel %vm624_vm0, %v3499_v57, -inf  ;;  %v3470_v20 = vadd.f32 %v6581_v59, %v3246_v0  ;;  %v3029_v44 = vmul.f32 %v6209_v36, %v6097_v27  ;;  %v6585_v27 = vld [vmem:[#allocation22_spill] sm:$0xff]  ;;  %v6592_v57 = vld [vmem:[#allocation23_spill] sm:$0xff]  ;;  %v6595_v59 = vld [vmem:[#allocation65_spill] sm:$0xff] }
 0xc18   : > { %v3251_v5 = vmul.f32 %v6579_v8, %v3027_v24  ;;  %v3030_v49 = vmul.f32 %v6209_v36, %v6101_v26  ;;  %v3564_v4 = vsel %vm624_vm0, %v3504_v43, -inf  ;;  %v3561_v56 = vsel %vm624_vm0, %v3503_v38, -inf  ;;  %v6589_v24 = vld [vmem:[#allocation62_spill] sm:$0xff]  ;;  %v6593_v43 = vld [vmem:[#allocation60_spill] sm:$0xff] }
 0xc19   : > { %v3474_v37 = vadd.f32 %v6583_v45, %v3250_v53  ;;  %v3502_v16 = vmax.f32 %v3470_v20, 0.0  ;;  %v3249_v58 = vmul.f32 %v6584_v30, %v3025_v63  ;;  %v3253_v26 = vmul.f32 %v6586_v12, %v3029_v44  ;;  %v6594_v63 = vld [vmem:[#allocation64_spill] sm:$0xff]  ;;  %v6600_v12 = vld [vmem:[#allocation67_spill] sm:$0xff] }
 0xc1a   : > { %v3254_v55 = vmul.f32 %v6585_v27, %v3030_v49  ;;  %v3028_v47 = vmul.f32 %v6209_v36, %v6107_v29  ;;  %v3032_v14 = vmul.f32 %v6209_v36, %v6118_v33  ;;  %v3033_v2 = vmul.f32 %v6209_v36, %v6122_v10  ;;  %v6591_v33 = vld [vmem:[#allocation25_spill] sm:$0xff]  ;;  %v6596_v44 = vld [vmem:[#allocation24_spill] sm:$0xff] }
 0xc1b   : > { %v3506_v19 = vmax.f32 %v3474_v37, 0.0  ;;  %v3558_v50 = vsel %vm624_vm0, %v3502_v16, -inf  ;;  %v3473_v42 = vadd.f32 %v6587_v6, %v3249_v58  ;;  %v3031_v23 = vmul.f32 %v6209_v36, %v6128_v48  ;;  %v6599_v16 = vld [vmem:[#allocation63_spill] sm:$0xff]  ;;  %v6602_v6 = vld [vmem:[#allocation30_spill] sm:$0xff] }
 0xc1c   : > { %v3478_v13 = vadd.f32 %v6588_v40, %v3254_v55  ;;  %v3257_v1 = vmul.f32 %v6591_v33, %v3033_v2  ;;  %v3256_v10 = vmul.f32 %v6592_v57, %v3032_v14  ;;  %v3035_v8 = vmul.f32 %v6209_v36, %v6139_v31 }
 0xc1d   : > { %v3570_v60 = vsel %vm624_vm0, %v3506_v19, -inf  ;;  %v3505_v29 = vmax.f32 %v3473_v42, 0.0  ;;  %v3255_v49 = vmul.f32 %v6596_v44, %v3031_v23  ;;  %v3034_v45 = vmul.f32 %v6209_v36, %v6149_v15 }
 0xc1e   : > { %3547 = vmax.xlane.f32.xlu1 %v3546_v21  ;;  %3544 = vmax.xlane.f32.xlu0 %v3543_v22  ;;  %v6582_v21 = vld [vmem:[#allocation58_spill] sm:$0xff]  ;;  %v3510_v17 = vmax.f32 %v3478_v13, 0.0  ;;  %v3480_v20 = vadd.f32 %v6595_v59, %v3256_v10  ;;  %v3038_v58 = vmul.f32 %v6209_v36, %v6160_v34  ;;  %v6603_v34 = vld [vmem:[#allocation32_spill] sm:$0xff]  ;;  %v3041_v13 = vmul.f32 %v6209_v36, %v6181_v7  ;;  %v3456_v10 = vpop.permute.xlu1 %3455 }
 0xc1f   : > { %3541 = vmax.xlane.f32.xlu2 %v3540_v11  ;;  %v3475_v22 = vadd.f32 %v6582_v21, %v3251_v5  ;;  %v3567_v0 = vsel %vm624_vm0, %v3505_v29, -inf  ;;  %v3036_v5 = vmul.f32 %v6209_v36, %v6143_v9  ;;  %v3479_v30 = vadd.f32 %v6599_v16, %v3255_v49 }
 0xc20   : > { %v3582_v61 = vsel %vm624_vm0, %v3510_v17, -inf  ;;  %v3512_v21 = vmax.f32 %v3480_v20, 0.0  ;;  %v3262_v42 = vmul.f32 %v6602_v6, %v3038_v58  ;;  %v3040_v7 = vmul.f32 %v6209_v36, %v6187_v51 }
 0xc21   : > { %v3507_v3 = vmax.f32 %v3475_v22, 0.0  ;;  %v6598_v22 = vld [vmem:[#allocation26_spill] sm:$0xff]  ;;  %v3511_v15 = vmax.f32 %v3479_v30, 0.0 }
 0xc22   : > { %v3259_v9 = vmul.f32 %v6598_v22, %v3035_v8  ;;  %v3588_v55 = vsel %vm624_vm0, %v3512_v21, -inf }
 0xc23   : > { %v3573_v11 = vsel %vm624_vm0, %v3507_v3, -inf  ;;  %v3039_v3 = vmul.f32 %v6209_v36, %v6164_v32 }
 0xc25   : > { %v3263_v14 = vmul.f32 %v6603_v34, %v3039_v3 }
 0xc26   : > { %3556 = vmax.xlane.f32.xlu1 %v3555_v46  ;;  %3553 = vmax.xlane.f32.xlu0 %v3552_v35  ;;  %v3477_v46 = vadd.f32 %v6589_v24, %v3253_v26  ;;  %v6590_v35 = vld [vmem:[#allocation21_spill] sm:$0xff]  ;;  %v3483_v26 = vadd.f32 %v6600_v12, %v3259_v9  ;;  %v3486_v24 = vadd.f32 %v6204_v39, %v3262_v42 }
 0xc27   : > { %3550 = vmax.xlane.f32.xlu2 %v3549_v52  ;;  %v3252_v62 = vmul.f32 %v6590_v35, %v3028_v47  ;;  %v3481_v52 = vadd.f32 %v6594_v63, %v3257_v1  ;;  %v6601_v47 = vld [vmem:[#allocation27_spill] sm:$0xff] }
 0xc28   : > { %v3509_v25 = vmax.f32 %v3477_v46, 0.0  ;;  %v3515_v32 = vmax.f32 %v3483_v26, 0.0  ;;  %v3487_v46 = vadd.f32 %v6206_v28, %v3263_v14  ;;  %v3518_v1 = vmax.f32 %v3486_v24, 0.0 }
 0xc29   : > { %v3476_v38 = vadd.f32 %v6593_v43, %v3252_v62  ;;  %v3513_v31 = vmax.f32 %v3481_v52, 0.0  ;;  %v6605_v62 = vld [vmem:[#allocation31_spill] sm:$0xff] }
 0xc2a   : > { %v3579_v53 = vsel %vm624_vm0, %v3509_v25, -inf  ;;  %v3597_v35 = vsel %vm624_vm0, %v3515_v32, -inf  ;;  %v6606_v25 = vld [vmem:[#allocation33_spill] sm:$0xff]  ;;  %v3519_v57 = vmax.f32 %v3487_v46, 0.0  ;;  %v3606_v43 = vsel %vm624_vm0, %v3518_v1, -inf }
 0xc2b   : > { %v3508_v48 = vmax.f32 %v3476_v38, 0.0  ;;  %v3591_v27 = vsel %vm624_vm0, %v3513_v31, -inf  ;;  %v3265_v33 = vmul.f32 %v6606_v25, %v3041_v13  ;;  %v6607_v38 = vld [vmem:[#allocation34_spill] sm:$0xff] }
 0xc2c   : > { %v3264_v8 = vmul.f32 %v6607_v38, %v3040_v7 }
 0xc2d   : > { %v3576_v37 = vsel %vm624_vm0, %v3508_v48, -inf  ;;  %v3489_v23 = vadd.f32 %v3456_v10, %v3265_v33 }
 0xc2e   : > { %3565 = vmax.xlane.f32.xlu1 %v3564_v4  ;;  %3562 = vmax.xlane.f32.xlu0 %v3561_v56  ;;  %v6597_v4 = vld [vmem:[#allocation29_spill] sm:$0xff] }
 0xc2f   : > { %3559 = vmax.xlane.f32.xlu2 %v3558_v50  ;;  %v3260_v56 = vmul.f32 %v6597_v4, %v3036_v5  ;;  %v3258_v50 = vmul.f32 %v6601_v47, %v3034_v45 }
 0xc31   : > { %v3484_v19 = vadd.f32 %v6199_v41, %v3260_v56  ;;  %v3037_v41 = vmul.f32 %v6209_v36, %v6170_v54 }
 0xc33   : > { %v3516_v2 = vmax.f32 %v3484_v19, 0.0  ;;  %v3261_v54 = vmul.f32 %v6605_v62, %v3037_v41 }
 0xc35   : > { %v3600_v29 = vsel %vm624_vm0, %v3516_v2, -inf  ;;  %v3485_v39 = vadd.f32 %v5965_v18, %v3261_v54 }
 0xc36   : > { %3574 = vmax.xlane.f32.xlu1 %v3573_v11  ;;  %3571 = vmax.xlane.f32.xlu0 %v3570_v60  ;;  %v3585_v11 = vsel %vm624_vm0, %v3511_v15, -inf  ;;  %v6604_v60 = vld [vmem:[#allocation66_spill] sm:$0xff] }
 0xc37   : > { %3568 = vmax.xlane.f32.xlu2 %v3567_v0  ;;  %v3482_v40 = vadd.f32 %v6604_v60, %v3258_v50  ;;  %v3609_v0 = vsel %vm624_vm0, %v3519_v57, -inf  ;;  %v3517_v5 = vmax.f32 %v3485_v39, 0.0 }
 0xc39   : > { %v3514_v17 = vmax.f32 %v3482_v40, 0.0  ;;  %v3603_v18 = vsel %vm624_vm0, %v3517_v5, -inf }
 0xc3b   : > { %v3594_v28 = vsel %vm624_vm0, %v3514_v17, -inf }
 0xc3e   : > { %3583 = vmax.xlane.f32.xlu1 %v3582_v61  ;;  %3580 = vmax.xlane.f32.xlu0 %v3579_v53  ;;  %v3521_v61 = vmax.f32 %v3489_v23, 0.0  ;;  %v3451_v53 = vpop.permute.xlu0 %3450 }
 0xc3f   : > { %3577 = vmax.xlane.f32.xlu2 %v3576_v37  ;;  %v3488_v51 = vadd.f32 %v3451_v53, %v3264_v8 }
 0xc40   : > { %v3615_v36 = vsel %vm624_vm0, %v3521_v61, -inf }
 0xc41   : > { %v3520_v63 = vmax.f32 %v3488_v51, 0.0 }
 0xc43   : > { %v3612_v52 = vsel %vm624_vm0, %v3520_v63, -inf }
 0xc46   : > { %3592 = vmax.xlane.f32.xlu1 %v3591_v27  ;;  %3589 = vmax.xlane.f32.xlu0 %v3588_v55 }
 0xc47   : > { %3586 = vmax.xlane.f32.xlu2 %v3585_v11 }
 0xc4e   : > { %3601 = vmax.xlane.f32.xlu1 %v3600_v29  ;;  %3598 = vmax.xlane.f32.xlu0 %v3597_v35 }
 0xc4f   : > { %3595 = vmax.xlane.f32.xlu2 %v3594_v28 }
 0xc56   : > { %3610 = vmax.xlane.f32.xlu1 %v3609_v0  ;;  %3607 = vmax.xlane.f32.xlu0 %v3606_v43 }
 0xc57   : > { %3604 = vmax.xlane.f32.xlu2 %v3603_v18 }
 0xc5e   : > { %3616 = vmax.xlane.f32.xlu0 %v3615_v36 }
 0xc5f   : > { %3613 = vmax.xlane.f32.xlu2 %v3612_v52 }
 0xc81   : > { %v3530_v59 = vpop.xlane.xlu1 %3529  ;;  %v3527_v20 = vpop.xlane.xlu0 %3526 }
 0xc82   : > { %3621 = vst.msk [vmem:[%s6373_s10 + $0x10] sm:$0xff] %vm3618_vm5, %v3530_v59  ;;  %v3524_v48 = vpop.xlane.xlu2 %3523 }
 0xc83   : > { %3620 = vst.msk [vmem:[%s6373_s10 + $0x8] sm:$0xff] %vm3618_vm5, %v3527_v20 }
 0xc84   : > { %3619 = vst.msk [vmem:[%s6373_s10] sm:$0xff] %vm3618_vm5, %v3524_v48 }
 0xc89   : > { %v3539_v44 = vpop.xlane.xlu1 %3538  ;;  %v3536_v49 = vpop.xlane.xlu0 %3535 }
 0xc8a   : > { %3624 = vst.msk [vmem:[%s6373_s10 + $0x28] sm:$0xff] %vm3618_vm5, %v3539_v44  ;;  %v3533_v4 = vpop.xlane.xlu2 %3532 }
 0xc8b   : > { %3623 = vst.msk [vmem:[%s6373_s10 + $0x20] sm:$0xff] %vm3618_vm5, %v3536_v49 }
 0xc8c   : > { %3622 = vst.msk [vmem:[%s6373_s10 + $0x18] sm:$0xff] %vm3618_vm5, %v3533_v4 }
 0xc91   : > { %v3548_v56 = vpop.xlane.xlu1 %3547  ;;  %v3545_v31 = vpop.xlane.xlu0 %3544 }
 0xc92   : > { %3627 = vst.msk [vmem:[%s6373_s10 + $0x40] sm:$0xff] %vm3618_vm5, %v3548_v56  ;;  %v3542_v21 = vpop.xlane.xlu2 %3541 }
 0xc93   : > { %3626 = vst.msk [vmem:[%s6373_s10 + $0x38] sm:$0xff] %vm3618_vm5, %v3545_v31 }
 0xc94   : > { %3625 = vst.msk [vmem:[%s6373_s10 + $0x30] sm:$0xff] %vm3618_vm5, %v3542_v21 }
 0xc99   : > { %v3557_v22 = vpop.xlane.xlu1 %3556  ;;  %v3554_v9 = vpop.xlane.xlu0 %3553 }
 0xc9a   : > { %3630 = vst.msk [vmem:[%s6373_s10 + $0x58] sm:$0xff] %vm3618_vm5, %v3557_v22  ;;  %v3551_v45 = vpop.xlane.xlu2 %3550 }
 0xc9b   : > { %3629 = vst.msk [vmem:[%s6373_s10 + $0x50] sm:$0xff] %vm3618_vm5, %v3554_v9 }
 0xc9c   : > { %3628 = vst.msk [vmem:[%s6373_s10 + $0x48] sm:$0xff] %vm3618_vm5, %v3551_v45 }
 0xca1   : > { %v3566_v37 = vpop.xlane.xlu1 %3565  ;;  %v3563_v16 = vpop.xlane.xlu0 %3562 }
 0xca2   : > { %3633 = vst.msk [vmem:[%s6373_s10 + $0x70] sm:$0xff] %vm3618_vm5, %v3566_v37  ;;  %v3560_v30 = vpop.xlane.xlu2 %3559 }
 0xca3   : > { %3632 = vst.msk [vmem:[%s6373_s10 + $0x68] sm:$0xff] %vm3618_vm5, %v3563_v16 }
 0xca4   : > { %3631 = vst.msk [vmem:[%s6373_s10 + $0x60] sm:$0xff] %vm3618_vm5, %v3560_v30 }
 0xca9   : > { %v3575_v58 = vpop.xlane.xlu1 %3574  ;;  %v3572_v3 = vpop.xlane.xlu0 %3571 }
 0xcaa   : > { %3636 = vst.msk [vmem:[%s6373_s10 + $0x88] sm:$0xff] %vm3618_vm5, %v3575_v58  ;;  %v3569_v19 = vpop.xlane.xlu2 %3568 }
 0xcab   : > { %3635 = vst.msk [vmem:[%s6373_s10 + $0x80] sm:$0xff] %vm3618_vm5, %v3572_v3 }
 0xcac   : > { %3634 = vst.msk [vmem:[%s6373_s10 + $0x78] sm:$0xff] %vm3618_vm5, %v3569_v19 }
 0xcb1   : > { %v3584_v27 = vpop.xlane.xlu1 %3583  ;;  %v3581_v55 = vpop.xlane.xlu0 %3580 }
 0xcb2   : > { %3639 = vst.msk [vmem:[%s6373_s10 + $0xa0] sm:$0xff] %vm3618_vm5, %v3584_v27  ;;  %v3578_v12 = vpop.xlane.xlu2 %3577 }
 0xcb3   : > { %3638 = vst.msk [vmem:[%s6373_s10 + $0x98] sm:$0xff] %vm3618_vm5, %v3581_v55 }
 0xcb4   : > { %3637 = vst.msk [vmem:[%s6373_s10 + $0x90] sm:$0xff] %vm3618_vm5, %v3578_v12 }
 0xcb9   : > { %v3593_v26 = vpop.xlane.xlu1 %3592  ;;  %v3590_v15 = vpop.xlane.xlu0 %3589 }
 0xcba   : > { %3642 = vst.msk [vmem:[%s6373_s10 + $0xb8] sm:$0xff] %vm3618_vm5, %v3593_v26  ;;  %v3587_v47 = vpop.xlane.xlu2 %3586 }
 0xcbb   : > { %3641 = vst.msk [vmem:[%s6373_s10 + $0xb0] sm:$0xff] %vm3618_vm5, %v3590_v15 }
 0xcbc   : > { %3640 = vst.msk [vmem:[%s6373_s10 + $0xa8] sm:$0xff] %vm3618_vm5, %v3587_v47 }
 0xcc1   : > { %v3602_v50 = vpop.xlane.xlu1 %3601  ;;  %v3599_v6 = vpop.xlane.xlu0 %3598 }
 0xcc2   : > { %3645 = vst.msk [vmem:[%s6373_s10 + $0xd0] sm:$0xff] %vm3618_vm5, %v3602_v50  ;;  %v3596_v42 = vpop.xlane.xlu2 %3595 }
 0xcc3   : > { %3644 = vst.msk [vmem:[%s6373_s10 + $0xc8] sm:$0xff] %vm3618_vm5, %v3599_v6 }
 0xcc4   : > { %3643 = vst.msk [vmem:[%s6373_s10 + $0xc0] sm:$0xff] %vm3618_vm5, %v3596_v42 }
 0xcc9   : > { %v3611_v34 = vpop.xlane.xlu1 %3610  ;;  %v3608_v14 = vpop.xlane.xlu0 %3607 }
 0xcca   : > { %3648 = vst.msk [vmem:[%s6373_s10 + $0xe8] sm:$0xff] %vm3618_vm5, %v3611_v34  ;;  %v3605_v2 = vpop.xlane.xlu2 %3604 }
 0xccb   : > { %3647 = vst.msk [vmem:[%s6373_s10 + $0xe0] sm:$0xff] %vm3618_vm5, %v3608_v14 }
 0xccc   : > { %3646 = vst.msk [vmem:[%s6373_s10 + $0xd8] sm:$0xff] %vm3618_vm5, %v3605_v2 }
 0xcd1   : > { %v3617_v32 = vpop.xlane.xlu0 %3616 }
 0xcd2   : > { %3650 = vst.msk [vmem:[%s6373_s10 + $0xf8] sm:$0xff] %vm3618_vm5, %v3617_v32  ;;  %v3614_v41 = vpop.xlane.xlu2 %3613 }
 0xcd3   : > { %3649 = vst.msk [vmem:[%s6373_s10 + $0xf0] sm:$0xff] %vm3618_vm5, %v3614_v41 }
 0xcd4 PF: > { %s16_s21 = sadd.s32 1, %s3938_s21  }
 0xcd5   : > { %p13_p4 = scmp.ge.s32.totalorder %s16_s21, 4  }
 0xcd7   :  { %15 = sbr.rel (!%p13_p4) target bundleno = 1 (0x1), region = 74 }

</bundles_post_ra>
